<compile_context>
chip_gen: v5e
topology: v5e:2x2
jax: 0.10.0
libtpu: 0.0.40
codegen_flags: <defaults>
</compile_context>

<pallas_src>
import functools

import jax
import jax.numpy as jnp
from jax import lax
from jax.experimental import pallas as pl
from jax.experimental.pallas import tpu as pltpu


# ----------------------------------------------------------------------------
# Fused Pallas kernel
# ----------------------------------------------------------------------------
def make_bilstm_kernel(T, B, H, num_layers):
    """Build the fused kernel.

    Ref order (pallas_call convention: inputs..., outputs..., scratch...):
      x_ref (T*B, I) bf16    time-major rows, row t*B+b == input[b, t, :]
      per layer: wih (F, 8H) bf16, whh (2H, 8H) bf16 (block-diag), b (1, 8H) f32
      lin_w (2H, O) bf16, lin_b (1, O) f32
      out_ref (B, O) f32
      act_ref (T*B, 2H) f32  VMEM scratch: layer output [h_f | h_b] in time order
    """
    H4 = 4 * H

    def kernel(x_ref, *refs):
        w_refs = refs[:3 * num_layers]
        lin_w_ref = refs[3 * num_layers]
        lin_b_ref = refs[3 * num_layers + 1]
        out_ref = refs[3 * num_layers + 2]
        act_ref = refs[3 * num_layers + 3]

        for layer in range(num_layers):
            wih = w_refs[3 * layer + 0][...]     # (F, 8H) bf16
            whh = w_refs[3 * layer + 1][...]     # (2H, 8H) bf16, block-diagonal
            bias = w_refs[3 * layer + 2][...]    # (1, 8H) f32

            if layer == 0:
                xin = x_ref[...]                                   # (T*B, I) bf16
            else:
                xin = act_ref[...].astype(jnp.bfloat16)            # (T*B, 2H)

            # Hoisted input projection: ONE 8H(=256)-wide matmul per layer for both
            # directions; off the serial critical path of the recurrence.
            xw = jnp.dot(xin, wih, preferred_element_type=jnp.float32) + bias  # (T*B, 8H)

            h = jnp.zeros((B, 2 * H), jnp.float32)   # combined [h_f | h_b]
            c_f = jnp.zeros((B, H), jnp.float32)
            c_b = jnp.zeros((B, H), jnp.float32)

            # Static unroll over time: fwd (time s) and bwd (time T-1-s) share one
            # block-diagonal recurrent matmul per step.
            for s in range(T):
                r = T - 1 - s
                # Step-aligned input contribution; both pieces are 128-lane aligned
                # (4H = 128) and independent of h -> scheduled off the chain.
                xw_step = jnp.concatenate(
                    [xw[s * B:(s + 1) * B, 0:H4],        # fwd gates, time s
                     xw[r * B:(r + 1) * B, H4:2 * H4]],  # bwd gates, time r
                    axis=1)                              # (B, 8H)

                if s == 0:
                    # h == 0: skip the recurrent matmul entirely (chain shortening).
                    gates = xw_step
                else:
                    gates = xw_step + jnp.dot(
                        h.astype(jnp.bfloat16), whh,
                        preferred_element_type=jnp.float32)        # (B, 8H)

                # Whole-tile nonlinearities (EUP), then slice.
                sig = jax.nn.sigmoid(gates)
                th = jnp.tanh(gates)
                i_f = sig[:, 0 * H:1 * H]
                f_f = sig[:, 1 * H:2 * H]
                g_f = th[:, 2 * H:3 * H]
                o_f = sig[:, 3 * H:4 * H]
                i_b = sig[:, 4 * H:5 * H]
                f_b = sig[:, 5 * H:6 * H]
                g_b = th[:, 6 * H:7 * H]
                o_b = sig[:, 7 * H:8 * H]

                c_f = f_f * c_f + i_f * g_f
                c_b = f_b * c_b + i_b * g_b
                h_f = o_f * jnp.tanh(c_f)
                h_b = o_b * jnp.tanh(c_b)
                h = jnp.concatenate([h_f, h_b], axis=1)            # next step's LHS

                # Direct stores into the layer-output scratch (vst slot, off-chain);
                # replaces the old end-of-layer concatenate relayout.
                act_ref[s * B:(s + 1) * B, 0:H] = h_f
                act_ref[r * B:(r + 1) * B, H:2 * H] = h_b

        # Final Linear on the last time step only: output[:, -1, :] @ W + b.
        last = act_ref[(T - 1) * B:T * B, :]                        # (B, 2H) f32
        out_ref[...] = (jnp.dot(last.astype(jnp.bfloat16), lin_w_ref[...],
                                preferred_element_type=jnp.float32)
                        + lin_b_ref[...])

    return kernel


# ----------------------------------------------------------------------------
# Host-side weight packing (done once, outside the forward path)
# ----------------------------------------------------------------------------
def pack_params(params):
    """Fuse per-direction weights into the kernel's layout.

    Per layer: wih = [wih_f | wih_b] (F, 8H) bf16; whh = blkdiag(whh_f, whh_b) (2H, 8H)
    bf16; bias = [b_f | b_b] (1, 8H) f32. Linear weight cast to bf16.
    """
    H = params["layers"][0][0]["whh_t"].shape[0]
    packed = {"layers": []}
    for dirs in params["layers"]:
        f, b = dirs[0], dirs[1]
        wih_c = jnp.concatenate([f["wih_t"], b["wih_t"]], axis=1).astype(jnp.bfloat16)
        whh_c = jnp.zeros((2 * H, 8 * H), jnp.float32)
        whh_c = whh_c.at[0:H, 0:4 * H].set(f["whh_t"])
        whh_c = whh_c.at[H:2 * H, 4 * H:8 * H].set(b["whh_t"])
        packed["layers"].append({
            "wih": wih_c,                                           # (F, 8H) bf16
            "whh": whh_c.astype(jnp.bfloat16),                      # (2H, 8H) bf16
            "b": jnp.concatenate([f["b"], b["b"]]).reshape(1, 8 * H).astype(jnp.float32),
        })
    packed["lin_w"] = params["lin_w_t"].astype(jnp.bfloat16)        # (2H, O)
    packed["lin_b"] = params["lin_b"].reshape(1, -1).astype(jnp.float32)
    return packed


# ----------------------------------------------------------------------------
# Wrapper
# ----------------------------------------------------------------------------
def bilstm_forward(packed, input_seq):
    """Equivalent of BiLSTM.forward. input_seq: (B, T, input_size) -> (B, output_size)."""
    B, T, I = input_seq.shape
    H = packed["layers"][0]["whh"].shape[0] // 2
    O = packed["lin_b"].shape[-1]
    num_layers = len(packed["layers"])

    # batch-first -> time-major rows (row t*B + b corresponds to (b, t)); bf16 matmul LHS.
    x_tm = (jnp.transpose(input_seq, (1, 0, 2))
            .reshape(T * B, I).astype(jnp.bfloat16))

    args = [x_tm]
    in_specs = [pl.BlockSpec((T * B, I), lambda: (0, 0))]
    for p in packed["layers"]:
        args += [p["wih"], p["whh"], p["b"]]
        in_specs += [
            pl.BlockSpec(p["wih"].shape, lambda: (0, 0)),
            pl.BlockSpec(p["whh"].shape, lambda: (0, 0)),
            pl.BlockSpec(p["b"].shape, lambda: (0, 0)),
        ]
    args += [packed["lin_w"], packed["lin_b"]]
    in_specs += [
        pl.BlockSpec(packed["lin_w"].shape, lambda: (0, 0)),
        pl.BlockSpec(packed["lin_b"].shape, lambda: (0, 0)),
    ]

    kernel = make_bilstm_kernel(T, B, H, num_layers)
    return pl.pallas_call(
        kernel,
        out_shape=jax.ShapeDtypeStruct((B, O), jnp.float32),
        in_specs=in_specs,
        out_specs=pl.BlockSpec((B, O), lambda: (0, 0)),
        scratch_shapes=[pltpu.VMEM((T * B, 2 * H), jnp.float32)],
    )(*args)


# ----------------------------------------------------------------------------
# Parameter init (PyTorch-shaped: uniform(-k, k), k = 1/sqrt(H))
# ----------------------------------------------------------------------------
def init_params(key, input_size, hidden_size, output_size, num_layers):
    k = 1.0 / jnp.sqrt(hidden_size)
    params = {"layers": []}
    for layer in range(num_layers):
        in_sz = input_size if layer == 0 else 2 * hidden_size
        dirs = []
        for _ in range(2):  # forward, backward
            key, k1, k2, k3, k4 = jax.random.split(key, 5)
            w_ih = jax.random.uniform(k1, (4 * hidden_size, in_sz),
                                      minval=-k, maxval=k, dtype=jnp.float32)
            w_hh = jax.random.uniform(k2, (4 * hidden_size, hidden_size),
                                      minval=-k, maxval=k, dtype=jnp.float32)
            b_ih = jax.random.uniform(k3, (4 * hidden_size,),
                                      minval=-k, maxval=k, dtype=jnp.float32)
            b_hh = jax.random.uniform(k4, (4 * hidden_size,),
                                      minval=-k, maxval=k, dtype=jnp.float32)
            dirs.append({
                "wih_t": w_ih.T,          # (in_sz, 4H), gate order i,f,g,o
                "whh_t": w_hh.T,          # (H, 4H)
                "b": b_ih + b_hh,         # (4H,)
            })
        params["layers"].append(dirs)
    key, k1, k2 = jax.random.split(key, 3)
    kl = 1.0 / jnp.sqrt(2 * hidden_size)
    w_lin = jax.random.uniform(k1, (output_size, 2 * hidden_size),
                               minval=-kl, maxval=kl, dtype=jnp.float32)
    b_lin = jax.random.uniform(k2, (output_size,),
                               minval=-kl, maxval=kl, dtype=jnp.float32)
    params["lin_w_t"] = w_lin.T            # (2H, O)
    params["lin_b"] = b_lin                # (O,)
    return params


# ----------------------------------------------------------------------------
# Pure-JAX reference (lax.scan, f32) for correctness check
# ----------------------------------------------------------------------------
def _ref_cell(carry, x_t, wih_t, whh_t, b, H):
    h, c = carry
    g = x_t @ wih_t + h @ whh_t + b
    i = jax.nn.sigmoid(g[:, 0 * H:1 * H])
    f = jax.nn.sigmoid(g[:, 1 * H:2 * H])
    gg = jnp.tanh(g[:, 2 * H:3 * H])
    o = jax.nn.sigmoid(g[:, 3 * H:4 * H])
    c = f * c + i * gg
    h = o * jnp.tanh(c)
    return (h, c), h


def bilstm_reference(params, input_seq, hidden_size):
    x = jnp.transpose(input_seq, (1, 0, 2)).astype(jnp.float32)
    B = x.shape[1]
    for dirs in params["layers"]:
        outs = []
        for d, rev in ((0, False), (1, True)):
            p = dirs[d]
            xs = x[::-1] if rev else x
            init = (jnp.zeros((B, hidden_size), jnp.float32),
                    jnp.zeros((B, hidden_size), jnp.float32))
            _, hs = lax.scan(
                functools.partial(_ref_cell, wih_t=p["wih_t"], whh_t=p["whh_t"],
                                  b=p["b"], H=hidden_size), init, xs)
            outs.append(hs[::-1] if rev else hs)
        x = jnp.concatenate(outs, axis=-1)
    return x[-1] @ params["lin_w_t"] + params["lin_b"]


# ----------------------------------------------------------------------------
if __name__ == "__main__":
    batch, seq_len = 2, 8
    input_size, hidden_size, output_size, num_layers = 16, 32, 4, 2

    key = jax.random.PRNGKey(0)
    kp, kx = jax.random.split(key)
    params = init_params(kp, input_size, hidden_size, output_size, num_layers)
    packed = pack_params(params)
    x = jax.random.normal(kx, (batch, seq_len, input_size), dtype=jnp.float32)

    pred = bilstm_forward(packed, x)
    pred = jax.block_until_ready(pred)

    ref = bilstm_reference(params, x, hidden_size)
    assert pred.shape == (batch, output_size)
    # bf16 matmul operands (f32 accumulate) -> loosened tolerance vs. the f32 reference.
    assert jnp.allclose(pred, ref, atol=3e-2, rtol=3e-2), (pred, ref)

    print("KERNEL_OK")
</pallas_src>

<mosaic_0001>
module attributes {stable_mosaic.version = 11 : i64} {
  func.func @kernel(%arg0: memref<16x16xbf16, #tpu.memory_space<vmem>>, %arg1: memref<16x256xbf16, #tpu.memory_space<vmem>>, %arg2: memref<64x256xbf16, #tpu.memory_space<vmem>>, %arg3: memref<1x256xf32, #tpu.memory_space<vmem>>, %arg4: memref<64x256xbf16, #tpu.memory_space<vmem>>, %arg5: memref<64x256xbf16, #tpu.memory_space<vmem>>, %arg6: memref<1x256xf32, #tpu.memory_space<vmem>>, %arg7: memref<64x4xbf16, #tpu.memory_space<vmem>>, %arg8: memref<1x4xf32, #tpu.memory_space<vmem>>, %arg9: memref<2x4xf32, #tpu.memory_space<vmem>>, %arg10: memref<16x64xf32, #tpu.memory_space<vmem>>) attributes {dimension_semantics = [], scalar_prefetch = 0 : i64, scratch_operands = 1 : i64, tpu.core_type = #tpu.core_type<tc>} {
    %c0 = arith.constant 0 : index
    %c0_0 = arith.constant 0 : index
    %0 = vector.load %arg1[%c0, %c0_0] : memref<16x256xbf16, #tpu.memory_space<vmem>>, vector<16x256xbf16>
    %c0_1 = arith.constant 0 : index
    %c0_2 = arith.constant 0 : index
    %1 = vector.load %arg2[%c0_1, %c0_2] : memref<64x256xbf16, #tpu.memory_space<vmem>>, vector<64x256xbf16>
    %c0_3 = arith.constant 0 : index
    %c0_4 = arith.constant 0 : index
    %2 = vector.load %arg3[%c0_3, %c0_4] : memref<1x256xf32, #tpu.memory_space<vmem>>, vector<1x256xf32>
    %c0_5 = arith.constant 0 : index
    %c0_6 = arith.constant 0 : index
    %3 = vector.load %arg0[%c0_5, %c0_6] : memref<16x16xbf16, #tpu.memory_space<vmem>>, vector<16x16xbf16>
    %cst = arith.constant dense<0.000000e+00> : vector<16x256xf32>
    %4 = tpu.matmul %3, %0, %cst {dimension_numbers = #tpu.dot_dimension_numbers<[1], [0], [0], [1], [0, 0, 1, 1], [], []>} : vector<16x16xbf16>, vector<16x256xbf16>, vector<16x256xf32> -> vector<16x256xf32>
    %5 = vector.broadcast %2 : vector<1x256xf32> to vector<16x256xf32>
    %6 = arith.addf %4, %5 : vector<16x256xf32>
    %cst_7 = arith.constant 0.000000e+00 : f32
    %7 = vector.broadcast %cst_7 : f32 to vector<2x32xf32>
    %cst_8 = arith.constant 0.000000e+00 : f32
    %8 = vector.broadcast %cst_8 : f32 to vector<2x32xf32>
    %9 = vector.extract_strided_slice %6 {offsets = [0, 0], sizes = [2, 128], strides = [1, 1]} : vector<16x256xf32> to vector<2x128xf32>
    %10 = vector.extract_strided_slice %6 {offsets = [14, 128], sizes = [2, 128], strides = [1, 1]} : vector<16x256xf32> to vector<2x128xf32>
    %11 = tpu.concatenate %9, %10 in 1 : vector<2x128xf32>, vector<2x128xf32> -> vector<2x256xf32>
    %12 = arith.negf %11 : vector<2x256xf32>
    %13 = math.exp %12 : vector<2x256xf32>
    %cst_9 = arith.constant 1.000000e+00 : f32
    %14 = vector.broadcast %cst_9 : f32 to vector<2x256xf32>
    %15 = arith.addf %14, %13 : vector<2x256xf32>
    %16 = arith.divf %14, %15 : vector<2x256xf32>
    %17 = math.tanh %11 : vector<2x256xf32>
    %18 = vector.extract_strided_slice %16 {offsets = [0, 0], sizes = [2, 32], strides = [1, 1]} : vector<2x256xf32> to vector<2x32xf32>
    %19 = vector.extract_strided_slice %16 {offsets = [0, 32], sizes = [2, 32], strides = [1, 1]} : vector<2x256xf32> to vector<2x32xf32>
    %20 = vector.extract_strided_slice %17 {offsets = [0, 64], sizes = [2, 32], strides = [1, 1]} : vector<2x256xf32> to vector<2x32xf32>
    %21 = vector.extract_strided_slice %16 {offsets = [0, 96], sizes = [2, 32], strides = [1, 1]} : vector<2x256xf32> to vector<2x32xf32>
    %22 = vector.extract_strided_slice %16 {offsets = [0, 128], sizes = [2, 32], strides = [1, 1]} : vector<2x256xf32> to vector<2x32xf32>
    %23 = vector.extract_strided_slice %16 {offsets = [0, 160], sizes = [2, 32], strides = [1, 1]} : vector<2x256xf32> to vector<2x32xf32>
    %24 = vector.extract_strided_slice %17 {offsets = [0, 192], sizes = [2, 32], strides = [1, 1]} : vector<2x256xf32> to vector<2x32xf32>
    %25 = vector.extract_strided_slice %16 {offsets = [0, 224], sizes = [2, 32], strides = [1, 1]} : vector<2x256xf32> to vector<2x32xf32>
    %26 = arith.mulf %19, %7 : vector<2x32xf32>
    %27 = arith.mulf %18, %20 : vector<2x32xf32>
    %28 = arith.addf %26, %27 : vector<2x32xf32>
    %29 = arith.mulf %23, %8 : vector<2x32xf32>
    %30 = arith.mulf %22, %24 : vector<2x32xf32>
    %31 = arith.addf %29, %30 : vector<2x32xf32>
    %32 = math.tanh %28 : vector<2x32xf32>
    %33 = arith.mulf %21, %32 : vector<2x32xf32>
    %34 = math.tanh %31 : vector<2x32xf32>
    %35 = arith.mulf %25, %34 : vector<2x32xf32>
    %36 = tpu.concatenate %33, %35 in 1 : vector<2x32xf32>, vector<2x32xf32> -> vector<2x64xf32>
    %c0_10 = arith.constant 0 : index
    %c0_11 = arith.constant 0 : index
    %37 = vector.load %arg10[%c0_10, %c0_11] : memref<16x64xf32, #tpu.memory_space<vmem>>, vector<2x32xf32>
    tpu.vector_store %arg10[%c0_10, %c0_11], %33 {strides = array<i32>} : memref<16x64xf32, #tpu.memory_space<vmem>>, vector<2x32xf32>,
    %c14 = arith.constant 14 : index
    %c32 = arith.constant 32 : index
    %38 = vector.load %arg10[%c14, %c32] : memref<16x64xf32, #tpu.memory_space<vmem>>, vector<2x32xf32>
    tpu.vector_store %arg10[%c14, %c32], %35 {strides = array<i32>} : memref<16x64xf32, #tpu.memory_space<vmem>>, vector<2x32xf32>,
    %39 = vector.extract_strided_slice %6 {offsets = [2, 0], sizes = [2, 128], strides = [1, 1]} : vector<16x256xf32> to vector<2x128xf32>
    %40 = vector.extract_strided_slice %6 {offsets = [12, 128], sizes = [2, 128], strides = [1, 1]} : vector<16x256xf32> to vector<2x128xf32>
    %41 = tpu.concatenate %39, %40 in 1 : vector<2x128xf32>, vector<2x128xf32> -> vector<2x256xf32>
    %42 = arith.truncf %36 : vector<2x64xf32> to vector<2x64xbf16>
    %cst_12 = arith.constant dense<0.000000e+00> : vector<2x256xf32>
    %43 = tpu.matmul %42, %1, %cst_12 {dimension_numbers = #tpu.dot_dimension_numbers<[1], [0], [0], [1], [0, 0, 1, 1], [], []>} : vector<2x64xbf16>, vector<64x256xbf16>, vector<2x256xf32> -> vector<2x256xf32>
    %44 = arith.addf %41, %43 : vector<2x256xf32>
    %45 = arith.negf %44 : vector<2x256xf32>
    %46 = math.exp %45 : vector<2x256xf32>
    %cst_13 = arith.constant 1.000000e+00 : f32
    %47 = vector.broadcast %cst_13 : f32 to vector<2x256xf32>
    %48 = arith.addf %47, %46 : vector<2x256xf32>
    %49 = arith.divf %47, %48 : vector<2x256xf32>
    %50 = math.tanh %44 : vector<2x256xf32>
    %51 = vector.extract_strided_slice %49 {offsets = [0, 0], sizes = [2, 32], strides = [1, 1]} : vector<2x256xf32> to vector<2x32xf32>
    %52 = vector.extract_strided_slice %49 {offsets = [0, 32], sizes = [2, 32], strides = [1, 1]} : vector<2x256xf32> to vector<2x32xf32>
    %53 = vector.extract_strided_slice %50 {offsets = [0, 64], sizes = [2, 32], strides = [1, 1]} : vector<2x256xf32> to vector<2x32xf32>
    %54 = vector.extract_strided_slice %49 {offsets = [0, 96], sizes = [2, 32], strides = [1, 1]} : vector<2x256xf32> to vector<2x32xf32>
    %55 = vector.extract_strided_slice %49 {offsets = [0, 128], sizes = [2, 32], strides = [1, 1]} : vector<2x256xf32> to vector<2x32xf32>
    %56 = vector.extract_strided_slice %49 {offsets = [0, 160], sizes = [2, 32], strides = [1, 1]} : vector<2x256xf32> to vector<2x32xf32>
    %57 = vector.extract_strided_slice %50 {offsets = [0, 192], sizes = [2, 32], strides = [1, 1]} : vector<2x256xf32> to vector<2x32xf32>
    %58 = vector.extract_strided_slice %49 {offsets = [0, 224], sizes = [2, 32], strides = [1, 1]} : vector<2x256xf32> to vector<2x32xf32>
    %59 = arith.mulf %52, %28 : vector<2x32xf32>
    %60 = arith.mulf %51, %53 : vector<2x32xf32>
    %61 = arith.addf %59, %60 : vector<2x32xf32>
    %62 = arith.mulf %56, %31 : vector<2x32xf32>
    %63 = arith.mulf %55, %57 : vector<2x32xf32>
    %64 = arith.addf %62, %63 : vector<2x32xf32>
    %65 = math.tanh %61 : vector<2x32xf32>
    %66 = arith.mulf %54, %65 : vector<2x32xf32>
    %67 = math.tanh %64 : vector<2x32xf32>
    %68 = arith.mulf %58, %67 : vector<2x32xf32>
    %69 = tpu.concatenate %66, %68 in 1 : vector<2x32xf32>, vector<2x32xf32> -> vector<2x64xf32>
    %c2 = arith.constant 2 : index
    %c0_14 = arith.constant 0 : index
    %70 = vector.load %arg10[%c2, %c0_14] : memref<16x64xf32, #tpu.memory_space<vmem>>, vector<2x32xf32>
    tpu.vector_store %arg10[%c2, %c0_14], %66 {strides = array<i32>} : memref<16x64xf32, #tpu.memory_space<vmem>>, vector<2x32xf32>,
    %c12 = arith.constant 12 : index
    %c32_15 = arith.constant 32 : index
    %71 = vector.load %arg10[%c12, %c32_15] : memref<16x64xf32, #tpu.memory_space<vmem>>, vector<2x32xf32>
    tpu.vector_store %arg10[%c12, %c32_15], %68 {strides = array<i32>} : memref<16x64xf32, #tpu.memory_space<vmem>>, vector<2x32xf32>,
    %72 = vector.extract_strided_slice %6 {offsets = [4, 0], sizes = [2, 128], strides = [1, 1]} : vector<16x256xf32> to vector<2x128xf32>
    %73 = vector.extract_strided_slice %6 {offsets = [10, 128], sizes = [2, 128], strides = [1, 1]} : vector<16x256xf32> to vector<2x128xf32>
    %74 = tpu.concatenate %72, %73 in 1 : vector<2x128xf32>, vector<2x128xf32> -> vector<2x256xf32>
    %75 = arith.truncf %69 : vector<2x64xf32> to vector<2x64xbf16>
    %cst_16 = arith.constant dense<0.000000e+00> : vector<2x256xf32>
    %76 = tpu.matmul %75, %1, %cst_16 {dimension_numbers = #tpu.dot_dimension_numbers<[1], [0], [0], [1], [0, 0, 1, 1], [], []>} : vector<2x64xbf16>, vector<64x256xbf16>, vector<2x256xf32> -> vector<2x256xf32>
    %77 = arith.addf %74, %76 : vector<2x256xf32>
    %78 = arith.negf %77 : vector<2x256xf32>
    %79 = math.exp %78 : vector<2x256xf32>
    %cst_17 = arith.constant 1.000000e+00 : f32
    %80 = vector.broadcast %cst_17 : f32 to vector<2x256xf32>
    %81 = arith.addf %80, %79 : vector<2x256xf32>
    %82 = arith.divf %80, %81 : vector<2x256xf32>
    %83 = math.tanh %77 : vector<2x256xf32>
    %84 = vector.extract_strided_slice %82 {offsets = [0, 0], sizes = [2, 32], strides = [1, 1]} : vector<2x256xf32> to vector<2x32xf32>
    %85 = vector.extract_strided_slice %82 {offsets = [0, 32], sizes = [2, 32], strides = [1, 1]} : vector<2x256xf32> to vector<2x32xf32>
    %86 = vector.extract_strided_slice %83 {offsets = [0, 64], sizes = [2, 32], strides = [1, 1]} : vector<2x256xf32> to vector<2x32xf32>
    %87 = vector.extract_strided_slice %82 {offsets = [0, 96], sizes = [2, 32], strides = [1, 1]} : vector<2x256xf32> to vector<2x32xf32>
    %88 = vector.extract_strided_slice %82 {offsets = [0, 128], sizes = [2, 32], strides = [1, 1]} : vector<2x256xf32> to vector<2x32xf32>
    %89 = vector.extract_strided_slice %82 {offsets = [0, 160], sizes = [2, 32], strides = [1, 1]} : vector<2x256xf32> to vector<2x32xf32>
    %90 = vector.extract_strided_slice %83 {offsets = [0, 192], sizes = [2, 32], strides = [1, 1]} : vector<2x256xf32> to vector<2x32xf32>
    %91 = vector.extract_strided_slice %82 {offsets = [0, 224], sizes = [2, 32], strides = [1, 1]} : vector<2x256xf32> to vector<2x32xf32>
    %92 = arith.mulf %85, %61 : vector<2x32xf32>
    %93 = arith.mulf %84, %86 : vector<2x32xf32>
    %94 = arith.addf %92, %93 : vector<2x32xf32>
    %95 = arith.mulf %89, %64 : vector<2x32xf32>
    %96 = arith.mulf %88, %90 : vector<2x32xf32>
    %97 = arith.addf %95, %96 : vector<2x32xf32>
    %98 = math.tanh %94 : vector<2x32xf32>
    %99 = arith.mulf %87, %98 : vector<2x32xf32>
    %100 = math.tanh %97 : vector<2x32xf32>
    %101 = arith.mulf %91, %100 : vector<2x32xf32>
    %102 = tpu.concatenate %99, %101 in 1 : vector<2x32xf32>, vector<2x32xf32> -> vector<2x64xf32>
    %c4 = arith.constant 4 : index
    %c0_18 = arith.constant 0 : index
    %103 = vector.load %arg10[%c4, %c0_18] : memref<16x64xf32, #tpu.memory_space<vmem>>, vector<2x32xf32>
    tpu.vector_store %arg10[%c4, %c0_18], %99 {strides = array<i32>} : memref<16x64xf32, #tpu.memory_space<vmem>>, vector<2x32xf32>,
    %c10 = arith.constant 10 : index
    %c32_19 = arith.constant 32 : index
    %104 = vector.load %arg10[%c10, %c32_19] : memref<16x64xf32, #tpu.memory_space<vmem>>, vector<2x32xf32>
    tpu.vector_store %arg10[%c10, %c32_19], %101 {strides = array<i32>} : memref<16x64xf32, #tpu.memory_space<vmem>>, vector<2x32xf32>,
    %105 = vector.extract_strided_slice %6 {offsets = [6, 0], sizes = [2, 128], strides = [1, 1]} : vector<16x256xf32> to vector<2x128xf32>
    %106 = vector.extract_strided_slice %6 {offsets = [8, 128], sizes = [2, 128], strides = [1, 1]} : vector<16x256xf32> to vector<2x128xf32>
    %107 = tpu.concatenate %105, %106 in 1 : vector<2x128xf32>, vector<2x128xf32> -> vector<2x256xf32>
    %108 = arith.truncf %102 : vector<2x64xf32> to vector<2x64xbf16>
    %cst_20 = arith.constant dense<0.000000e+00> : vector<2x256xf32>
    %109 = tpu.matmul %108, %1, %cst_20 {dimension_numbers = #tpu.dot_dimension_numbers<[1], [0], [0], [1], [0, 0, 1, 1], [], []>} : vector<2x64xbf16>, vector<64x256xbf16>, vector<2x256xf32> -> vector<2x256xf32>
    %110 = arith.addf %107, %109 : vector<2x256xf32>
    %111 = arith.negf %110 : vector<2x256xf32>
    %112 = math.exp %111 : vector<2x256xf32>
    %cst_21 = arith.constant 1.000000e+00 : f32
    %113 = vector.broadcast %cst_21 : f32 to vector<2x256xf32>
    %114 = arith.addf %113, %112 : vector<2x256xf32>
    %115 = arith.divf %113, %114 : vector<2x256xf32>
    %116 = math.tanh %110 : vector<2x256xf32>
    %117 = vector.extract_strided_slice %115 {offsets = [0, 0], sizes = [2, 32], strides = [1, 1]} : vector<2x256xf32> to vector<2x32xf32>
    %118 = vector.extract_strided_slice %115 {offsets = [0, 32], sizes = [2, 32], strides = [1, 1]} : vector<2x256xf32> to vector<2x32xf32>
    %119 = vector.extract_strided_slice %116 {offsets = [0, 64], sizes = [2, 32], strides = [1, 1]} : vector<2x256xf32> to vector<2x32xf32>
    %120 = vector.extract_strided_slice %115 {offsets = [0, 96], sizes = [2, 32], strides = [1, 1]} : vector<2x256xf32> to vector<2x32xf32>
    %121 = vector.extract_strided_slice %115 {offsets = [0, 128], sizes = [2, 32], strides = [1, 1]} : vector<2x256xf32> to vector<2x32xf32>
    %122 = vector.extract_strided_slice %115 {offsets = [0, 160], sizes = [2, 32], strides = [1, 1]} : vector<2x256xf32> to vector<2x32xf32>
    %123 = vector.extract_strided_slice %116 {offsets = [0, 192], sizes = [2, 32], strides = [1, 1]} : vector<2x256xf32> to vector<2x32xf32>
    %124 = vector.extract_strided_slice %115 {offsets = [0, 224], sizes = [2, 32], strides = [1, 1]} : vector<2x256xf32> to vector<2x32xf32>
    %125 = arith.mulf %118, %94 : vector<2x32xf32>
    %126 = arith.mulf %117, %119 : vector<2x32xf32>
    %127 = arith.addf %125, %126 : vector<2x32xf32>
    %128 = arith.mulf %122, %97 : vector<2x32xf32>
    %129 = arith.mulf %121, %123 : vector<2x32xf32>
    %130 = arith.addf %128, %129 : vector<2x32xf32>
    %131 = math.tanh %127 : vector<2x32xf32>
    %132 = arith.mulf %120, %131 : vector<2x32xf32>
    %133 = math.tanh %130 : vector<2x32xf32>
    %134 = arith.mulf %124, %133 : vector<2x32xf32>
    %135 = tpu.concatenate %132, %134 in 1 : vector<2x32xf32>, vector<2x32xf32> -> vector<2x64xf32>
    %c6 = arith.constant 6 : index
    %c0_22 = arith.constant 0 : index
    %136 = vector.load %arg10[%c6, %c0_22] : memref<16x64xf32, #tpu.memory_space<vmem>>, vector<2x32xf32>
    tpu.vector_store %arg10[%c6, %c0_22], %132 {strides = array<i32>} : memref<16x64xf32, #tpu.memory_space<vmem>>, vector<2x32xf32>,
    %c8 = arith.constant 8 : index
    %c32_23 = arith.constant 32 : index
    %137 = vector.load %arg10[%c8, %c32_23] : memref<16x64xf32, #tpu.memory_space<vmem>>, vector<2x32xf32>
    tpu.vector_store %arg10[%c8, %c32_23], %134 {strides = array<i32>} : memref<16x64xf32, #tpu.memory_space<vmem>>, vector<2x32xf32>,
    %138 = vector.extract_strided_slice %6 {offsets = [8, 0], sizes = [2, 128], strides = [1, 1]} : vector<16x256xf32> to vector<2x128xf32>
    %139 = vector.extract_strided_slice %6 {offsets = [6, 128], sizes = [2, 128], strides = [1, 1]} : vector<16x256xf32> to vector<2x128xf32>
    %140 = tpu.concatenate %138, %139 in 1 : vector<2x128xf32>, vector<2x128xf32> -> vector<2x256xf32>
    %141 = arith.truncf %135 : vector<2x64xf32> to vector<2x64xbf16>
    %cst_24 = arith.constant dense<0.000000e+00> : vector<2x256xf32>
    %142 = tpu.matmul %141, %1, %cst_24 {dimension_numbers = #tpu.dot_dimension_numbers<[1], [0], [0], [1], [0, 0, 1, 1], [], []>} : vector<2x64xbf16>, vector<64x256xbf16>, vector<2x256xf32> -> vector<2x256xf32>
    %143 = arith.addf %140, %142 : vector<2x256xf32>
    %144 = arith.negf %143 : vector<2x256xf32>
    %145 = math.exp %144 : vector<2x256xf32>
    %cst_25 = arith.constant 1.000000e+00 : f32
    %146 = vector.broadcast %cst_25 : f32 to vector<2x256xf32>
    %147 = arith.addf %146, %145 : vector<2x256xf32>
    %148 = arith.divf %146, %147 : vector<2x256xf32>
    %149 = math.tanh %143 : vector<2x256xf32>
    %150 = vector.extract_strided_slice %148 {offsets = [0, 0], sizes = [2, 32], strides = [1, 1]} : vector<2x256xf32> to vector<2x32xf32>
    %151 = vector.extract_strided_slice %148 {offsets = [0, 32], sizes = [2, 32], strides = [1, 1]} : vector<2x256xf32> to vector<2x32xf32>
    %152 = vector.extract_strided_slice %149 {offsets = [0, 64], sizes = [2, 32], strides = [1, 1]} : vector<2x256xf32> to vector<2x32xf32>
    %153 = vector.extract_strided_slice %148 {offsets = [0, 96], sizes = [2, 32], strides = [1, 1]} : vector<2x256xf32> to vector<2x32xf32>
    %154 = vector.extract_strided_slice %148 {offsets = [0, 128], sizes = [2, 32], strides = [1, 1]} : vector<2x256xf32> to vector<2x32xf32>
    %155 = vector.extract_strided_slice %148 {offsets = [0, 160], sizes = [2, 32], strides = [1, 1]} : vector<2x256xf32> to vector<2x32xf32>
    %156 = vector.extract_strided_slice %149 {offsets = [0, 192], sizes = [2, 32], strides = [1, 1]} : vector<2x256xf32> to vector<2x32xf32>
    %157 = vector.extract_strided_slice %148 {offsets = [0, 224], sizes = [2, 32], strides = [1, 1]} : vector<2x256xf32> to vector<2x32xf32>
    %158 = arith.mulf %151, %127 : vector<2x32xf32>
    %159 = arith.mulf %150, %152 : vector<2x32xf32>
    %160 = arith.addf %158, %159 : vector<2x32xf32>
    %161 = arith.mulf %155, %130 : vector<2x32xf32>
    %162 = arith.mulf %154, %156 : vector<2x32xf32>
    %163 = arith.addf %161, %162 : vector<2x32xf32>
    %164 = math.tanh %160 : vector<2x32xf32>
    %165 = arith.mulf %153, %164 : vector<2x32xf32>
    %166 = math.tanh %163 : vector<2x32xf32>
    %167 = arith.mulf %157, %166 : vector<2x32xf32>
    %168 = tpu.concatenate %165, %167 in 1 : vector<2x32xf32>, vector<2x32xf32> -> vector<2x64xf32>
    %c8_26 = arith.constant 8 : index
    %c0_27 = arith.constant 0 : index
    %169 = vector.load %arg10[%c8_26, %c0_27] : memref<16x64xf32, #tpu.memory_space<vmem>>, vector<2x32xf32>
    tpu.vector_store %arg10[%c8_26, %c0_27], %165 {strides = array<i32>} : memref<16x64xf32, #tpu.memory_space<vmem>>, vector<2x32xf32>,
    %c6_28 = arith.constant 6 : index
    %c32_29 = arith.constant 32 : index
    %170 = vector.load %arg10[%c6_28, %c32_29] : memref<16x64xf32, #tpu.memory_space<vmem>>, vector<2x32xf32>
    tpu.vector_store %arg10[%c6_28, %c32_29], %167 {strides = array<i32>} : memref<16x64xf32, #tpu.memory_space<vmem>>, vector<2x32xf32>,
    %171 = vector.extract_strided_slice %6 {offsets = [10, 0], sizes = [2, 128], strides = [1, 1]} : vector<16x256xf32> to vector<2x128xf32>
    %172 = vector.extract_strided_slice %6 {offsets = [4, 128], sizes = [2, 128], strides = [1, 1]} : vector<16x256xf32> to vector<2x128xf32>
    %173 = tpu.concatenate %171, %172 in 1 : vector<2x128xf32>, vector<2x128xf32> -> vector<2x256xf32>
    %174 = arith.truncf %168 : vector<2x64xf32> to vector<2x64xbf16>
    %cst_30 = arith.constant dense<0.000000e+00> : vector<2x256xf32>
    %175 = tpu.matmul %174, %1, %cst_30 {dimension_numbers = #tpu.dot_dimension_numbers<[1], [0], [0], [1], [0, 0, 1, 1], [], []>} : vector<2x64xbf16>, vector<64x256xbf16>, vector<2x256xf32> -> vector<2x256xf32>
    %176 = arith.addf %173, %175 : vector<2x256xf32>
    %177 = arith.negf %176 : vector<2x256xf32>
    %178 = math.exp %177 : vector<2x256xf32>
    %cst_31 = arith.constant 1.000000e+00 : f32
    %179 = vector.broadcast %cst_31 : f32 to vector<2x256xf32>
    %180 = arith.addf %179, %178 : vector<2x256xf32>
    %181 = arith.divf %179, %180 : vector<2x256xf32>
    %182 = math.tanh %176 : vector<2x256xf32>
    %183 = vector.extract_strided_slice %181 {offsets = [0, 0], sizes = [2, 32], strides = [1, 1]} : vector<2x256xf32> to vector<2x32xf32>
    %184 = vector.extract_strided_slice %181 {offsets = [0, 32], sizes = [2, 32], strides = [1, 1]} : vector<2x256xf32> to vector<2x32xf32>
    %185 = vector.extract_strided_slice %182 {offsets = [0, 64], sizes = [2, 32], strides = [1, 1]} : vector<2x256xf32> to vector<2x32xf32>
    %186 = vector.extract_strided_slice %181 {offsets = [0, 96], sizes = [2, 32], strides = [1, 1]} : vector<2x256xf32> to vector<2x32xf32>
    %187 = vector.extract_strided_slice %181 {offsets = [0, 128], sizes = [2, 32], strides = [1, 1]} : vector<2x256xf32> to vector<2x32xf32>
    %188 = vector.extract_strided_slice %181 {offsets = [0, 160], sizes = [2, 32], strides = [1, 1]} : vector<2x256xf32> to vector<2x32xf32>
    %189 = vector.extract_strided_slice %182 {offsets = [0, 192], sizes = [2, 32], strides = [1, 1]} : vector<2x256xf32> to vector<2x32xf32>
    %190 = vector.extract_strided_slice %181 {offsets = [0, 224], sizes = [2, 32], strides = [1, 1]} : vector<2x256xf32> to vector<2x32xf32>
    %191 = arith.mulf %184, %160 : vector<2x32xf32>
    %192 = arith.mulf %183, %185 : vector<2x32xf32>
    %193 = arith.addf %191, %192 : vector<2x32xf32>
    %194 = arith.mulf %188, %163 : vector<2x32xf32>
    %195 = arith.mulf %187, %189 : vector<2x32xf32>
    %196 = arith.addf %194, %195 : vector<2x32xf32>
    %197 = math.tanh %193 : vector<2x32xf32>
    %198 = arith.mulf %186, %197 : vector<2x32xf32>
    %199 = math.tanh %196 : vector<2x32xf32>
    %200 = arith.mulf %190, %199 : vector<2x32xf32>
    %201 = tpu.concatenate %198, %200 in 1 : vector<2x32xf32>, vector<2x32xf32> -> vector<2x64xf32>
    %c10_32 = arith.constant 10 : index
    %c0_33 = arith.constant 0 : index
    %202 = vector.load %arg10[%c10_32, %c0_33] : memref<16x64xf32, #tpu.memory_space<vmem>>, vector<2x32xf32>
    tpu.vector_store %arg10[%c10_32, %c0_33], %198 {strides = array<i32>} : memref<16x64xf32, #tpu.memory_space<vmem>>, vector<2x32xf32>,
    %c4_34 = arith.constant 4 : index
    %c32_35 = arith.constant 32 : index
    %203 = vector.load %arg10[%c4_34, %c32_35] : memref<16x64xf32, #tpu.memory_space<vmem>>, vector<2x32xf32>
    tpu.vector_store %arg10[%c4_34, %c32_35], %200 {strides = array<i32>} : memref<16x64xf32, #tpu.memory_space<vmem>>, vector<2x32xf32>,
    %204 = vector.extract_strided_slice %6 {offsets = [12, 0], sizes = [2, 128], strides = [1, 1]} : vector<16x256xf32> to vector<2x128xf32>
    %205 = vector.extract_strided_slice %6 {offsets = [2, 128], sizes = [2, 128], strides = [1, 1]} : vector<16x256xf32> to vector<2x128xf32>
    %206 = tpu.concatenate %204, %205 in 1 : vector<2x128xf32>, vector<2x128xf32> -> vector<2x256xf32>
    %207 = arith.truncf %201 : vector<2x64xf32> to vector<2x64xbf16>
    %cst_36 = arith.constant dense<0.000000e+00> : vector<2x256xf32>
    %208 = tpu.matmul %207, %1, %cst_36 {dimension_numbers = #tpu.dot_dimension_numbers<[1], [0], [0], [1], [0, 0, 1, 1], [], []>} : vector<2x64xbf16>, vector<64x256xbf16>, vector<2x256xf32> -> vector<2x256xf32>
    %209 = arith.addf %206, %208 : vector<2x256xf32>
    %210 = arith.negf %209 : vector<2x256xf32>
    %211 = math.exp %210 : vector<2x256xf32>
    %cst_37 = arith.constant 1.000000e+00 : f32
    %212 = vector.broadcast %cst_37 : f32 to vector<2x256xf32>
    %213 = arith.addf %212, %211 : vector<2x256xf32>
    %214 = arith.divf %212, %213 : vector<2x256xf32>
    %215 = math.tanh %209 : vector<2x256xf32>
    %216 = vector.extract_strided_slice %214 {offsets = [0, 0], sizes = [2, 32], strides = [1, 1]} : vector<2x256xf32> to vector<2x32xf32>
    %217 = vector.extract_strided_slice %214 {offsets = [0, 32], sizes = [2, 32], strides = [1, 1]} : vector<2x256xf32> to vector<2x32xf32>
    %218 = vector.extract_strided_slice %215 {offsets = [0, 64], sizes = [2, 32], strides = [1, 1]} : vector<2x256xf32> to vector<2x32xf32>
    %219 = vector.extract_strided_slice %214 {offsets = [0, 96], sizes = [2, 32], strides = [1, 1]} : vector<2x256xf32> to vector<2x32xf32>
    %220 = vector.extract_strided_slice %214 {offsets = [0, 128], sizes = [2, 32], strides = [1, 1]} : vector<2x256xf32> to vector<2x32xf32>
    %221 = vector.extract_strided_slice %214 {offsets = [0, 160], sizes = [2, 32], strides = [1, 1]} : vector<2x256xf32> to vector<2x32xf32>
    %222 = vector.extract_strided_slice %215 {offsets = [0, 192], sizes = [2, 32], strides = [1, 1]} : vector<2x256xf32> to vector<2x32xf32>
    %223 = vector.extract_strided_slice %214 {offsets = [0, 224], sizes = [2, 32], strides = [1, 1]} : vector<2x256xf32> to vector<2x32xf32>
    %224 = arith.mulf %217, %193 : vector<2x32xf32>
    %225 = arith.mulf %216, %218 : vector<2x32xf32>
    %226 = arith.addf %224, %225 : vector<2x32xf32>
    %227 = arith.mulf %221, %196 : vector<2x32xf32>
    %228 = arith.mulf %220, %222 : vector<2x32xf32>
    %229 = arith.addf %227, %228 : vector<2x32xf32>
    %230 = math.tanh %226 : vector<2x32xf32>
    %231 = arith.mulf %219, %230 : vector<2x32xf32>
    %232 = math.tanh %229 : vector<2x32xf32>
    %233 = arith.mulf %223, %232 : vector<2x32xf32>
    %234 = tpu.concatenate %231, %233 in 1 : vector<2x32xf32>, vector<2x32xf32> -> vector<2x64xf32>
    %c12_38 = arith.constant 12 : index
    %c0_39 = arith.constant 0 : index
    %235 = vector.load %arg10[%c12_38, %c0_39] : memref<16x64xf32, #tpu.memory_space<vmem>>, vector<2x32xf32>
    tpu.vector_store %arg10[%c12_38, %c0_39], %231 {strides = array<i32>} : memref<16x64xf32, #tpu.memory_space<vmem>>, vector<2x32xf32>,
    %c2_40 = arith.constant 2 : index
    %c32_41 = arith.constant 32 : index
    %236 = vector.load %arg10[%c2_40, %c32_41] : memref<16x64xf32, #tpu.memory_space<vmem>>, vector<2x32xf32>
    tpu.vector_store %arg10[%c2_40, %c32_41], %233 {strides = array<i32>} : memref<16x64xf32, #tpu.memory_space<vmem>>, vector<2x32xf32>,
    %237 = vector.extract_strided_slice %6 {offsets = [14, 0], sizes = [2, 128], strides = [1, 1]} : vector<16x256xf32> to vector<2x128xf32>
    %238 = vector.extract_strided_slice %6 {offsets = [0, 128], sizes = [2, 128], strides = [1, 1]} : vector<16x256xf32> to vector<2x128xf32>
    %239 = tpu.concatenate %237, %238 in 1 : vector<2x128xf32>, vector<2x128xf32> -> vector<2x256xf32>
    %240 = arith.truncf %234 : vector<2x64xf32> to vector<2x64xbf16>
    %cst_42 = arith.constant dense<0.000000e+00> : vector<2x256xf32>
    %241 = tpu.matmul %240, %1, %cst_42 {dimension_numbers = #tpu.dot_dimension_numbers<[1], [0], [0], [1], [0, 0, 1, 1], [], []>} : vector<2x64xbf16>, vector<64x256xbf16>, vector<2x256xf32> -> vector<2x256xf32>
    %242 = arith.addf %239, %241 : vector<2x256xf32>
    %243 = arith.negf %242 : vector<2x256xf32>
    %244 = math.exp %243 : vector<2x256xf32>
    %cst_43 = arith.constant 1.000000e+00 : f32
    %245 = vector.broadcast %cst_43 : f32 to vector<2x256xf32>
    %246 = arith.addf %245, %244 : vector<2x256xf32>
    %247 = arith.divf %245, %246 : vector<2x256xf32>
    %248 = math.tanh %242 : vector<2x256xf32>
    %249 = vector.extract_strided_slice %247 {offsets = [0, 0], sizes = [2, 32], strides = [1, 1]} : vector<2x256xf32> to vector<2x32xf32>
    %250 = vector.extract_strided_slice %247 {offsets = [0, 32], sizes = [2, 32], strides = [1, 1]} : vector<2x256xf32> to vector<2x32xf32>
    %251 = vector.extract_strided_slice %248 {offsets = [0, 64], sizes = [2, 32], strides = [1, 1]} : vector<2x256xf32> to vector<2x32xf32>
    %252 = vector.extract_strided_slice %247 {offsets = [0, 96], sizes = [2, 32], strides = [1, 1]} : vector<2x256xf32> to vector<2x32xf32>
    %253 = vector.extract_strided_slice %247 {offsets = [0, 128], sizes = [2, 32], strides = [1, 1]} : vector<2x256xf32> to vector<2x32xf32>
    %254 = vector.extract_strided_slice %247 {offsets = [0, 160], sizes = [2, 32], strides = [1, 1]} : vector<2x256xf32> to vector<2x32xf32>
    %255 = vector.extract_strided_slice %248 {offsets = [0, 192], sizes = [2, 32], strides = [1, 1]} : vector<2x256xf32> to vector<2x32xf32>
    %256 = vector.extract_strided_slice %247 {offsets = [0, 224], sizes = [2, 32], strides = [1, 1]} : vector<2x256xf32> to vector<2x32xf32>
    %257 = arith.mulf %250, %226 : vector<2x32xf32>
    %258 = arith.mulf %249, %251 : vector<2x32xf32>
    %259 = arith.addf %257, %258 : vector<2x32xf32>
    %260 = arith.mulf %254, %229 : vector<2x32xf32>
    %261 = arith.mulf %253, %255 : vector<2x32xf32>
    %262 = arith.addf %260, %261 : vector<2x32xf32>
    %263 = math.tanh %259 : vector<2x32xf32>
    %264 = arith.mulf %252, %263 : vector<2x32xf32>
    %265 = math.tanh %262 : vector<2x32xf32>
    %266 = arith.mulf %256, %265 : vector<2x32xf32>
    %c14_44 = arith.constant 14 : index
    %c0_45 = arith.constant 0 : index
    %267 = vector.load %arg10[%c14_44, %c0_45] : memref<16x64xf32, #tpu.memory_space<vmem>>, vector<2x32xf32>
    tpu.vector_store %arg10[%c14_44, %c0_45], %264 {strides = array<i32>} : memref<16x64xf32, #tpu.memory_space<vmem>>, vector<2x32xf32>,
    %c0_46 = arith.constant 0 : index
    %c32_47 = arith.constant 32 : index
    %268 = vector.load %arg10[%c0_46, %c32_47] : memref<16x64xf32, #tpu.memory_space<vmem>>, vector<2x32xf32>
    tpu.vector_store %arg10[%c0_46, %c32_47], %266 {strides = array<i32>} : memref<16x64xf32, #tpu.memory_space<vmem>>, vector<2x32xf32>,
    %c0_48 = arith.constant 0 : index
    %c0_49 = arith.constant 0 : index
    %269 = vector.load %arg4[%c0_48, %c0_49] : memref<64x256xbf16, #tpu.memory_space<vmem>>, vector<64x256xbf16>
    %c0_50 = arith.constant 0 : index
    %c0_51 = arith.constant 0 : index
    %270 = vector.load %arg5[%c0_50, %c0_51] : memref<64x256xbf16, #tpu.memory_space<vmem>>, vector<64x256xbf16>
    %c0_52 = arith.constant 0 : index
    %c0_53 = arith.constant 0 : index
    %271 = vector.load %arg6[%c0_52, %c0_53] : memref<1x256xf32, #tpu.memory_space<vmem>>, vector<1x256xf32>
    %c0_54 = arith.constant 0 : index
    %c0_55 = arith.constant 0 : index
    %272 = vector.load %arg10[%c0_54, %c0_55] : memref<16x64xf32, #tpu.memory_space<vmem>>, vector<16x64xf32>
    %273 = arith.truncf %272 : vector<16x64xf32> to vector<16x64xbf16>
    %cst_56 = arith.constant dense<0.000000e+00> : vector<16x256xf32>
    %274 = tpu.matmul %273, %269, %cst_56 {dimension_numbers = #tpu.dot_dimension_numbers<[1], [0], [0], [1], [0, 0, 1, 1], [], []>} : vector<16x64xbf16>, vector<64x256xbf16>, vector<16x256xf32> -> vector<16x256xf32>
    %275 = vector.broadcast %271 : vector<1x256xf32> to vector<16x256xf32>
    %276 = arith.addf %274, %275 : vector<16x256xf32>
    %cst_57 = arith.constant 0.000000e+00 : f32
    %277 = vector.broadcast %cst_57 : f32 to vector<2x32xf32>
    %cst_58 = arith.constant 0.000000e+00 : f32
    %278 = vector.broadcast %cst_58 : f32 to vector<2x32xf32>
    %279 = vector.extract_strided_slice %276 {offsets = [0, 0], sizes = [2, 128], strides = [1, 1]} : vector<16x256xf32> to vector<2x128xf32>
    %280 = vector.extract_strided_slice %276 {offsets = [14, 128], sizes = [2, 128], strides = [1, 1]} : vector<16x256xf32> to vector<2x128xf32>
    %281 = tpu.concatenate %279, %280 in 1 : vector<2x128xf32>, vector<2x128xf32> -> vector<2x256xf32>
    %282 = arith.negf %281 : vector<2x256xf32>
    %283 = math.exp %282 : vector<2x256xf32>
    %cst_59 = arith.constant 1.000000e+00 : f32
    %284 = vector.broadcast %cst_59 : f32 to vector<2x256xf32>
    %285 = arith.addf %284, %283 : vector<2x256xf32>
    %286 = arith.divf %284, %285 : vector<2x256xf32>
    %287 = math.tanh %281 : vector<2x256xf32>
    %288 = vector.extract_strided_slice %286 {offsets = [0, 0], sizes = [2, 32], strides = [1, 1]} : vector<2x256xf32> to vector<2x32xf32>
    %289 = vector.extract_strided_slice %286 {offsets = [0, 32], sizes = [2, 32], strides = [1, 1]} : vector<2x256xf32> to vector<2x32xf32>
    %290 = vector.extract_strided_slice %287 {offsets = [0, 64], sizes = [2, 32], strides = [1, 1]} : vector<2x256xf32> to vector<2x32xf32>
    %291 = vector.extract_strided_slice %286 {offsets = [0, 96], sizes = [2, 32], strides = [1, 1]} : vector<2x256xf32> to vector<2x32xf32>
    %292 = vector.extract_strided_slice %286 {offsets = [0, 128], sizes = [2, 32], strides = [1, 1]} : vector<2x256xf32> to vector<2x32xf32>
    %293 = vector.extract_strided_slice %286 {offsets = [0, 160], sizes = [2, 32], strides = [1, 1]} : vector<2x256xf32> to vector<2x32xf32>
    %294 = vector.extract_strided_slice %287 {offsets = [0, 192], sizes = [2, 32], strides = [1, 1]} : vector<2x256xf32> to vector<2x32xf32>
    %295 = vector.extract_strided_slice %286 {offsets = [0, 224], sizes = [2, 32], strides = [1, 1]} : vector<2x256xf32> to vector<2x32xf32>
    %296 = arith.mulf %289, %277 : vector<2x32xf32>
    %297 = arith.mulf %288, %290 : vector<2x32xf32>
    %298 = arith.addf %296, %297 : vector<2x32xf32>
    %299 = arith.mulf %293, %278 : vector<2x32xf32>
    %300 = arith.mulf %292, %294 : vector<2x32xf32>
    %301 = arith.addf %299, %300 : vector<2x32xf32>
    %302 = math.tanh %298 : vector<2x32xf32>
    %303 = arith.mulf %291, %302 : vector<2x32xf32>
    %304 = math.tanh %301 : vector<2x32xf32>
    %305 = arith.mulf %295, %304 : vector<2x32xf32>
    %306 = tpu.concatenate %303, %305 in 1 : vector<2x32xf32>, vector<2x32xf32> -> vector<2x64xf32>
    %c0_60 = arith.constant 0 : index
    %c0_61 = arith.constant 0 : index
    %307 = vector.load %arg10[%c0_60, %c0_61] : memref<16x64xf32, #tpu.memory_space<vmem>>, vector<2x32xf32>
    tpu.vector_store %arg10[%c0_60, %c0_61], %303 {strides = array<i32>} : memref<16x64xf32, #tpu.memory_space<vmem>>, vector<2x32xf32>,
    %c14_62 = arith.constant 14 : index
    %c32_63 = arith.constant 32 : index
    %308 = vector.load %arg10[%c14_62, %c32_63] : memref<16x64xf32, #tpu.memory_space<vmem>>, vector<2x32xf32>
    tpu.vector_store %arg10[%c14_62, %c32_63], %305 {strides = array<i32>} : memref<16x64xf32, #tpu.memory_space<vmem>>, vector<2x32xf32>,
    %309 = vector.extract_strided_slice %276 {offsets = [2, 0], sizes = [2, 128], strides = [1, 1]} : vector<16x256xf32> to vector<2x128xf32>
    %310 = vector.extract_strided_slice %276 {offsets = [12, 128], sizes = [2, 128], strides = [1, 1]} : vector<16x256xf32> to vector<2x128xf32>
    %311 = tpu.concatenate %309, %310 in 1 : vector<2x128xf32>, vector<2x128xf32> -> vector<2x256xf32>
    %312 = arith.truncf %306 : vector<2x64xf32> to vector<2x64xbf16>
    %cst_64 = arith.constant dense<0.000000e+00> : vector<2x256xf32>
    %313 = tpu.matmul %312, %270, %cst_64 {dimension_numbers = #tpu.dot_dimension_numbers<[1], [0], [0], [1], [0, 0, 1, 1], [], []>} : vector<2x64xbf16>, vector<64x256xbf16>, vector<2x256xf32> -> vector<2x256xf32>
    %314 = arith.addf %311, %313 : vector<2x256xf32>
    %315 = arith.negf %314 : vector<2x256xf32>
    %316 = math.exp %315 : vector<2x256xf32>
    %cst_65 = arith.constant 1.000000e+00 : f32
    %317 = vector.broadcast %cst_65 : f32 to vector<2x256xf32>
    %318 = arith.addf %317, %316 : vector<2x256xf32>
    %319 = arith.divf %317, %318 : vector<2x256xf32>
    %320 = math.tanh %314 : vector<2x256xf32>
    %321 = vector.extract_strided_slice %319 {offsets = [0, 0], sizes = [2, 32], strides = [1, 1]} : vector<2x256xf32> to vector<2x32xf32>
    %322 = vector.extract_strided_slice %319 {offsets = [0, 32], sizes = [2, 32], strides = [1, 1]} : vector<2x256xf32> to vector<2x32xf32>
    %323 = vector.extract_strided_slice %320 {offsets = [0, 64], sizes = [2, 32], strides = [1, 1]} : vector<2x256xf32> to vector<2x32xf32>
    %324 = vector.extract_strided_slice %319 {offsets = [0, 96], sizes = [2, 32], strides = [1, 1]} : vector<2x256xf32> to vector<2x32xf32>
    %325 = vector.extract_strided_slice %319 {offsets = [0, 128], sizes = [2, 32], strides = [1, 1]} : vector<2x256xf32> to vector<2x32xf32>
    %326 = vector.extract_strided_slice %319 {offsets = [0, 160], sizes = [2, 32], strides = [1, 1]} : vector<2x256xf32> to vector<2x32xf32>
    %327 = vector.extract_strided_slice %320 {offsets = [0, 192], sizes = [2, 32], strides = [1, 1]} : vector<2x256xf32> to vector<2x32xf32>
    %328 = vector.extract_strided_slice %319 {offsets = [0, 224], sizes = [2, 32], strides = [1, 1]} : vector<2x256xf32> to vector<2x32xf32>
    %329 = arith.mulf %322, %298 : vector<2x32xf32>
    %330 = arith.mulf %321, %323 : vector<2x32xf32>
    %331 = arith.addf %329, %330 : vector<2x32xf32>
    %332 = arith.mulf %326, %301 : vector<2x32xf32>
    %333 = arith.mulf %325, %327 : vector<2x32xf32>
    %334 = arith.addf %332, %333 : vector<2x32xf32>
    %335 = math.tanh %331 : vector<2x32xf32>
    %336 = arith.mulf %324, %335 : vector<2x32xf32>
    %337 = math.tanh %334 : vector<2x32xf32>
    %338 = arith.mulf %328, %337 : vector<2x32xf32>
    %339 = tpu.concatenate %336, %338 in 1 : vector<2x32xf32>, vector<2x32xf32> -> vector<2x64xf32>
    %c2_66 = arith.constant 2 : index
    %c0_67 = arith.constant 0 : index
    %340 = vector.load %arg10[%c2_66, %c0_67] : memref<16x64xf32, #tpu.memory_space<vmem>>, vector<2x32xf32>
    tpu.vector_store %arg10[%c2_66, %c0_67], %336 {strides = array<i32>} : memref<16x64xf32, #tpu.memory_space<vmem>>, vector<2x32xf32>,
    %c12_68 = arith.constant 12 : index
    %c32_69 = arith.constant 32 : index
    %341 = vector.load %arg10[%c12_68, %c32_69] : memref<16x64xf32, #tpu.memory_space<vmem>>, vector<2x32xf32>
    tpu.vector_store %arg10[%c12_68, %c32_69], %338 {strides = array<i32>} : memref<16x64xf32, #tpu.memory_space<vmem>>, vector<2x32xf32>,
    %342 = vector.extract_strided_slice %276 {offsets = [4, 0], sizes = [2, 128], strides = [1, 1]} : vector<16x256xf32> to vector<2x128xf32>
    %343 = vector.extract_strided_slice %276 {offsets = [10, 128], sizes = [2, 128], strides = [1, 1]} : vector<16x256xf32> to vector<2x128xf32>
    %344 = tpu.concatenate %342, %343 in 1 : vector<2x128xf32>, vector<2x128xf32> -> vector<2x256xf32>
    %345 = arith.truncf %339 : vector<2x64xf32> to vector<2x64xbf16>
    %cst_70 = arith.constant dense<0.000000e+00> : vector<2x256xf32>
    %346 = tpu.matmul %345, %270, %cst_70 {dimension_numbers = #tpu.dot_dimension_numbers<[1], [0], [0], [1], [0, 0, 1, 1], [], []>} : vector<2x64xbf16>, vector<64x256xbf16>, vector<2x256xf32> -> vector<2x256xf32>
    %347 = arith.addf %344, %346 : vector<2x256xf32>
    %348 = arith.negf %347 : vector<2x256xf32>
    %349 = math.exp %348 : vector<2x256xf32>
    %cst_71 = arith.constant 1.000000e+00 : f32
    %350 = vector.broadcast %cst_71 : f32 to vector<2x256xf32>
    %351 = arith.addf %350, %349 : vector<2x256xf32>
    %352 = arith.divf %350, %351 : vector<2x256xf32>
    %353 = math.tanh %347 : vector<2x256xf32>
    %354 = vector.extract_strided_slice %352 {offsets = [0, 0], sizes = [2, 32], strides = [1, 1]} : vector<2x256xf32> to vector<2x32xf32>
    %355 = vector.extract_strided_slice %352 {offsets = [0, 32], sizes = [2, 32], strides = [1, 1]} : vector<2x256xf32> to vector<2x32xf32>
    %356 = vector.extract_strided_slice %353 {offsets = [0, 64], sizes = [2, 32], strides = [1, 1]} : vector<2x256xf32> to vector<2x32xf32>
    %357 = vector.extract_strided_slice %352 {offsets = [0, 96], sizes = [2, 32], strides = [1, 1]} : vector<2x256xf32> to vector<2x32xf32>
    %358 = vector.extract_strided_slice %352 {offsets = [0, 128], sizes = [2, 32], strides = [1, 1]} : vector<2x256xf32> to vector<2x32xf32>
    %359 = vector.extract_strided_slice %352 {offsets = [0, 160], sizes = [2, 32], strides = [1, 1]} : vector<2x256xf32> to vector<2x32xf32>
    %360 = vector.extract_strided_slice %353 {offsets = [0, 192], sizes = [2, 32], strides = [1, 1]} : vector<2x256xf32> to vector<2x32xf32>
    %361 = vector.extract_strided_slice %352 {offsets = [0, 224], sizes = [2, 32], strides = [1, 1]} : vector<2x256xf32> to vector<2x32xf32>
    %362 = arith.mulf %355, %331 : vector<2x32xf32>
    %363 = arith.mulf %354, %356 : vector<2x32xf32>
    %364 = arith.addf %362, %363 : vector<2x32xf32>
    %365 = arith.mulf %359, %334 : vector<2x32xf32>
    %366 = arith.mulf %358, %360 : vector<2x32xf32>
    %367 = arith.addf %365, %366 : vector<2x32xf32>
    %368 = math.tanh %364 : vector<2x32xf32>
    %369 = arith.mulf %357, %368 : vector<2x32xf32>
    %370 = math.tanh %367 : vector<2x32xf32>
    %371 = arith.mulf %361, %370 : vector<2x32xf32>
    %372 = tpu.concatenate %369, %371 in 1 : vector<2x32xf32>, vector<2x32xf32> -> vector<2x64xf32>
    %c4_72 = arith.constant 4 : index
    %c0_73 = arith.constant 0 : index
    %373 = vector.load %arg10[%c4_72, %c0_73] : memref<16x64xf32, #tpu.memory_space<vmem>>, vector<2x32xf32>
    tpu.vector_store %arg10[%c4_72, %c0_73], %369 {strides = array<i32>} : memref<16x64xf32, #tpu.memory_space<vmem>>, vector<2x32xf32>,
    %c10_74 = arith.constant 10 : index
    %c32_75 = arith.constant 32 : index
    %374 = vector.load %arg10[%c10_74, %c32_75] : memref<16x64xf32, #tpu.memory_space<vmem>>, vector<2x32xf32>
    tpu.vector_store %arg10[%c10_74, %c32_75], %371 {strides = array<i32>} : memref<16x64xf32, #tpu.memory_space<vmem>>, vector<2x32xf32>,
    %375 = vector.extract_strided_slice %276 {offsets = [6, 0], sizes = [2, 128], strides = [1, 1]} : vector<16x256xf32> to vector<2x128xf32>
    %376 = vector.extract_strided_slice %276 {offsets = [8, 128], sizes = [2, 128], strides = [1, 1]} : vector<16x256xf32> to vector<2x128xf32>
    %377 = tpu.concatenate %375, %376 in 1 : vector<2x128xf32>, vector<2x128xf32> -> vector<2x256xf32>
    %378 = arith.truncf %372 : vector<2x64xf32> to vector<2x64xbf16>
    %cst_76 = arith.constant dense<0.000000e+00> : vector<2x256xf32>
    %379 = tpu.matmul %378, %270, %cst_76 {dimension_numbers = #tpu.dot_dimension_numbers<[1], [0], [0], [1], [0, 0, 1, 1], [], []>} : vector<2x64xbf16>, vector<64x256xbf16>, vector<2x256xf32> -> vector<2x256xf32>
    %380 = arith.addf %377, %379 : vector<2x256xf32>
    %381 = arith.negf %380 : vector<2x256xf32>
    %382 = math.exp %381 : vector<2x256xf32>
    %cst_77 = arith.constant 1.000000e+00 : f32
    %383 = vector.broadcast %cst_77 : f32 to vector<2x256xf32>
    %384 = arith.addf %383, %382 : vector<2x256xf32>
    %385 = arith.divf %383, %384 : vector<2x256xf32>
    %386 = math.tanh %380 : vector<2x256xf32>
    %387 = vector.extract_strided_slice %385 {offsets = [0, 0], sizes = [2, 32], strides = [1, 1]} : vector<2x256xf32> to vector<2x32xf32>
    %388 = vector.extract_strided_slice %385 {offsets = [0, 32], sizes = [2, 32], strides = [1, 1]} : vector<2x256xf32> to vector<2x32xf32>
    %389 = vector.extract_strided_slice %386 {offsets = [0, 64], sizes = [2, 32], strides = [1, 1]} : vector<2x256xf32> to vector<2x32xf32>
    %390 = vector.extract_strided_slice %385 {offsets = [0, 96], sizes = [2, 32], strides = [1, 1]} : vector<2x256xf32> to vector<2x32xf32>
    %391 = vector.extract_strided_slice %385 {offsets = [0, 128], sizes = [2, 32], strides = [1, 1]} : vector<2x256xf32> to vector<2x32xf32>
    %392 = vector.extract_strided_slice %385 {offsets = [0, 160], sizes = [2, 32], strides = [1, 1]} : vector<2x256xf32> to vector<2x32xf32>
    %393 = vector.extract_strided_slice %386 {offsets = [0, 192], sizes = [2, 32], strides = [1, 1]} : vector<2x256xf32> to vector<2x32xf32>
    %394 = vector.extract_strided_slice %385 {offsets = [0, 224], sizes = [2, 32], strides = [1, 1]} : vector<2x256xf32> to vector<2x32xf32>
    %395 = arith.mulf %388, %364 : vector<2x32xf32>
    %396 = arith.mulf %387, %389 : vector<2x32xf32>
    %397 = arith.addf %395, %396 : vector<2x32xf32>
    %398 = arith.mulf %392, %367 : vector<2x32xf32>
    %399 = arith.mulf %391, %393 : vector<2x32xf32>
    %400 = arith.addf %398, %399 : vector<2x32xf32>
    %401 = math.tanh %397 : vector<2x32xf32>
    %402 = arith.mulf %390, %401 : vector<2x32xf32>
    %403 = math.tanh %400 : vector<2x32xf32>
    %404 = arith.mulf %394, %403 : vector<2x32xf32>
    %405 = tpu.concatenate %402, %404 in 1 : vector<2x32xf32>, vector<2x32xf32> -> vector<2x64xf32>
    %c6_78 = arith.constant 6 : index
    %c0_79 = arith.constant 0 : index
    %406 = vector.load %arg10[%c6_78, %c0_79] : memref<16x64xf32, #tpu.memory_space<vmem>>, vector<2x32xf32>
    tpu.vector_store %arg10[%c6_78, %c0_79], %402 {strides = array<i32>} : memref<16x64xf32, #tpu.memory_space<vmem>>, vector<2x32xf32>,
    %c8_80 = arith.constant 8 : index
    %c32_81 = arith.constant 32 : index
    %407 = vector.load %arg10[%c8_80, %c32_81] : memref<16x64xf32, #tpu.memory_space<vmem>>, vector<2x32xf32>
    tpu.vector_store %arg10[%c8_80, %c32_81], %404 {strides = array<i32>} : memref<16x64xf32, #tpu.memory_space<vmem>>, vector<2x32xf32>,
    %408 = vector.extract_strided_slice %276 {offsets = [8, 0], sizes = [2, 128], strides = [1, 1]} : vector<16x256xf32> to vector<2x128xf32>
    %409 = vector.extract_strided_slice %276 {offsets = [6, 128], sizes = [2, 128], strides = [1, 1]} : vector<16x256xf32> to vector<2x128xf32>
    %410 = tpu.concatenate %408, %409 in 1 : vector<2x128xf32>, vector<2x128xf32> -> vector<2x256xf32>
    %411 = arith.truncf %405 : vector<2x64xf32> to vector<2x64xbf16>
    %cst_82 = arith.constant dense<0.000000e+00> : vector<2x256xf32>
    %412 = tpu.matmul %411, %270, %cst_82 {dimension_numbers = #tpu.dot_dimension_numbers<[1], [0], [0], [1], [0, 0, 1, 1], [], []>} : vector<2x64xbf16>, vector<64x256xbf16>, vector<2x256xf32> -> vector<2x256xf32>
    %413 = arith.addf %410, %412 : vector<2x256xf32>
    %414 = arith.negf %413 : vector<2x256xf32>
    %415 = math.exp %414 : vector<2x256xf32>
    %cst_83 = arith.constant 1.000000e+00 : f32
    %416 = vector.broadcast %cst_83 : f32 to vector<2x256xf32>
    %417 = arith.addf %416, %415 : vector<2x256xf32>
    %418 = arith.divf %416, %417 : vector<2x256xf32>
    %419 = math.tanh %413 : vector<2x256xf32>
    %420 = vector.extract_strided_slice %418 {offsets = [0, 0], sizes = [2, 32], strides = [1, 1]} : vector<2x256xf32> to vector<2x32xf32>
    %421 = vector.extract_strided_slice %418 {offsets = [0, 32], sizes = [2, 32], strides = [1, 1]} : vector<2x256xf32> to vector<2x32xf32>
    %422 = vector.extract_strided_slice %419 {offsets = [0, 64], sizes = [2, 32], strides = [1, 1]} : vector<2x256xf32> to vector<2x32xf32>
    %423 = vector.extract_strided_slice %418 {offsets = [0, 96], sizes = [2, 32], strides = [1, 1]} : vector<2x256xf32> to vector<2x32xf32>
    %424 = vector.extract_strided_slice %418 {offsets = [0, 128], sizes = [2, 32], strides = [1, 1]} : vector<2x256xf32> to vector<2x32xf32>
    %425 = vector.extract_strided_slice %418 {offsets = [0, 160], sizes = [2, 32], strides = [1, 1]} : vector<2x256xf32> to vector<2x32xf32>
    %426 = vector.extract_strided_slice %419 {offsets = [0, 192], sizes = [2, 32], strides = [1, 1]} : vector<2x256xf32> to vector<2x32xf32>
    %427 = vector.extract_strided_slice %418 {offsets = [0, 224], sizes = [2, 32], strides = [1, 1]} : vector<2x256xf32> to vector<2x32xf32>
    %428 = arith.mulf %421, %397 : vector<2x32xf32>
    %429 = arith.mulf %420, %422 : vector<2x32xf32>
    %430 = arith.addf %428, %429 : vector<2x32xf32>
    %431 = arith.mulf %425, %400 : vector<2x32xf32>
    %432 = arith.mulf %424, %426 : vector<2x32xf32>
    %433 = arith.addf %431, %432 : vector<2x32xf32>
    %434 = math.tanh %430 : vector<2x32xf32>
    %435 = arith.mulf %423, %434 : vector<2x32xf32>
    %436 = math.tanh %433 : vector<2x32xf32>
    %437 = arith.mulf %427, %436 : vector<2x32xf32>
    %438 = tpu.concatenate %435, %437 in 1 : vector<2x32xf32>, vector<2x32xf32> -> vector<2x64xf32>
    %c8_84 = arith.constant 8 : index
    %c0_85 = arith.constant 0 : index
    %439 = vector.load %arg10[%c8_84, %c0_85] : memref<16x64xf32, #tpu.memory_space<vmem>>, vector<2x32xf32>
    tpu.vector_store %arg10[%c8_84, %c0_85], %435 {strides = array<i32>} : memref<16x64xf32, #tpu.memory_space<vmem>>, vector<2x32xf32>,
    %c6_86 = arith.constant 6 : index
    %c32_87 = arith.constant 32 : index
    %440 = vector.load %arg10[%c6_86, %c32_87] : memref<16x64xf32, #tpu.memory_space<vmem>>, vector<2x32xf32>
    tpu.vector_store %arg10[%c6_86, %c32_87], %437 {strides = array<i32>} : memref<16x64xf32, #tpu.memory_space<vmem>>, vector<2x32xf32>,
    %441 = vector.extract_strided_slice %276 {offsets = [10, 0], sizes = [2, 128], strides = [1, 1]} : vector<16x256xf32> to vector<2x128xf32>
    %442 = vector.extract_strided_slice %276 {offsets = [4, 128], sizes = [2, 128], strides = [1, 1]} : vector<16x256xf32> to vector<2x128xf32>
    %443 = tpu.concatenate %441, %442 in 1 : vector<2x128xf32>, vector<2x128xf32> -> vector<2x256xf32>
    %444 = arith.truncf %438 : vector<2x64xf32> to vector<2x64xbf16>
    %cst_88 = arith.constant dense<0.000000e+00> : vector<2x256xf32>
    %445 = tpu.matmul %444, %270, %cst_88 {dimension_numbers = #tpu.dot_dimension_numbers<[1], [0], [0], [1], [0, 0, 1, 1], [], []>} : vector<2x64xbf16>, vector<64x256xbf16>, vector<2x256xf32> -> vector<2x256xf32>
    %446 = arith.addf %443, %445 : vector<2x256xf32>
    %447 = arith.negf %446 : vector<2x256xf32>
    %448 = math.exp %447 : vector<2x256xf32>
    %cst_89 = arith.constant 1.000000e+00 : f32
    %449 = vector.broadcast %cst_89 : f32 to vector<2x256xf32>
    %450 = arith.addf %449, %448 : vector<2x256xf32>
    %451 = arith.divf %449, %450 : vector<2x256xf32>
    %452 = math.tanh %446 : vector<2x256xf32>
    %453 = vector.extract_strided_slice %451 {offsets = [0, 0], sizes = [2, 32], strides = [1, 1]} : vector<2x256xf32> to vector<2x32xf32>
    %454 = vector.extract_strided_slice %451 {offsets = [0, 32], sizes = [2, 32], strides = [1, 1]} : vector<2x256xf32> to vector<2x32xf32>
    %455 = vector.extract_strided_slice %452 {offsets = [0, 64], sizes = [2, 32], strides = [1, 1]} : vector<2x256xf32> to vector<2x32xf32>
    %456 = vector.extract_strided_slice %451 {offsets = [0, 96], sizes = [2, 32], strides = [1, 1]} : vector<2x256xf32> to vector<2x32xf32>
    %457 = vector.extract_strided_slice %451 {offsets = [0, 128], sizes = [2, 32], strides = [1, 1]} : vector<2x256xf32> to vector<2x32xf32>
    %458 = vector.extract_strided_slice %451 {offsets = [0, 160], sizes = [2, 32], strides = [1, 1]} : vector<2x256xf32> to vector<2x32xf32>
    %459 = vector.extract_strided_slice %452 {offsets = [0, 192], sizes = [2, 32], strides = [1, 1]} : vector<2x256xf32> to vector<2x32xf32>
    %460 = vector.extract_strided_slice %451 {offsets = [0, 224], sizes = [2, 32], strides = [1, 1]} : vector<2x256xf32> to vector<2x32xf32>
    %461 = arith.mulf %454, %430 : vector<2x32xf32>
    %462 = arith.mulf %453, %455 : vector<2x32xf32>
    %463 = arith.addf %461, %462 : vector<2x32xf32>
    %464 = arith.mulf %458, %433 : vector<2x32xf32>
    %465 = arith.mulf %457, %459 : vector<2x32xf32>
    %466 = arith.addf %464, %465 : vector<2x32xf32>
    %467 = math.tanh %463 : vector<2x32xf32>
    %468 = arith.mulf %456, %467 : vector<2x32xf32>
    %469 = math.tanh %466 : vector<2x32xf32>
    %470 = arith.mulf %460, %469 : vector<2x32xf32>
    %471 = tpu.concatenate %468, %470 in 1 : vector<2x32xf32>, vector<2x32xf32> -> vector<2x64xf32>
    %c10_90 = arith.constant 10 : index
    %c0_91 = arith.constant 0 : index
    %472 = vector.load %arg10[%c10_90, %c0_91] : memref<16x64xf32, #tpu.memory_space<vmem>>, vector<2x32xf32>
    tpu.vector_store %arg10[%c10_90, %c0_91], %468 {strides = array<i32>} : memref<16x64xf32, #tpu.memory_space<vmem>>, vector<2x32xf32>,
    %c4_92 = arith.constant 4 : index
    %c32_93 = arith.constant 32 : index
    %473 = vector.load %arg10[%c4_92, %c32_93] : memref<16x64xf32, #tpu.memory_space<vmem>>, vector<2x32xf32>
    tpu.vector_store %arg10[%c4_92, %c32_93], %470 {strides = array<i32>} : memref<16x64xf32, #tpu.memory_space<vmem>>, vector<2x32xf32>,
    %474 = vector.extract_strided_slice %276 {offsets = [12, 0], sizes = [2, 128], strides = [1, 1]} : vector<16x256xf32> to vector<2x128xf32>
    %475 = vector.extract_strided_slice %276 {offsets = [2, 128], sizes = [2, 128], strides = [1, 1]} : vector<16x256xf32> to vector<2x128xf32>
    %476 = tpu.concatenate %474, %475 in 1 : vector<2x128xf32>, vector<2x128xf32> -> vector<2x256xf32>
    %477 = arith.truncf %471 : vector<2x64xf32> to vector<2x64xbf16>
    %cst_94 = arith.constant dense<0.000000e+00> : vector<2x256xf32>
    %478 = tpu.matmul %477, %270, %cst_94 {dimension_numbers = #tpu.dot_dimension_numbers<[1], [0], [0], [1], [0, 0, 1, 1], [], []>} : vector<2x64xbf16>, vector<64x256xbf16>, vector<2x256xf32> -> vector<2x256xf32>
    %479 = arith.addf %476, %478 : vector<2x256xf32>
    %480 = arith.negf %479 : vector<2x256xf32>
    %481 = math.exp %480 : vector<2x256xf32>
    %cst_95 = arith.constant 1.000000e+00 : f32
    %482 = vector.broadcast %cst_95 : f32 to vector<2x256xf32>
    %483 = arith.addf %482, %481 : vector<2x256xf32>
    %484 = arith.divf %482, %483 : vector<2x256xf32>
    %485 = math.tanh %479 : vector<2x256xf32>
    %486 = vector.extract_strided_slice %484 {offsets = [0, 0], sizes = [2, 32], strides = [1, 1]} : vector<2x256xf32> to vector<2x32xf32>
    %487 = vector.extract_strided_slice %484 {offsets = [0, 32], sizes = [2, 32], strides = [1, 1]} : vector<2x256xf32> to vector<2x32xf32>
    %488 = vector.extract_strided_slice %485 {offsets = [0, 64], sizes = [2, 32], strides = [1, 1]} : vector<2x256xf32> to vector<2x32xf32>
    %489 = vector.extract_strided_slice %484 {offsets = [0, 96], sizes = [2, 32], strides = [1, 1]} : vector<2x256xf32> to vector<2x32xf32>
    %490 = vector.extract_strided_slice %484 {offsets = [0, 128], sizes = [2, 32], strides = [1, 1]} : vector<2x256xf32> to vector<2x32xf32>
    %491 = vector.extract_strided_slice %484 {offsets = [0, 160], sizes = [2, 32], strides = [1, 1]} : vector<2x256xf32> to vector<2x32xf32>
    %492 = vector.extract_strided_slice %485 {offsets = [0, 192], sizes = [2, 32], strides = [1, 1]} : vector<2x256xf32> to vector<2x32xf32>
    %493 = vector.extract_strided_slice %484 {offsets = [0, 224], sizes = [2, 32], strides = [1, 1]} : vector<2x256xf32> to vector<2x32xf32>
    %494 = arith.mulf %487, %463 : vector<2x32xf32>
    %495 = arith.mulf %486, %488 : vector<2x32xf32>
    %496 = arith.addf %494, %495 : vector<2x32xf32>
    %497 = arith.mulf %491, %466 : vector<2x32xf32>
    %498 = arith.mulf %490, %492 : vector<2x32xf32>
    %499 = arith.addf %497, %498 : vector<2x32xf32>
    %500 = math.tanh %496 : vector<2x32xf32>
    %501 = arith.mulf %489, %500 : vector<2x32xf32>
    %502 = math.tanh %499 : vector<2x32xf32>
    %503 = arith.mulf %493, %502 : vector<2x32xf32>
    %504 = tpu.concatenate %501, %503 in 1 : vector<2x32xf32>, vector<2x32xf32> -> vector<2x64xf32>
    %c12_96 = arith.constant 12 : index
    %c0_97 = arith.constant 0 : index
    %505 = vector.load %arg10[%c12_96, %c0_97] : memref<16x64xf32, #tpu.memory_space<vmem>>, vector<2x32xf32>
    tpu.vector_store %arg10[%c12_96, %c0_97], %501 {strides = array<i32>} : memref<16x64xf32, #tpu.memory_space<vmem>>, vector<2x32xf32>,
    %c2_98 = arith.constant 2 : index
    %c32_99 = arith.constant 32 : index
    %506 = vector.load %arg10[%c2_98, %c32_99] : memref<16x64xf32, #tpu.memory_space<vmem>>, vector<2x32xf32>
    tpu.vector_store %arg10[%c2_98, %c32_99], %503 {strides = array<i32>} : memref<16x64xf32, #tpu.memory_space<vmem>>, vector<2x32xf32>,
    %507 = vector.extract_strided_slice %276 {offsets = [14, 0], sizes = [2, 128], strides = [1, 1]} : vector<16x256xf32> to vector<2x128xf32>
    %508 = vector.extract_strided_slice %276 {offsets = [0, 128], sizes = [2, 128], strides = [1, 1]} : vector<16x256xf32> to vector<2x128xf32>
    %509 = tpu.concatenate %507, %508 in 1 : vector<2x128xf32>, vector<2x128xf32> -> vector<2x256xf32>
    %510 = arith.truncf %504 : vector<2x64xf32> to vector<2x64xbf16>
    %cst_100 = arith.constant dense<0.000000e+00> : vector<2x256xf32>
    %511 = tpu.matmul %510, %270, %cst_100 {dimension_numbers = #tpu.dot_dimension_numbers<[1], [0], [0], [1], [0, 0, 1, 1], [], []>} : vector<2x64xbf16>, vector<64x256xbf16>, vector<2x256xf32> -> vector<2x256xf32>
    %512 = arith.addf %509, %511 : vector<2x256xf32>
    %513 = arith.negf %512 : vector<2x256xf32>
    %514 = math.exp %513 : vector<2x256xf32>
    %cst_101 = arith.constant 1.000000e+00 : f32
    %515 = vector.broadcast %cst_101 : f32 to vector<2x256xf32>
    %516 = arith.addf %515, %514 : vector<2x256xf32>
    %517 = arith.divf %515, %516 : vector<2x256xf32>
    %518 = math.tanh %512 : vector<2x256xf32>
    %519 = vector.extract_strided_slice %517 {offsets = [0, 0], sizes = [2, 32], strides = [1, 1]} : vector<2x256xf32> to vector<2x32xf32>
    %520 = vector.extract_strided_slice %517 {offsets = [0, 32], sizes = [2, 32], strides = [1, 1]} : vector<2x256xf32> to vector<2x32xf32>
    %521 = vector.extract_strided_slice %518 {offsets = [0, 64], sizes = [2, 32], strides = [1, 1]} : vector<2x256xf32> to vector<2x32xf32>
    %522 = vector.extract_strided_slice %517 {offsets = [0, 96], sizes = [2, 32], strides = [1, 1]} : vector<2x256xf32> to vector<2x32xf32>
    %523 = vector.extract_strided_slice %517 {offsets = [0, 128], sizes = [2, 32], strides = [1, 1]} : vector<2x256xf32> to vector<2x32xf32>
    %524 = vector.extract_strided_slice %517 {offsets = [0, 160], sizes = [2, 32], strides = [1, 1]} : vector<2x256xf32> to vector<2x32xf32>
    %525 = vector.extract_strided_slice %518 {offsets = [0, 192], sizes = [2, 32], strides = [1, 1]} : vector<2x256xf32> to vector<2x32xf32>
    %526 = vector.extract_strided_slice %517 {offsets = [0, 224], sizes = [2, 32], strides = [1, 1]} : vector<2x256xf32> to vector<2x32xf32>
    %527 = arith.mulf %520, %496 : vector<2x32xf32>
    %528 = arith.mulf %519, %521 : vector<2x32xf32>
    %529 = arith.addf %527, %528 : vector<2x32xf32>
    %530 = arith.mulf %524, %499 : vector<2x32xf32>
    %531 = arith.mulf %523, %525 : vector<2x32xf32>
    %532 = arith.addf %530, %531 : vector<2x32xf32>
    %533 = math.tanh %529 : vector<2x32xf32>
    %534 = arith.mulf %522, %533 : vector<2x32xf32>
    %535 = math.tanh %532 : vector<2x32xf32>
    %536 = arith.mulf %526, %535 : vector<2x32xf32>
    %c14_102 = arith.constant 14 : index
    %c0_103 = arith.constant 0 : index
    %537 = vector.load %arg10[%c14_102, %c0_103] : memref<16x64xf32, #tpu.memory_space<vmem>>, vector<2x32xf32>
    tpu.vector_store %arg10[%c14_102, %c0_103], %534 {strides = array<i32>} : memref<16x64xf32, #tpu.memory_space<vmem>>, vector<2x32xf32>,
    %c0_104 = arith.constant 0 : index
    %c32_105 = arith.constant 32 : index
    %538 = vector.load %arg10[%c0_104, %c32_105] : memref<16x64xf32, #tpu.memory_space<vmem>>, vector<2x32xf32>
    tpu.vector_store %arg10[%c0_104, %c32_105], %536 {strides = array<i32>} : memref<16x64xf32, #tpu.memory_space<vmem>>, vector<2x32xf32>,
    %c14_106 = arith.constant 14 : index
    %c0_107 = arith.constant 0 : index
    %539 = vector.load %arg10[%c14_106, %c0_107] : memref<16x64xf32, #tpu.memory_space<vmem>>, vector<2x64xf32>
    %540 = arith.truncf %539 : vector<2x64xf32> to vector<2x64xbf16>
    %c0_108 = arith.constant 0 : index
    %c0_109 = arith.constant 0 : index
    %541 = vector.load %arg7[%c0_108, %c0_109] : memref<64x4xbf16, #tpu.memory_space<vmem>>, vector<64x4xbf16>
    %cst_110 = arith.constant dense<0.000000e+00> : vector<2x4xf32>
    %542 = tpu.matmul %540, %541, %cst_110 {dimension_numbers = #tpu.dot_dimension_numbers<[1], [0], [0], [1], [0, 0, 1, 1], [], []>} : vector<2x64xbf16>, vector<64x4xbf16>, vector<2x4xf32> -> vector<2x4xf32>
    %c0_111 = arith.constant 0 : index
    %c0_112 = arith.constant 0 : index
    %543 = vector.load %arg8[%c0_111, %c0_112] : memref<1x4xf32, #tpu.memory_space<vmem>>, vector<1x4xf32>
    %544 = vector.broadcast %543 : vector<1x4xf32> to vector<2x4xf32>
    %545 = arith.addf %542, %544 : vector<2x4xf32>
    %c0_113 = arith.constant 0 : index
    %c0_114 = arith.constant 0 : index
    %546 = vector.load %arg9[%c0_113, %c0_114] : memref<2x4xf32, #tpu.memory_space<vmem>>, vector<2x4xf32>
    tpu.vector_store %arg9[%c0_113, %c0_114], %545 {strides = array<i32>} : memref<2x4xf32, #tpu.memory_space<vmem>>, vector<2x4xf32>,
    return
  }
}

</mosaic_0001>

<bundles_post_ra>
// kernel: tpu_custom_call.1
= control target key start
LH: loop header
LB: loop body
LE: loop exit
PB: predicated region body
PF: predicated region fallthrough
CT: control target
= control target key end

     0   :  { %14 = vsyncpa [#allocation4], 0  ;;  %s3660_s0 = inlined_call_operand.vmem [shape: bf16[16,16], index: 0, kind: input, shape index: {}]   ;;  %s3661_s1 = inlined_call_operand.vmem [shape: bf16[16,256], index: 1, kind: input, shape index: {}]   ;;  %s3662_s2 = inlined_call_operand.hbm [shape: bf16[64,256], index: 2, kind: input, shape index: {}]   ;;  %s3663_s3 = inlined_call_operand.vmem [shape: f32[1,256], index: 3, kind: input, shape index: {}]   ;;  %s3664_s4 = inlined_call_operand.hbm [shape: bf16[64,256], index: 4, kind: input, shape index: {}]   ;;  %s3665_s5 = inlined_call_operand.hbm [shape: bf16[64,256], index: 5, kind: input, shape index: {}]   ;;  %s3666_s6 = inlined_call_operand.vmem [shape: f32[1,256], index: 6, kind: input, shape index: {}]   ;;  %s3667_s7 = inlined_call_operand.vmem [shape: bf16[64,4], index: 7, kind: input, shape index: {}]   ;;  %s3668_s8 = inlined_call_operand.vmem [shape: f32[1,4], index: 8, kind: input, shape index: {}]   ;;  %s3669_s9 = inlined_call_operand.hbm [shape: f32[2,4], index: 9, kind: output, shape index: {}]  }
   0x1   :  { %15 = vsyncpa [#allocation7], 0 }
   0x2   :  { %16 = vsyncpa [#allocation5], 0  ;;  %s40_s11 = sshll.u32 %s3664_s4, 4  ;;  %s2995_s12 = smov [#allocation6]   ;;  %s41_s11 = int_to_ptr.hbm [resolvable:$true] %s40_s11 }
   0x3   :  { %s42_s13 = sshll.u32 %s2995_s12, 4  ;;  %s25_s16 = sshll.u32 %s3662_s2, 4  ;;  %s43_s13 = int_to_ptr.vmem [resolvable:$true] %s42_s13  ;;  %s26_s16 = int_to_ptr.hbm [resolvable:$true] %s25_s16 }
   0x4   :  { %s2996_s17 = smov 128   ;;  %s2997_s18 = smov 8  }
   0x5   :  { %48 = dma.hbm_to_vmem [thread:$0]  %s41_s11, 1024, %s43_s13, [#allocation7], %s2996_s17, %s2996_s17, %s2997_s18  }
   0x6   :  { %s2998_s19 = smov [#allocation3]   ;;  %s53_s23 = sshll.u32 %s3665_s5, 4  ;;  %s54_s23 = int_to_ptr.hbm [resolvable:$true] %s53_s23 }
   0x7   :  { %s27_s20 = sshll.u32 %s2998_s19, 4  ;;  %s2999_s4 = smov [#allocation8]   ;;  %s28_s20 = int_to_ptr.vmem [resolvable:$true] %s27_s20 }
   0x8   :  { %33 = dma.hbm_to_vmem [thread:$0]  %s26_s16, 1024, %s28_s20, [#allocation4], %s2996_s17, %s2996_s17, %s2997_s18  }
   0x9   :  { %s55_s24 = sshll.u32 %s2999_s4, 4  ;;  %s56_s24 = int_to_ptr.vmem [resolvable:$true] %s55_s24 }
   0xa   :  { %61 = dma.hbm_to_vmem [thread:$0]  %s54_s23, 1024, %s56_s24, [#allocation7], %s2996_s17, %s2996_s17, %s2997_s18  }
   0xb   :  { %2989 = dma.done.wait [#allocation4], 1024  }
   0xc   :  { %2990 = vsyncadd [#allocation4], 4294966272 }
   0xd   :  { %2991 = dma.done.wait [#allocation7], 2048  }
   0xe   :  { %2992 = vsyncadd [#allocation7], 4294965248  ;;  %v2414_v0 = vld [vmem:[%s3661_s1] sm:$0xf]  ;;  %v2598_v1 = vld [vmem:[%s3661_s1 + $0x4] sm:$0xf0] }
   0xf   :  { %v2597_v2 = vld [vmem:[%s3661_s1 + $0x4] sm:$0xf]  ;;  %v2415_v3 = vor.u32 %v2598_v1, %v2414_v0  ;;  %v2416_v4 = vld [vmem:[%s3661_s1 + $0x8] sm:$0xf0]  ;;  %vm114_vm0 = vcmask 130048   ;;  %s3001_s1 = smov 32  }
  0x10   :  { %v2419_v5 = vor.u32 %v2597_v2, %v2416_v4  ;;  %v2607_v6 = vld [vmem:[%s3660_s0] sm:$0xff]  ;;  %s3000_s0 = smov 64   ;;  %v2606_v58 = vld [vmem:[#allocation3 + $0x34] sm:$0xf0]  ;;  %v2452_v61 = vld [vmem:[#allocation3 + $0x38] sm:$0xf0] }
  0x11   :  { %125 = vmatpush.bf16.msra.mxu0 %v2415_v3  ;;  %v3080_v7 = vld [vmem:[%s3663_s3] sm:$0x3]  ;;  %v2605_v59 = vld [vmem:[#allocation3 + $0x34] sm:$0xf]  ;;  %v2442_v3 = vld [vmem:[#allocation3 + $0x20] sm:$0xf] }
  0x12   :  { %139 = vmatpush.bf16.msra.mxu1 %v2419_v5  ;;  %v95_v8 = vperm.slane %v3080_v7, 0  ;;  %v96_v9 = vperm.slane %v3080_v7, 1  ;;  %v2450_v57 = vld [vmem:[#allocation3 + $0x30] sm:$0xf]  ;;  %v3113_v62 = vor.u32 %v2605_v59, %v2452_v61  ;;  %v2604_v4 = vld [vmem:[#allocation3 + $0x24] sm:$0xf0] }
  0x13   :  { %v3111_v60 = vor.u32 %v2606_v58, %v2450_v57  ;;  %v2603_v5 = vld [vmem:[#allocation3 + $0x24] sm:$0xf]  ;;  %vm233_vm9 = vcmask 254976   ;;  %vm231_vm10 = vcmask 261120   ;;  %vm235_vm11 = vcmask 517376   ;;  %s2397_s25 = sshll.u32 %s3669_s9, 4  ;;  %s2398_s25 = int_to_ptr.hbm [resolvable:$true] %s2397_s25 }
  0x14   :  { %2420 = vmatmul.msk.bf16.vlgmr.msra.gmra.mxu0 %vm114_vm0, %v2607_v6  ;;  %301 = vmatpush.bf16.msra.mxu3 %v3113_v62  ;;  %vm280_vm12 = vcmask 523264  }
  0x15   :  { %2421 = vmatmul.msk.bf16.vlgmr.msra.gmra.mxu1 %vm114_vm0, %v2607_v6  ;;  %288 = vmatpush.bf16.msra.mxu2 %v3111_v60  ;;  %v3121_v6 = vor.u32 %v2604_v4, %v2442_v3 }
  0x16   :  { %421 = vmatpush.bf16.msrb.mxu0 %v3111_v60  ;;  %434 = vmatpush.bf16.msrb.mxu1 %v3113_v62 }
  0x19   :  { %289 = vmatpush.bf16.msra.mxu2 %v3121_v6 }
  0x1a   :  { %422 = vmatpush.bf16.msrb.mxu0 %v3121_v6 }
  0x91   :  { %v127_v10 = vpop.f32.mrf.mxu0 }
  0x92   :  { %v3086_v11 = vadd.f32 %v127_v10, %v95_v8  ;;  %v141_v12 = vpop.f32.mrf.mxu1  ;;  %v2434_v10 = vld [vmem:[#allocation3 + $0x10] sm:$0xf] }
  0x93   :  { %v3088_v13 = vadd.f32 %v141_v12, %v96_v9  ;;  %v2602_v12 = vld [vmem:[#allocation3 + $0x14] sm:$0xf0] }
  0x94   :  { %2637 = vtanh.f32 %v3086_v11  ;;  %v2422_v19 = vmul.f32 -1.442695, %v3086_v11 }
  0x9a   :  { %v2638_v14 = vpop.eup %2637  ;;  %v143_v15 = vpop.f32.mrf.mxu1 }
  0x9b   :  { %v3091_v16 = vadd.f32 %v143_v15, %v96_v9  ;;  %191 = vrot.lane.b32.xlu0 %v2638_v14, %s3000_s0  ;;  %v2444_v9 = vld [vmem:[#allocation3 + $0x28] sm:$0xf0]  ;;  %v2601_v15 = vld [vmem:[#allocation3 + $0x14] sm:$0xf] }
  0x9c   :  { %v3123_v14 = vor.u32 %v2603_v5, %v2444_v9 }
  0x9d   :  { %v3095_v17 = vrot.slane %v3091_v16, 6 }
  0x9e   :  { %302 = vmatpush.bf16.msra.mxu3 %v3123_v14  ;;  %435 = vmatpush.bf16.msrb.mxu1 %v3123_v14 }
  0x9f   :  { %2639 = vtanh.f32 %v3095_v17  ;;  %v2423_v21 = vmul.f32 -1.442695, %v3095_v17 }
  0xa0   :  { %2641 = vpow2.f32 %v2422_v19  ;;  %v3126_v19 = vor.u32 %v2602_v12, %v2434_v10 }
  0xa1   :  { %2643 = vpow2.f32 %v2423_v21  ;;  %v2426_v21 = vld [vmem:[#allocation3] sm:$0xf] }
  0xa2   :  { %290 = vmatpush.bf16.msra.mxu2 %v3126_v19  ;;  %423 = vmatpush.bf16.msrb.mxu0 %v3126_v19 }
  0xa5   :  { %v2640_v18 = vpop.eup %2639 }
  0xa6   :  { %202 = vrot.lane.b32.xlu0 %v2640_v18, %s3000_s0  ;;  %v2642_v20 = vpop.eup %2641  ;;  %v2436_v18 = vld [vmem:[#allocation3 + $0x18] sm:$0xf0] }
  0xa7   :  { %v155_v22 = vadd.f32 1.0, %v2642_v20  ;;  %v2644_v23 = vpop.eup %2643  ;;  %v3130_v20 = vor.u32 %v2601_v15, %v2436_v18 }
  0xa8   :  { %v156_v25 = vadd.f32 1.0, %v2644_v23  ;;  %v2599_v23 = vld [vmem:[#allocation3 + $0x4] sm:$0xf] }
  0xa9   :  { %2645 = vrcp.f32 %v155_v22  ;;  %v168_v32 = vand.u32 2147483648, %v155_v22  ;;  %vm162_vm2 = vweird.f32 %v155_v22  ;;  %v166_v33 = vand.u32 2147483647, %v155_v22  ;;  %303 = vmatpush.bf16.msra.mxu3 %v3130_v20  ;;  %436 = vmatpush.bf16.msrb.mxu1 %v3130_v20 }
  0xaa   :  { %2647 = vrcp.f32 %v156_v25  ;;  %v183_v42 = vand.u32 2147483648, %v156_v25  ;;  %vm177_vm6 = vweird.f32 %v156_v25  ;;  %v181_v43 = vand.u32 2147483647, %v156_v25 }
  0xab   :  { %v169_v36 = vor.u32 1.1754944e-38, %v168_v32  ;;  %vm167_vm4 = vcmp.eq.f32.partialorder %v166_v33, 8.507059e+37  ;;  %v237_v33 = vrot.slane %v3091_v16, 2 }
  0xac   :  { %v184_v45 = vor.u32 1.1754944e-38, %v183_v42  ;;  %vm182_vm8 = vcmp.eq.f32.partialorder %v181_v43, 8.507059e+37 }
  0xaf   :  { %v2646_v24 = vpop.eup %2645 }
  0xb0   :  { %v158_v26 = vmul.f32 %v2646_v24, %v155_v22  ;;  %v2648_v29 = vpop.eup %2647  ;;  %vm163_vm1 = vweird.f32 %v2646_v24  ;;  %v2600_v22 = vld [vmem:[#allocation3 + $0x4] sm:$0xf0] }
  0xb1   :  { %v173_v31 = vmul.f32 %v2648_v29, %v156_v25  ;;  %vm164_vm3 = vmor %vm162_vm2, %vm163_vm1  ;;  %vm178_vm5 = vweird.f32 %v2648_v29  ;;  %v2428_v25 = vld [vmem:[#allocation3 + $0x8] sm:$0xf0] }
  0xb2   :  { %v159_v27 = vsub.f32 1.0, %v158_v26  ;;  %vm179_vm7 = vmor %vm177_vm6, %vm178_vm5  ;;  %v3139_v26 = vor.u32 %v2599_v23, %v2428_v25  ;;  %vm407_vm5 = vcmask 257026   ;;  %vm3671_vm6 = vcmask 519426  }
  0xb3   :  { %v174_v35 = vsub.f32 1.0, %v173_v31 }
  0xb4   :  { %v160_v28 = vmul.f32 %v2646_v24, %v159_v27  ;;  %304 = vmatpush.bf16.msra.mxu3 %v3139_v26  ;;  %437 = vmatpush.bf16.msrb.mxu1 %v3139_v26 }
  0xb5   :  { %v175_v40 = vmul.f32 %v2648_v29, %v174_v35 }
  0xb6   :  { %v161_v30 = vadd.f32 %v2646_v24, %v160_v28 }
  0xb7   :  { %v176_v41 = vadd.f32 %v2648_v29, %v175_v40 }
  0xb8   :  { %v165_v34 = vsel %vm164_vm3, %v2646_v24, %v161_v30  ;;  %v3137_v24 = vor.u32 %v2600_v22, %v2426_v21  ;;  %567 = vmatpush.bf16.msrb.mxu3 %v3113_v62  ;;  %703 = vmatpush.bf16.msra.mxu1 %v3113_v62 }
  0xb9   :  { %v170_v38 = vsel %vm167_vm4, %v169_v36, %v165_v34  ;;  %v180_v44 = vsel %vm179_vm7, %v2648_v29, %v176_v41 }
  0xba   :  { %v185_v47 = vsel %vm182_vm8, %v184_v45, %v180_v44  ;;  %v189_v49 = vmul.f32 0.0, %v170_v38  ;;  %291 = vmatpush.bf16.msra.mxu2 %v3137_v24  ;;  %424 = vmatpush.bf16.msrb.mxu0 %v3137_v24 }
  0xbb   :  { %v200_v53 = vmul.f32 0.0, %v185_v47 }
  0xbc   :  { %568 = vmatpush.bf16.msrb.mxu3 %v3123_v14  ;;  %704 = vmatpush.bf16.msra.mxu1 %v3123_v14 }
  0xbe   :  { %554 = vmatpush.bf16.msrb.mxu2 %v3111_v60  ;;  %690 = vmatpush.bf16.msra.mxu0 %v3111_v60 }
  0xc0   :  { %569 = vmatpush.bf16.msrb.mxu3 %v3130_v20  ;;  %705 = vmatpush.bf16.msra.mxu1 %v3130_v20 }
  0xc2   :  { %555 = vmatpush.bf16.msrb.mxu2 %v3121_v6  ;;  %691 = vmatpush.bf16.msra.mxu0 %v3121_v6 }
  0xc4   :  { %570 = vmatpush.bf16.msrb.mxu3 %v3139_v26  ;;  %706 = vmatpush.bf16.msra.mxu1 %v3139_v26 }
  0xc6   :  { %556 = vmatpush.bf16.msrb.mxu2 %v3126_v19  ;;  %692 = vmatpush.bf16.msra.mxu0 %v3126_v19 }
  0xca   :  { %557 = vmatpush.bf16.msrb.mxu2 %v3137_v24  ;;  %693 = vmatpush.bf16.msra.mxu0 %v3137_v24 }
 0x10d   :  { %v192_v37 = vpop.permute.xlu0 %191 }
 0x10e   :  { %v194_v39 = vmul.f32 %v192_v37, %v170_v38 }
 0x110   :  { %196 = vrot.lane.b32.xlu1 %v194_v39, %s3001_s1 }
 0x118   :  { %v203_v46 = vpop.permute.xlu0 %202 }
 0x119   :  { %v205_v48 = vmul.f32 %v203_v46, %v185_v47 }
 0x11b   :  { %207 = vrot.lane.b32.xlu1 %v205_v48, %s3001_s1 }
 0x182   :  { %v197_v50 = vpop.permute.xlu1 %196 }
 0x183   :  { %v3103_v51 = vadd.f32 %v197_v50, %v189_v49 }
 0x185   :  { %2649 = vtanh.f32 %v3103_v51  ;;  %v359_v22 = vrot.slane %v3103_v51, 6 }
 0x18b   :  { %v2650_v52 = vpop.eup %2649 }
 0x18c   :  { %213 = vrot.lane.b32.xlu2 %v2650_v52, %s3000_s0 }
 0x18d   :  { %v208_v54 = vpop.permute.xlu1 %207 }
 0x18e   :  { %v3107_v55 = vadd.f32 %v208_v54, %v200_v53 }
 0x190   :  { %2651 = vtanh.f32 %v3107_v55  ;;  %v373_v23 = vrot.slane %v3107_v55, 6 }
 0x196   :  { %v2652_v56 = vpop.eup %2651 }
 0x197   :  { %219 = vrot.lane.b32.xlu2 %v2652_v56, %s3000_s0 }
 0x1e6   :  { %v214_v63 = vpop.permute.xlu2 %213 }
 0x1e7   :  { %v216_v0 = vmul.f32 %v214_v63, %v170_v38 }
 0x1e9   :  { %224 = vrot.lane.b32.xlu0 %v216_v0, %s3001_s1 }
 0x1f1   :  { %v220_v1 = vpop.permute.xlu2 %219 }
 0x1f2   :  { %v222_v2 = vmul.f32 %v220_v1, %v185_v47 }
 0x1f4   :  { %228 = vrot.lane.b32.xlu1 %v222_v2, %s3000_s0 }
 0x25b   :  { %v225_v27 = vpop.permute.xlu0 %224 }
 0x25c   :  { %234 = vst.msk [vmem:[#allocation2] sm:$0x3] %vm233_vm9, %v225_v27 }
 0x266   :  { %v229_v28 = vpop.permute.xlu1 %228 }
 0x267   :  { %v232_v29 = vsel %vm231_vm10, %v225_v27, %v229_v28  ;;  %236 = vst.msk [vmem:[#allocation2 + $0xe] sm:$0x3] %vm235_vm11, %v229_v28 }
 0x268   :  { %v239_v30 = vpack.c.bf16 %v232_v29, %v232_v29 }
 0x26a   :  { %2456 = vmatmul.msk.bf16.vlgmr.msra.gmra.mxu2 %vm280_vm12, %v239_v30  ;;  %2457 = vmatmul.msk.bf16.vlgmr.msra.gmra.mxu3 %vm280_vm12, %v239_v30 }
 0x26b   :  { %815 = vmatpush.bf16.msra.mxu2 %v3111_v60  ;;  %828 = vmatpush.bf16.msra.mxu3 %v3113_v62 }
 0x26f   :  { %816 = vmatpush.bf16.msra.mxu2 %v3121_v6  ;;  %829 = vmatpush.bf16.msra.mxu3 %v3123_v14 }
 0x273   :  { %817 = vmatpush.bf16.msra.mxu2 %v3126_v19  ;;  %830 = vmatpush.bf16.msra.mxu3 %v3130_v20 }
 0x277   :  { %818 = vmatpush.bf16.msra.mxu2 %v3137_v24  ;;  %831 = vmatpush.bf16.msra.mxu3 %v3139_v26 }
 0x2ed   :  { %v293_v31 = vpop.f32.mrf.mxu2  ;;  %v306_v32 = vpop.f32.mrf.mxu3 }
 0x2ee   :  { %v312_v34 = vrot.slane %v293_v31, 6  ;;  %v313_v35 = vrot.slane %v306_v32, 6 }
 0x2f0   :  { %v316_v36 = vadd.f32 %v312_v34, %v3086_v11  ;;  %v317_v37 = vadd.f32 %v313_v35, %v237_v33 }
 0x2f2   :  { %2653 = vtanh.f32 %v316_v36  ;;  %v2458_v42 = vmul.f32 -1.442695, %v316_v36  ;;  %v2459_v46 = vmul.f32 -1.442695, %v317_v37 }
 0x2f3   :  { %2655 = vtanh.f32 %v317_v37 }
 0x2f4   :  { %2657 = vpow2.f32 %v2458_v42  ;;  %v3207_v42 = vpop.f32.mrf.mxu0 }
 0x2f5   :  { %v295_v38 = vpop.f32.mrf.mxu2  ;;  %v308_v39 = vpop.f32.mrf.mxu3 }
 0x2f8   :  { %v2654_v40 = vpop.eup %2653 }
 0x2f9   :  { %v2656_v41 = vpop.eup %2655  ;;  %363 = vrot.lane.b32.xlu2 %v2654_v40, %s3000_s0 }
 0x2fa   :  { %377 = vrot.lane.b32.xlu0 %v2656_v41, %s3000_s0  ;;  %v2658_v43 = vpop.eup %2657 }
 0x2fb   :  { %v324_v44 = vadd.f32 1.0, %v2658_v43 }
 0x2fd   :  { %2659 = vrcp.f32 %v324_v44  ;;  %v337_v54 = vand.u32 2147483648, %v324_v44  ;;  %vm331_vm14 = vweird.f32 %v324_v44  ;;  %v335_v56 = vand.u32 2147483647, %v324_v44 }
 0x2fe   :  { %2661 = vpow2.f32 %v2459_v46 }
 0x2ff   :  { %v338_v58 = vor.u32 1.1754944e-38, %v337_v54  ;;  %vm336_vm0 = vcmp.eq.f32.partialorder %v335_v56, 8.507059e+37 }
 0x303   :  { %v2660_v45 = vpop.eup %2659 }
 0x304   :  { %v327_v47 = vmul.f32 %v2660_v45, %v324_v44  ;;  %v2662_v50 = vpop.eup %2661  ;;  %vm332_vm13 = vweird.f32 %v2660_v45 }
 0x305   :  { %v325_v52 = vadd.f32 1.0, %v2662_v50  ;;  %vm333_vm15 = vmor %vm331_vm14, %vm332_vm13 }
 0x306   :  { %v328_v48 = vsub.f32 1.0, %v327_v47 }
 0x307   :  { %2663 = vrcp.f32 %v325_v52  ;;  %v352_v5 = vand.u32 2147483648, %v325_v52  ;;  %vm346_vm2 = vweird.f32 %v325_v52  ;;  %v350_v9 = vand.u32 2147483647, %v325_v52 }
 0x308   :  { %v329_v49 = vmul.f32 %v2660_v45, %v328_v48 }
 0x309   :  { %v353_v12 = vor.u32 1.1754944e-38, %v352_v5  ;;  %vm351_vm4 = vcmp.eq.f32.partialorder %v350_v9, 8.507059e+37 }
 0x30a   :  { %v330_v53 = vadd.f32 %v2660_v45, %v329_v49 }
 0x30c   :  { %v334_v57 = vsel %vm333_vm15, %v2660_v45, %v330_v53 }
 0x30d   :  { %v339_v61 = vsel %vm336_vm0, %v338_v58, %v334_v57  ;;  %v2664_v0 = vpop.eup %2663 }
 0x30e   :  { %v342_v1 = vmul.f32 %v2664_v0, %v325_v52  ;;  %vm347_vm1 = vweird.f32 %v2664_v0  ;;  %v361_v25 = vmul.f32 %v359_v22, %v339_v61 }
 0x30f   :  { %vm348_vm3 = vmor %vm346_vm2, %vm347_vm1 }
 0x310   :  { %v343_v2 = vsub.f32 1.0, %v342_v1 }
 0x312   :  { %v344_v3 = vmul.f32 %v2664_v0, %v343_v2 }
 0x314   :  { %v345_v4 = vadd.f32 %v2664_v0, %v344_v3 }
 0x316   :  { %v349_v10 = vsel %vm348_vm3, %v2664_v0, %v345_v4  ;;  %vm542_vm3 = vcmask 521476  }
 0x317   :  { %v354_v18 = vsel %vm351_vm4, %v353_v12, %v349_v10  ;;  %vm540_vm4 = vcmask 259076  }
 0x318   :  { %v375_v27 = vmul.f32 %v373_v23, %v354_v18 }
 0x353   :  { %v364_v59 = vpop.permute.xlu2 %363 }
 0x354   :  { %v366_v63 = vmul.f32 %v364_v59, %v339_v61 }
 0x356   :  { %368 = vrot.lane.b32.xlu1 %v366_v63, %s3001_s1 }
 0x36c   :  { %v378_v15 = vpop.permute.xlu0 %377 }
 0x36d   :  { %v380_v21 = vmul.f32 %v378_v15, %v354_v18 }
 0x36f   :  { %382 = vrot.lane.b32.xlu2 %v380_v21, %s3001_s1 }
 0x3c8   :  { %v369_v28 = vpop.permute.xlu1 %368 }
 0x3c9   :  { %v383_v29 = vpop.permute.xlu2 %382  ;;  %v3184_v30 = vadd.f32 %v369_v28, %v361_v25 }
 0x3ca   :  { %v3186_v31 = vadd.f32 %v383_v29, %v375_v27 }
 0x3cb   :  { %2665 = vtanh.f32 %v3184_v30 }
 0x3cc   :  { %2667 = vtanh.f32 %v3186_v31 }
 0x3d1   :  { %v2666_v32 = vpop.eup %2665 }
 0x3d2   :  { %v2668_v34 = vpop.eup %2667  ;;  %388 = vrot.lane.b32.xlu0 %v2666_v32, %s3000_s0 }
 0x3d3   :  { %394 = vrot.lane.b32.xlu1 %v2668_v34, %s3000_s0 }
 0x444   :  { %v389_v51 = vpop.permute.xlu0 %388 }
 0x445   :  { %v395_v55 = vpop.permute.xlu1 %394  ;;  %v391_v35 = vmul.f32 %v389_v51, %v339_v61 }
 0x446   :  { %v397_v36 = vmul.f32 %v395_v55, %v354_v18 }
 0x447   :  { %399 = vrot.lane.b32.xlu2 %v391_v35, %s3001_s1  ;;  %v506_v35 = vrot.slane %v3186_v31, 6 }
 0x448   :  { %403 = vrot.lane.b32.xlu0 %v397_v36, %s3000_s0 }
 0x4a1   :  { %v400_v37 = vpop.permute.xlu2 %399 }
 0x4a2   :  { %408 = vst.msk [vmem:[#allocation2] sm:$0xc] %vm407_vm5, %v400_v37 }
 0x4ba   :  { %v404_v38 = vpop.permute.xlu0 %403 }
 0x4bb   :  { %v406_v39 = vsel %vm231_vm10, %v400_v37, %v404_v38  ;;  %410 = vst.msk [vmem:[#allocation2 + $0xa] sm:$0xc] %vm3671_vm6, %v404_v38 }
 0x4bc   :  { %v411_v40 = vpack.c.bf16 %v406_v39, %v406_v39 }
 0x4be   :  { %v413_v41 = vrot.slane %v411_v40, 1  ;;  %v492_v40 = vrot.slane %v3184_v30, 6 }
 0x4c0   :  { %2460 = vmatmul.msk.bf16.vlgmr.msrb.gmra.mxu0 %vm280_vm12, %v413_v41  ;;  %2461 = vmatmul.msk.bf16.vlgmr.msrb.gmra.mxu1 %vm280_vm12, %v413_v41 }
 0x4c1   :  { %946 = vmatpush.bf16.msrb.mxu0 %v3111_v60  ;;  %959 = vmatpush.bf16.msrb.mxu1 %v3113_v62 }
 0x4c5   :  { %947 = vmatpush.bf16.msrb.mxu0 %v3121_v6  ;;  %960 = vmatpush.bf16.msrb.mxu1 %v3123_v14 }
 0x4c9   :  { %948 = vmatpush.bf16.msrb.mxu0 %v3126_v19  ;;  %961 = vmatpush.bf16.msrb.mxu1 %v3130_v20 }
 0x4cd   :  { %949 = vmatpush.bf16.msrb.mxu0 %v3137_v24  ;;  %962 = vmatpush.bf16.msrb.mxu1 %v3139_v26 }
 0x53d   :  { %v426_v43 = vpop.f32.mrf.mxu0  ;;  %v439_v44 = vpop.f32.mrf.mxu1 }
 0x53e   :  { %v445_v45 = vrot.slane %v426_v43, 4  ;;  %v446_v46 = vrot.slane %v439_v44, 4 }
 0x540   :  { %v449_v47 = vadd.f32 %v445_v45, %v3086_v11  ;;  %v450_v48 = vadd.f32 %v446_v46, %v3095_v17 }
 0x542   :  { %2669 = vtanh.f32 %v449_v47  ;;  %v2463_v54 = vmul.f32 -1.442695, %v450_v48  ;;  %v2462_v59 = vmul.f32 -1.442695, %v449_v47 }
 0x543   :  { %2671 = vtanh.f32 %v450_v48 }
 0x544   :  { %2673 = vpow2.f32 %v2463_v54 }
 0x545   :  { %v428_v49 = vpop.f32.mrf.mxu0  ;;  %v441_v50 = vpop.f32.mrf.mxu1 }
 0x548   :  { %v2670_v52 = vpop.eup %2669 }
 0x549   :  { %v2672_v53 = vpop.eup %2671  ;;  %496 = vrot.lane.b32.xlu1 %v2670_v52, %s3000_s0 }
 0x54a   :  { %510 = vrot.lane.b32.xlu2 %v2672_v53, %s3000_s0  ;;  %v2674_v56 = vpop.eup %2673 }
 0x54b   :  { %v458_v57 = vadd.f32 1.0, %v2674_v56 }
 0x54d   :  { %2675 = vrcp.f32 %v458_v57  ;;  %v485_v3 = vand.u32 2147483648, %v458_v57  ;;  %vm479_vm8 = vweird.f32 %v458_v57  ;;  %v483_v4 = vand.u32 2147483647, %v458_v57 }
 0x54e   :  { %2677 = vpow2.f32 %v2462_v59 }
 0x54f   :  { %v486_v9 = vor.u32 1.1754944e-38, %v485_v3  ;;  %vm484_vm14 = vcmp.eq.f32.partialorder %v483_v4, 8.507059e+37 }
 0x553   :  { %v2676_v58 = vpop.eup %2675 }
 0x554   :  { %v475_v61 = vmul.f32 %v2676_v58, %v458_v57  ;;  %v2678_v63 = vpop.eup %2677  ;;  %vm480_vm7 = vweird.f32 %v2676_v58 }
 0x555   :  { %v457_v1 = vadd.f32 1.0, %v2678_v63  ;;  %vm481_vm13 = vmor %vm479_vm8, %vm480_vm7 }
 0x556   :  { %v476_v17 = vsub.f32 1.0, %v475_v61 }
 0x557   :  { %2679 = vrcp.f32 %v457_v1  ;;  %v470_v27 = vand.u32 2147483648, %v457_v1  ;;  %vm464_vm0 = vweird.f32 %v457_v1  ;;  %v468_v28 = vand.u32 2147483647, %v457_v1 }
 0x558   :  { %v477_v0 = vmul.f32 %v2676_v58, %v476_v17 }
 0x559   :  { %v471_v32 = vor.u32 1.1754944e-38, %v470_v27  ;;  %vm469_vm2 = vcmp.eq.f32.partialorder %v468_v28, 8.507059e+37 }
 0x55a   :  { %v478_v2 = vadd.f32 %v2676_v58, %v477_v0 }
 0x55c   :  { %v482_v5 = vsel %vm481_vm13, %v2676_v58, %v478_v2 }
 0x55d   :  { %v487_v12 = vsel %vm484_vm14, %v486_v9, %v482_v5  ;;  %v2680_v15 = vpop.eup %2679 }
 0x55e   :  { %v460_v21 = vmul.f32 %v2680_v15, %v457_v1  ;;  %vm465_vm15 = vweird.f32 %v2680_v15  ;;  %v508_v36 = vmul.f32 %v506_v35, %v487_v12 }
 0x55f   :  { %vm466_vm1 = vmor %vm464_vm0, %vm465_vm15 }
 0x560   :  { %v461_v22 = vsub.f32 1.0, %v460_v21 }
 0x562   :  { %v462_v23 = vmul.f32 %v2680_v15, %v461_v22 }
 0x564   :  { %v463_v25 = vadd.f32 %v2680_v15, %v462_v23 }
 0x566   :  { %v467_v29 = vsel %vm466_vm1, %v2680_v15, %v463_v25 }
 0x567   :  { %v472_v51 = vsel %vm469_vm2, %v471_v32, %v467_v29 }
 0x568   :  { %v494_v41 = vmul.f32 %v492_v40, %v472_v51 }
 0x5a4   :  { %v511_v10 = vpop.permute.xlu2 %510 }
 0x5a5   :  { %v513_v18 = vmul.f32 %v511_v10, %v487_v12 }
 0x5a7   :  { %515 = vrot.lane.b32.xlu1 %v513_v18, %s3001_s1 }
 0x5bb   :  { %v497_v34 = vpop.permute.xlu1 %496 }
 0x5bc   :  { %v499_v55 = vmul.f32 %v497_v34, %v472_v51 }
 0x5be   :  { %501 = vrot.lane.b32.xlu0 %v499_v55, %s3001_s1 }
 0x619   :  { %v516_v37 = vpop.permute.xlu1 %515 }
 0x61a   :  { %v3216_v38 = vadd.f32 %v516_v37, %v508_v36 }
 0x61c   :  { %2681 = vtanh.f32 %v3216_v38  ;;  %v639_v40 = vrot.slane %v3216_v38, 6 }
 0x622   :  { %v2682_v39 = vpop.eup %2681 }
 0x623   :  { %527 = vrot.lane.b32.xlu0 %v2682_v39, %s3000_s0 }
 0x630   :  { %v502_v43 = vpop.permute.xlu0 %501 }
 0x631   :  { %v3221_v44 = vadd.f32 %v502_v43, %v494_v41 }
 0x633   :  { %2683 = vtanh.f32 %v3221_v44  ;;  %v625_v55 = vrot.slane %v3221_v44, 6 }
 0x639   :  { %v2684_v45 = vpop.eup %2683 }
 0x63a   :  { %521 = vrot.lane.b32.xlu2 %v2684_v45, %s3000_s0 }
 0x694   :  { %v522_v31 = vpop.permute.xlu2 %521 }
 0x695   :  { %v528_v46 = vpop.permute.xlu0 %527  ;;  %v524_v47 = vmul.f32 %v522_v31, %v472_v51 }
 0x696   :  { %v530_v48 = vmul.f32 %v528_v46, %v487_v12 }
 0x697   :  { %532 = vrot.lane.b32.xlu1 %v524_v47, %s3001_s1 }
 0x698   :  { %536 = vrot.lane.b32.xlu2 %v530_v48, %s3000_s0 }
 0x6f2   :  { %v537_v49 = vpop.permute.xlu2 %536 }
 0x6f3   :  { %543 = vst.msk [vmem:[#allocation2 + $0x6] sm:$0x30] %vm542_vm3, %v537_v49 }
 0x709   :  { %v533_v30 = vpop.permute.xlu1 %532 }
 0x70a   :  { %v539_v50 = vsel %vm231_vm10, %v533_v30, %v537_v49  ;;  %541 = vst.msk [vmem:[#allocation2] sm:$0x30] %vm540_vm4, %v533_v30 }
 0x70b   :  { %v544_v52 = vpack.c.bf16 %v539_v50, %v539_v50 }
 0x70d   :  { %v546_v53 = vrot.slane %v544_v52, 2 }
 0x70f   :  { %2464 = vmatmul.msk.bf16.vlgmr.msrb.gmra.mxu2 %vm280_vm12, %v546_v53  ;;  %2465 = vmatmul.msk.bf16.vlgmr.msrb.gmra.mxu3 %vm280_vm12, %v546_v53  ;;  %v3267_v53 = vadd.f32 %v3207_v42, %v95_v8 }
 0x710   :  { %1090 = vmatpush.bf16.msrb.mxu3 %v3113_v62  ;;  %1077 = vmatpush.bf16.msrb.mxu2 %v3111_v60 }
 0x714   :  { %1091 = vmatpush.bf16.msrb.mxu3 %v3123_v14  ;;  %1078 = vmatpush.bf16.msrb.mxu2 %v3121_v6 }
 0x718   :  { %1092 = vmatpush.bf16.msrb.mxu3 %v3130_v20  ;;  %1079 = vmatpush.bf16.msrb.mxu2 %v3126_v19 }
 0x71c   :  { %1093 = vmatpush.bf16.msrb.mxu3 %v3139_v26  ;;  %1080 = vmatpush.bf16.msrb.mxu2 %v3137_v24 }
 0x792   :  { %v559_v54 = vpop.f32.mrf.mxu2  ;;  %v572_v56 = vpop.f32.mrf.mxu3 }
 0x793   :  { %v578_v57 = vrot.slane %v559_v54, 2  ;;  %v579_v58 = vrot.slane %v572_v56, 2  ;;  %v678_v54 = vrot.slane %v3088_v13, 6 }
 0x795   :  { %v582_v62 = vadd.f32 %v578_v57, %v3086_v11  ;;  %v583_v60 = vadd.f32 %v579_v58, %v237_v33 }
 0x797   :  { %2685 = vtanh.f32 %v582_v62  ;;  %v2466_v19 = vmul.f32 -1.442695, %v582_v62  ;;  %v2467_v24 = vmul.f32 -1.442695, %v583_v60 }
 0x798   :  { %2687 = vtanh.f32 %v583_v60 }
 0x799   :  { %2689 = vpow2.f32 %v2466_v19 }
 0x79a   :  { %v561_v6 = vpop.f32.mrf.mxu2  ;;  %v574_v14 = vpop.f32.mrf.mxu3  ;;  %2691 = vpow2.f32 %v2467_v24 }
 0x79d   :  { %v2686_v20 = vpop.eup %2685 }
 0x79e   :  { %v2688_v59 = vpop.eup %2687  ;;  %629 = vrot.lane.b32.xlu0 %v2686_v20, %s3000_s0 }
 0x79f   :  { %643 = vrot.lane.b32.xlu1 %v2688_v59, %s3000_s0  ;;  %v2690_v26 = vpop.eup %2689 }
 0x7a0   :  { %v2692_v61 = vpop.eup %2691  ;;  %v590_v11 = vadd.f32 1.0, %v2690_v26 }
 0x7a1   :  { %v591_v17 = vadd.f32 1.0, %v2692_v61 }
 0x7a2   :  { %2693 = vrcp.f32 %v590_v11  ;;  %v603_v10 = vand.u32 2147483648, %v590_v11  ;;  %vm597_vm13 = vweird.f32 %v590_v11  ;;  %v601_v15 = vand.u32 2147483647, %v590_v11 }
 0x7a3   :  { %2695 = vrcp.f32 %v591_v17  ;;  %v618_v12 = vand.u32 2147483648, %v591_v17  ;;  %vm612_vm14 = vweird.f32 %v591_v17  ;;  %v616_v18 = vand.u32 2147483647, %v591_v17 }
 0x7a4   :  { %v604_v23 = vor.u32 1.1754944e-38, %v603_v10  ;;  %vm602_vm1 = vcmp.eq.f32.partialorder %v601_v15, 8.507059e+37 }
 0x7a5   :  { %v619_v25 = vor.u32 1.1754944e-38, %v618_v12  ;;  %vm617_vm2 = vcmp.eq.f32.partialorder %v616_v18, 8.507059e+37 }
 0x7a8   :  { %v2694_v16 = vpop.eup %2693 }
 0x7a9   :  { %v2696_v33 = vpop.eup %2695  ;;  %v593_v63 = vmul.f32 %v2694_v16, %v590_v11  ;;  %vm598_vm7 = vweird.f32 %v2694_v16 }
 0x7aa   :  { %v608_v0 = vmul.f32 %v2696_v33, %v591_v17  ;;  %vm613_vm8 = vweird.f32 %v2696_v33  ;;  %vm599_vm15 = vmor %vm597_vm13, %vm598_vm7  ;;  %vm673_vm7 = vcmask 261126  }
 0x7ab   :  { %v594_v1 = vsub.f32 1.0, %v593_v63  ;;  %vm614_vm0 = vmor %vm612_vm14, %vm613_vm8  ;;  %vm3670_vm8 = vcmask 523526  }
 0x7ac   :  { %v609_v2 = vsub.f32 1.0, %v608_v0 }
 0x7ad   :  { %v595_v3 = vmul.f32 %v2694_v16, %v594_v1 }
 0x7ae   :  { %v610_v4 = vmul.f32 %v2696_v33, %v609_v2 }
 0x7af   :  { %v596_v5 = vadd.f32 %v2694_v16, %v595_v3 }
 0x7b0   :  { %v611_v9 = vadd.f32 %v2696_v33, %v610_v4 }
 0x7b1   :  { %v600_v21 = vsel %vm599_vm15, %v2694_v16, %v596_v5 }
 0x7b2   :  { %v615_v22 = vsel %vm614_vm0, %v2696_v33, %v611_v9  ;;  %v605_v28 = vsel %vm602_vm1, %v604_v23, %v600_v21 }
 0x7b3   :  { %v620_v32 = vsel %vm617_vm2, %v619_v25, %v615_v22  ;;  %v627_v35 = vmul.f32 %v625_v55, %v605_v28 }
 0x7b4   :  { %v641_v41 = vmul.f32 %v639_v40, %v620_v32 }
 0x810   :  { %v630_v27 = vpop.permute.xlu0 %629 }
 0x811   :  { %v644_v29 = vpop.permute.xlu1 %643  ;;  %v632_v34 = vmul.f32 %v630_v27, %v605_v28 }
 0x812   :  { %v646_v51 = vmul.f32 %v644_v29, %v620_v32 }
 0x813   :  { %634 = vrot.lane.b32.xlu2 %v632_v34, %s3001_s1 }
 0x814   :  { %648 = vrot.lane.b32.xlu0 %v646_v51, %s3001_s1 }
 0x86d   :  { %v635_v36 = vpop.permute.xlu2 %634 }
 0x86e   :  { %v3248_v37 = vadd.f32 %v635_v36, %v627_v35 }
 0x870   :  { %2697 = vtanh.f32 %v3248_v37  ;;  %v755_v29 = vrot.slane %v3248_v37, 6 }
 0x876   :  { %v2698_v39 = vpop.eup %2697 }
 0x877   :  { %654 = vrot.lane.b32.xlu1 %v2698_v39, %s3000_s0 }
 0x886   :  { %v649_v43 = vpop.permute.xlu0 %648 }
 0x887   :  { %v3253_v45 = vadd.f32 %v649_v43, %v641_v41 }
 0x889   :  { %2699 = vtanh.f32 %v3253_v45 }
 0x88f   :  { %v2700_v31 = vpop.eup %2699 }
 0x890   :  { %660 = vrot.lane.b32.xlu2 %v2700_v31, %s3000_s0 }
 0x8e9   :  { %v655_v44 = vpop.permute.xlu1 %654 }
 0x8ea   :  { %v661_v46 = vpop.permute.xlu2 %660  ;;  %v657_v47 = vmul.f32 %v655_v44, %v605_v28 }
 0x8eb   :  { %v663_v48 = vmul.f32 %v661_v46, %v620_v32  ;;  %v769_v32 = vrot.slane %v3253_v45, 6 }
 0x8ec   :  { %665 = vrot.lane.b32.xlu0 %v657_v47, %s3001_s1 }
 0x8ed   :  { %669 = vrot.lane.b32.xlu1 %v663_v48, %s3000_s0 }
 0x95e   :  { %v666_v38 = vpop.permute.xlu0 %665 }
 0x95f   :  { %674 = vst.msk [vmem:[#allocation2] sm:$0xc0] %vm673_vm7, %v666_v38  ;;  %v670_v49 = vpop.permute.xlu1 %669 }
 0x960   :  { %v672_v30 = vsel %vm231_vm10, %v666_v38, %v670_v49  ;;  %676 = vst.msk [vmem:[#allocation2 + $0x2] sm:$0xc0] %vm3670_vm8, %v670_v49 }
 0x961   :  { %v680_v50 = vpack.c.bf16 %v672_v30, %v672_v30  ;;  %v805_v30 = vrot.slane %v3088_v13, 2 }
 0x963   :  { %v682_v52 = vrot.slane %v680_v50, 3 }
 0x965   :  { %2468 = vmatmul.msk.bf16.vlgmr.msra.gmra.mxu0 %vm280_vm12, %v682_v52  ;;  %2469 = vmatmul.msk.bf16.vlgmr.msra.gmra.mxu1 %vm280_vm12, %v682_v52 }
 0x9e2   :  { %v695_v56 = vpop.f32.mrf.mxu0  ;;  %v708_v57 = vpop.f32.mrf.mxu1 }
 0x9e3   :  { %v712_v58 = vadd.f32 %v695_v56, %v3267_v53  ;;  %v713_v62 = vadd.f32 %v708_v57, %v678_v54 }
 0x9e5   :  { %2701 = vtanh.f32 %v712_v58  ;;  %v2470_v7 = vmul.f32 -1.442695, %v712_v58  ;;  %v2471_v19 = vmul.f32 -1.442695, %v713_v62 }
 0x9e6   :  { %2703 = vtanh.f32 %v713_v62 }
 0x9e7   :  { %2705 = vpow2.f32 %v2470_v7 }
 0x9ea   :  { %v697_v60 = vpop.f32.mrf.mxu0  ;;  %v710_v6 = vpop.f32.mrf.mxu1 }
 0x9eb   :  { %v2702_v14 = vpop.eup %2701 }
 0x9ec   :  { %v2704_v20 = vpop.eup %2703  ;;  %759 = vrot.lane.b32.xlu2 %v2702_v14, %s3000_s0 }
 0x9ed   :  { %773 = vrot.lane.b32.xlu0 %v2704_v20, %s3000_s0  ;;  %v2706_v8 = vpop.eup %2705 }
 0x9ee   :  { %v720_v42 = vadd.f32 1.0, %v2706_v8 }
 0x9f0   :  { %2707 = vrcp.f32 %v720_v42  ;;  %v733_v33 = vand.u32 2147483648, %v720_v42  ;;  %vm727_vm14 = vweird.f32 %v720_v42  ;;  %v731_v63 = vand.u32 2147483647, %v720_v42 }
 0x9f1   :  { %2709 = vpow2.f32 %v2471_v19 }
 0x9f2   :  { %v734_v1 = vor.u32 1.1754944e-38, %v733_v33  ;;  %vm732_vm0 = vcmp.eq.f32.partialorder %v731_v63, 8.507059e+37 }
 0x9f6   :  { %v2708_v59 = vpop.eup %2707 }
 0x9f7   :  { %v723_v24 = vmul.f32 %v2708_v59, %v720_v42  ;;  %v2710_v11 = vpop.eup %2709  ;;  %vm728_vm13 = vweird.f32 %v2708_v59 }
 0x9f8   :  { %v721_v17 = vadd.f32 1.0, %v2710_v11  ;;  %vm729_vm15 = vmor %vm727_vm14, %vm728_vm13 }
 0x9f9   :  { %v724_v26 = vsub.f32 1.0, %v723_v24 }
 0x9fa   :  { %2711 = vrcp.f32 %v721_v17  ;;  %v748_v18 = vand.u32 2147483648, %v721_v17  ;;  %vm742_vm2 = vweird.f32 %v721_v17  ;;  %v746_v21 = vand.u32 2147483647, %v721_v17 }
 0x9fb   :  { %v725_v61 = vmul.f32 %v2708_v59, %v724_v26 }
 0x9fc   :  { %v749_v23 = vor.u32 1.1754944e-38, %v748_v18  ;;  %vm747_vm13 = vcmp.eq.f32.partialorder %v746_v21, 8.507059e+37 }
 0x9fd   :  { %v726_v16 = vadd.f32 %v2708_v59, %v725_v61 }
 0x9ff   :  { %v730_v0 = vsel %vm729_vm15, %v2708_v59, %v726_v16 }
 0xa00   :  { %v735_v3 = vsel %vm732_vm0, %v734_v1, %v730_v0  ;;  %v2712_v5 = vpop.eup %2711 }
 0xa01   :  { %v738_v9 = vmul.f32 %v2712_v5, %v721_v17  ;;  %vm743_vm1 = vweird.f32 %v2712_v5  ;;  %v757_v34 = vmul.f32 %v755_v29, %v735_v3 }
 0xa02   :  { %vm744_vm8 = vmor %vm742_vm2, %vm743_vm1 }
 0xa03   :  { %v739_v10 = vsub.f32 1.0, %v738_v9 }
 0xa05   :  { %v740_v12 = vmul.f32 %v2712_v5, %v739_v10 }
 0xa07   :  { %v741_v15 = vadd.f32 %v2712_v5, %v740_v12 }
 0xa09   :  { %v745_v22 = vsel %vm744_vm8, %v2712_v5, %v741_v15 }
 0xa0a   :  { %v750_v27 = vsel %vm747_vm13, %v749_v23, %v745_v22 }
 0xa0b   :  { %v771_v55 = vmul.f32 %v769_v32, %v750_v27 }
 0xa46   :  { %v760_v2 = vpop.permute.xlu2 %759 }
 0xa47   :  { %v762_v4 = vmul.f32 %v760_v2, %v735_v3 }
 0xa49   :  { %764 = vrot.lane.b32.xlu1 %v762_v4, %s3001_s1 }
 0xa5f   :  { %v774_v25 = vpop.permute.xlu0 %773 }
 0xa60   :  { %v776_v28 = vmul.f32 %v774_v25, %v750_v27 }
 0xa62   :  { %778 = vrot.lane.b32.xlu2 %v776_v28, %s3001_s1 }
 0xabb   :  { %v765_v51 = vpop.permute.xlu1 %764 }
 0xabc   :  { %v3279_v35 = vadd.f32 %v765_v51, %v757_v34  ;;  %v779_v36 = vpop.permute.xlu2 %778 }
 0xabd   :  { %v3281_v39 = vadd.f32 %v779_v36, %v771_v55 }
 0xabe   :  { %2713 = vtanh.f32 %v3279_v35  ;;  %v886_v51 = vrot.slane %v3279_v35, 6 }
 0xabf   :  { %2715 = vtanh.f32 %v3281_v39 }
 0xac4   :  { %v2714_v40 = vpop.eup %2713 }
 0xac5   :  { %v2716_v41 = vpop.eup %2715  ;;  %784 = vrot.lane.b32.xlu0 %v2714_v40, %s3000_s0 }
 0xac6   :  { %790 = vrot.lane.b32.xlu1 %v2716_v41, %s3000_s0 }
 0xb37   :  { %v785_v37 = vpop.permute.xlu0 %784 }
 0xb38   :  { %v787_v43 = vmul.f32 %v785_v37, %v735_v3  ;;  %v791_v45 = vpop.permute.xlu1 %790 }
 0xb39   :  { %v793_v31 = vmul.f32 %v791_v45, %v750_v27  ;;  %v900_v27 = vrot.slane %v3281_v39, 6 }
 0xb3a   :  { %795 = vrot.lane.b32.xlu2 %v787_v43, %s3001_s1 }
 0xb3b   :  { %799 = vrot.lane.b32.xlu0 %v793_v31, %s3000_s0 }
 0xb94   :  { %v796_v44 = vpop.permute.xlu2 %795 }
 0xb95   :  { %803 = vst.msk [vmem:[#allocation2 + $0x8] sm:$0x3] %vm233_vm9, %v796_v44 }
 0xbad   :  { %v800_v46 = vpop.permute.xlu0 %799 }
 0xbae   :  { %v802_v47 = vsel %vm231_vm10, %v796_v44, %v800_v46  ;;  %804 = vst.msk [vmem:[#allocation2 + $0x6] sm:$0x3] %vm235_vm11, %v800_v46 }
 0xbaf   :  { %v807_v48 = vpack.c.bf16 %v802_v47, %v802_v47 }
 0xbb1   :  { %2472 = vmatmul.msk.bf16.vlgmr.msra.gmra.mxu2 %vm280_vm12, %v807_v48  ;;  %2473 = vmatmul.msk.bf16.vlgmr.msra.gmra.mxu3 %vm280_vm12, %v807_v48 }
 0xc34   :  { %v820_v38 = vpop.f32.mrf.mxu2  ;;  %v833_v49 = vpop.f32.mrf.mxu3 }
 0xc35   :  { %v839_v50 = vrot.slane %v820_v38, 6  ;;  %v840_v52 = vrot.slane %v833_v49, 6 }
 0xc37   :  { %v843_v56 = vadd.f32 %v839_v50, %v3267_v53  ;;  %v844_v57 = vadd.f32 %v840_v52, %v805_v30 }
 0xc39   :  { %2717 = vtanh.f32 %v843_v56  ;;  %v2475_v14 = vmul.f32 -1.442695, %v844_v57  ;;  %v2474_v42 = vmul.f32 -1.442695, %v843_v56 }
 0xc3a   :  { %2719 = vtanh.f32 %v844_v57 }
 0xc3b   :  { %2721 = vpow2.f32 %v2475_v14 }
 0xc3c   :  { %v822_v58 = vpop.f32.mrf.mxu2  ;;  %v835_v62 = vpop.f32.mrf.mxu3 }
 0xc3f   :  { %v2718_v60 = vpop.eup %2717 }
 0xc40   :  { %v2720_v6 = vpop.eup %2719  ;;  %890 = vrot.lane.b32.xlu1 %v2718_v60, %s3000_s0 }
 0xc41   :  { %904 = vrot.lane.b32.xlu2 %v2720_v6, %s3000_s0  ;;  %v2722_v20 = vpop.eup %2721 }
 0xc42   :  { %v852_v7 = vadd.f32 1.0, %v2722_v20 }
 0xc44   :  { %2723 = vrcp.f32 %v852_v7  ;;  %v879_v17 = vand.u32 2147483648, %v852_v7  ;;  %vm873_vm14 = vweird.f32 %v852_v7  ;;  %v877_v16 = vand.u32 2147483647, %v852_v7 }
 0xc45   :  { %2725 = vpow2.f32 %v2474_v42 }
 0xc46   :  { %v880_v63 = vor.u32 1.1754944e-38, %v879_v17  ;;  %vm878_vm0 = vcmp.eq.f32.partialorder %v877_v16, 8.507059e+37 }
 0xc4a   :  { %v2724_v8 = vpop.eup %2723 }
 0xc4b   :  { %v869_v59 = vmul.f32 %v2724_v8, %v852_v7  ;;  %v2726_v24 = vpop.eup %2725  ;;  %vm874_vm8 = vweird.f32 %v2724_v8 }
 0xc4c   :  { %v851_v61 = vadd.f32 1.0, %v2726_v24  ;;  %vm875_vm15 = vmor %vm873_vm14, %vm874_vm8 }
 0xc4d   :  { %v870_v19 = vsub.f32 1.0, %v869_v59 }
 0xc4e   :  { %2727 = vrcp.f32 %v851_v61  ;;  %v864_v12 = vand.u32 2147483648, %v851_v61  ;;  %vm858_vm2 = vweird.f32 %v851_v61  ;;  %v862_v15 = vand.u32 2147483647, %v851_v61 }
 0xc4f   :  { %v871_v26 = vmul.f32 %v2724_v8, %v870_v19 }
 0xc50   :  { %v865_v21 = vor.u32 1.1754944e-38, %v864_v12  ;;  %vm863_vm8 = vcmp.eq.f32.partialorder %v862_v15, 8.507059e+37 }
 0xc51   :  { %v872_v11 = vadd.f32 %v2724_v8, %v871_v26 }
 0xc53   :  { %v876_v33 = vsel %vm875_vm15, %v2724_v8, %v872_v11 }
 0xc54   :  { %v881_v1 = vsel %vm878_vm0, %v880_v63, %v876_v33  ;;  %v2728_v2 = vpop.eup %2727 }
 0xc55   :  { %v854_v4 = vmul.f32 %v2728_v2, %v851_v61  ;;  %vm859_vm1 = vweird.f32 %v2728_v2  ;;  %v902_v28 = vmul.f32 %v900_v27, %v881_v1 }
 0xc56   :  { %vm860_vm13 = vmor %vm858_vm2, %vm859_vm1 }
 0xc57   :  { %v855_v5 = vsub.f32 1.0, %v854_v4 }
 0xc59   :  { %v856_v9 = vmul.f32 %v2728_v2, %v855_v5 }
 0xc5b   :  { %v857_v10 = vadd.f32 %v2728_v2, %v856_v9 }
 0xc5d   :  { %v861_v18 = vsel %vm860_vm13, %v2728_v2, %v857_v10 }
 0xc5e   :  { %v866_v23 = vsel %vm863_vm8, %v865_v21, %v861_v18 }
 0xc5f   :  { %v888_v55 = vmul.f32 %v886_v51, %v866_v23 }
 0xc9b   :  { %v905_v0 = vpop.permute.xlu2 %904 }
 0xc9c   :  { %v907_v3 = vmul.f32 %v905_v0, %v881_v1 }
 0xc9e   :  { %909 = vrot.lane.b32.xlu1 %v907_v3, %s3001_s1 }
 0xcb2   :  { %v891_v22 = vpop.permute.xlu1 %890 }
 0xcb3   :  { %v893_v25 = vmul.f32 %v891_v22, %v866_v23 }
 0xcb5   :  { %895 = vrot.lane.b32.xlu0 %v893_v25, %s3001_s1 }
 0xd10   :  { %v910_v29 = vpop.permute.xlu1 %909 }
 0xd11   :  { %v3303_v32 = vadd.f32 %v910_v29, %v902_v28 }
 0xd13   :  { %2729 = vtanh.f32 %v3303_v32 }
 0xd19   :  { %v2730_v34 = vpop.eup %2729 }
 0xd1a   :  { %921 = vrot.lane.b32.xlu0 %v2730_v34, %s3000_s0  ;;  %v1031_v34 = vrot.slane %v3303_v32, 6 }
 0xd27   :  { %v896_v36 = vpop.permute.xlu0 %895 }
 0xd28   :  { %v3308_v40 = vadd.f32 %v896_v36, %v888_v55 }
 0xd2a   :  { %2731 = vtanh.f32 %v3308_v40 }
 0xd30   :  { %v2732_v41 = vpop.eup %2731 }
 0xd31   :  { %915 = vrot.lane.b32.xlu2 %v2732_v41, %s3000_s0 }
 0xd8b   :  { %v916_v39 = vpop.permute.xlu2 %915 }
 0xd8c   :  { %v922_v37 = vpop.permute.xlu0 %921  ;;  %v918_v43 = vmul.f32 %v916_v39, %v866_v23  ;;  %v1017_v23 = vrot.slane %v3308_v40, 6 }
 0xd8d   :  { %v924_v45 = vmul.f32 %v922_v37, %v881_v1 }
 0xd8e   :  { %926 = vrot.lane.b32.xlu1 %v918_v43, %s3001_s1 }
 0xd8f   :  { %930 = vrot.lane.b32.xlu2 %v924_v45, %s3000_s0 }
 0xde9   :  { %v931_v31 = vpop.permute.xlu2 %930 }
 0xdea   :  { %935 = vst.msk [vmem:[#allocation2 + $0x2] sm:$0xc] %vm3671_vm6, %v931_v31 }
 0xe00   :  { %v927_v35 = vpop.permute.xlu1 %926 }
 0xe01   :  { %v933_v44 = vsel %vm231_vm10, %v927_v35, %v931_v31  ;;  %934 = vst.msk [vmem:[#allocation2 + $0x8] sm:$0xc] %vm407_vm5, %v927_v35 }
 0xe02   :  { %v936_v46 = vpack.c.bf16 %v933_v44, %v933_v44 }
 0xe04   :  { %v938_v47 = vrot.slane %v936_v46, 1 }
 0xe06   :  { %2476 = vmatmul.msk.bf16.vlgmr.msrb.gmra.mxu0 %vm280_vm12, %v938_v47  ;;  %2477 = vmatmul.msk.bf16.vlgmr.msrb.gmra.mxu1 %vm280_vm12, %v938_v47 }
 0xe83   :  { %v951_v48 = vpop.f32.mrf.mxu0  ;;  %v964_v38 = vpop.f32.mrf.mxu1 }
 0xe84   :  { %v970_v49 = vrot.slane %v951_v48, 4  ;;  %v971_v50 = vrot.slane %v964_v38, 4 }
 0xe86   :  { %v974_v52 = vadd.f32 %v970_v49, %v3267_v53  ;;  %v975_v56 = vadd.f32 %v971_v50, %v678_v54 }
 0xe88   :  { %2733 = vtanh.f32 %v974_v52  ;;  %v2478_v6 = vmul.f32 -1.442695, %v974_v52  ;;  %v2479_v14 = vmul.f32 -1.442695, %v975_v56 }
 0xe89   :  { %2735 = vtanh.f32 %v975_v56 }
 0xe8a   :  { %2737 = vpow2.f32 %v2478_v6 }
 0xe8b   :  { %v953_v57 = vpop.f32.mrf.mxu0  ;;  %v966_v58 = vpop.f32.mrf.mxu1  ;;  %2739 = vpow2.f32 %v2479_v14 }
 0xe8e   :  { %v2734_v62 = vpop.eup %2733 }
 0xe8f   :  { %v2736_v60 = vpop.eup %2735  ;;  %1021 = vrot.lane.b32.xlu0 %v2734_v62, %s3000_s0 }
 0xe90   :  { %1035 = vrot.lane.b32.xlu1 %v2736_v60, %s3000_s0  ;;  %v2738_v20 = vpop.eup %2737 }
 0xe91   :  { %v2740_v7 = vpop.eup %2739  ;;  %v982_v8 = vadd.f32 1.0, %v2738_v20 }
 0xe92   :  { %v983_v42 = vadd.f32 1.0, %v2740_v7 }
 0xe93   :  { %2741 = vrcp.f32 %v982_v8  ;;  %v995_v63 = vand.u32 2147483648, %v982_v8  ;;  %vm989_vm0 = vweird.f32 %v982_v8  ;;  %v993_v1 = vand.u32 2147483647, %v982_v8 }
 0xe94   :  { %2743 = vrcp.f32 %v983_v42  ;;  %v1010_v0 = vand.u32 2147483648, %v983_v42  ;;  %vm1004_vm1 = vweird.f32 %v983_v42  ;;  %v1008_v2 = vand.u32 2147483647, %v983_v42 }
 0xe95   :  { %v996_v5 = vor.u32 1.1754944e-38, %v995_v63  ;;  %vm994_vm8 = vcmp.eq.f32.partialorder %v993_v1, 8.507059e+37 }
 0xe96   :  { %v1011_v9 = vor.u32 1.1754944e-38, %v1010_v0  ;;  %vm1009_vm6 = vcmp.eq.f32.partialorder %v1008_v2, 8.507059e+37 }
 0xe99   :  { %v2742_v54 = vpop.eup %2741 }
 0xe9a   :  { %v2744_v59 = vpop.eup %2743  ;;  %v985_v19 = vmul.f32 %v2742_v54, %v982_v8  ;;  %vm990_vm14 = vweird.f32 %v2742_v54 }
 0xe9b   :  { %v1000_v24 = vmul.f32 %v2744_v59, %v983_v42  ;;  %vm1005_vm15 = vweird.f32 %v2744_v59  ;;  %vm991_vm2 = vmor %vm989_vm0, %vm990_vm14 }
 0xe9c   :  { %v986_v26 = vsub.f32 1.0, %v985_v19  ;;  %vm1006_vm13 = vmor %vm1004_vm1, %vm1005_vm15 }
 0xe9d   :  { %v1001_v61 = vsub.f32 1.0, %v1000_v24 }
 0xe9e   :  { %v987_v11 = vmul.f32 %v2742_v54, %v986_v26 }
 0xe9f   :  { %v1002_v17 = vmul.f32 %v2744_v59, %v1001_v61 }
 0xea0   :  { %v988_v16 = vadd.f32 %v2742_v54, %v987_v11 }
 0xea1   :  { %v1003_v33 = vadd.f32 %v2744_v59, %v1002_v17 }
 0xea2   :  { %v992_v3 = vsel %vm991_vm2, %v2742_v54, %v988_v16 }
 0xea3   :  { %v1007_v4 = vsel %vm1006_vm13, %v2744_v59, %v1003_v33  ;;  %v997_v12 = vsel %vm994_vm8, %v996_v5, %v992_v3 }
 0xea4   :  { %v1012_v18 = vsel %vm1009_vm6, %v1011_v9, %v1007_v4  ;;  %v1019_v25 = vmul.f32 %v1017_v23, %v997_v12 }
 0xea5   :  { %v1033_v51 = vmul.f32 %v1031_v34, %v1012_v18 }
 0xf01   :  { %v1022_v10 = vpop.permute.xlu0 %1021 }
 0xf02   :  { %v1036_v15 = vpop.permute.xlu1 %1035  ;;  %v1024_v21 = vmul.f32 %v1022_v10, %v997_v12 }
 0xf03   :  { %v1038_v22 = vmul.f32 %v1036_v15, %v1012_v18 }
 0xf04   :  { %1026 = vrot.lane.b32.xlu2 %v1024_v21, %s3001_s1 }
 0xf05   :  { %1040 = vrot.lane.b32.xlu0 %v1038_v22, %s3001_s1 }
 0xf5e   :  { %v1027_v27 = vpop.permute.xlu2 %1026 }
 0xf5f   :  { %v3327_v28 = vadd.f32 %v1027_v27, %v1019_v25 }
 0xf61   :  { %2745 = vtanh.f32 %v3327_v28 }
 0xf67   :  { %v2746_v29 = vpop.eup %2745 }
 0xf68   :  { %1046 = vrot.lane.b32.xlu1 %v2746_v29, %s3000_s0 }
 0xf77   :  { %v1041_v55 = vpop.permute.xlu0 %1040 }
 0xf78   :  { %v3332_v36 = vadd.f32 %v1041_v55, %v1033_v51 }
 0xf7a   :  { %2747 = vtanh.f32 %v3332_v36  ;;  %v1162_v15 = vrot.slane %v3332_v36, 6  ;;  %v2510_v36 = vld [vmem:[#allocation6 + $0x30] sm:$0xf] }
 0xf80   :  { %v2748_v41 = vpop.eup %2747 }
 0xf81   :  { %1052 = vrot.lane.b32.xlu2 %v2748_v41, %s3000_s0 }
 0xfda   :  { %v1047_v40 = vpop.permute.xlu1 %1046 }
 0xfdb   :  { %v1053_v39 = vpop.permute.xlu2 %1052  ;;  %v1049_v37 = vmul.f32 %v1047_v40, %v997_v12  ;;  %v1148_v12 = vrot.slane %v3327_v28, 6  ;;  %v2615_v40 = vld [vmem:[#allocation6 + $0x34] sm:$0xf0] }
 0xfdc   :  { %v1055_v43 = vmul.f32 %v1053_v39, %v1012_v18  ;;  %v2614_v39 = vld [vmem:[#allocation6 + $0x34] sm:$0xf] }
 0xfdd   :  { %1057 = vrot.lane.b32.xlu0 %v1049_v37, %s3001_s1  ;;  %v2511_v37 = vor.u32 %v2615_v40, %v2510_v36 }
 0xfde   :  { %1061 = vrot.lane.b32.xlu1 %v1055_v43, %s3000_s0  ;;  %v2512_v43 = vld [vmem:[#allocation6 + $0x38] sm:$0xf0] }
 0xfdf   :  { %1269 = vmatpush.bf16.msra.mxu0 %v2511_v37 }
0x104f   :  { %v1058_v45 = vpop.permute.xlu0 %1057 }
0x1050   :  { %1065 = vst.msk [vmem:[#allocation2 + $0x8] sm:$0x30] %vm540_vm4, %v1058_v45  ;;  %v1062_v32 = vpop.permute.xlu1 %1061 }
0x1051   :  { %v1064_v31 = vsel %vm231_vm10, %v1058_v45, %v1062_v32  ;;  %1066 = vst.msk [vmem:[#allocation2 - $0x2] sm:$0x30] %vm542_vm3, %v1062_v32  ;;  %v2502_v45 = vld [vmem:[#allocation6 + $0x20] sm:$0xf]  ;;  %v2613_v32 = vld [vmem:[#allocation6 + $0x24] sm:$0xf0] }
0x1052   :  { %v1067_v35 = vpack.c.bf16 %v1064_v31, %v1064_v31  ;;  %v2515_v31 = vor.u32 %v2614_v39, %v2512_v43 }
0x1054   :  { %v1069_v44 = vrot.slane %v1067_v35, 2  ;;  %v2612_v35 = vld [vmem:[#allocation6 + $0x24] sm:$0xf]  ;;  %1283 = vmatpush.bf16.msra.mxu1 %v2515_v31 }
0x1056   :  { %2480 = vmatmul.msk.bf16.vlgmr.msrb.gmra.mxu2 %vm280_vm12, %v1069_v44  ;;  %2481 = vmatmul.msk.bf16.vlgmr.msrb.gmra.mxu3 %vm280_vm12, %v1069_v44  ;;  %v2504_v44 = vld [vmem:[#allocation6 + $0x28] sm:$0xf0] }
0x10d9   :  { %v1082_v46 = vpop.f32.mrf.mxu2  ;;  %v1095_v47 = vpop.f32.mrf.mxu3 }
0x10da   :  { %v1101_v48 = vrot.slane %v1082_v46, 2  ;;  %v1102_v38 = vrot.slane %v1095_v47, 2  ;;  %v2503_v46 = vor.u32 %v2613_v32, %v2502_v45  ;;  %v2507_v47 = vor.u32 %v2612_v35, %v2504_v44 }
0x10dc   :  { %v1105_v49 = vadd.f32 %v1101_v48, %v3267_v53  ;;  %v1106_v50 = vadd.f32 %v1102_v38, %v805_v30  ;;  %1270 = vmatpush.bf16.msra.mxu0 %v2503_v46  ;;  %1284 = vmatpush.bf16.msra.mxu1 %v2507_v47  ;;  %v2494_v48 = vld [vmem:[#allocation6 + $0x10] sm:$0xf]  ;;  %v2611_v38 = vld [vmem:[#allocation6 + $0x14] sm:$0xf0] }
0x10de   :  { %2749 = vtanh.f32 %v1105_v49  ;;  %v2482_v62 = vmul.f32 -1.442695, %v1105_v49  ;;  %v2483_v53 = vmul.f32 -1.442695, %v1106_v50  ;;  %v2610_v49 = vld [vmem:[#allocation6 + $0x14] sm:$0xf] }
0x10df   :  { %2751 = vtanh.f32 %v1106_v50  ;;  %v2495_v50 = vor.u32 %v2611_v38, %v2494_v48 }
0x10e0   :  { %2753 = vpow2.f32 %v2482_v62  ;;  %v2608_v62 = vld [vmem:[#allocation6 + $0x4] sm:$0xf] }
0x10e1   :  { %v1084_v52 = vpop.f32.mrf.mxu2  ;;  %v1097_v56 = vpop.f32.mrf.mxu3  ;;  %1271 = vmatpush.bf16.msra.mxu0 %v2495_v50 }
0x10e2   :  { %v2496_v52 = vld [vmem:[#allocation6 + $0x18] sm:$0xf0]  ;;  %v2486_v56 = vld [vmem:[#allocation6] sm:$0xf] }
0x10e4   :  { %v2750_v57 = vpop.eup %2749 }
0x10e5   :  { %v2752_v58 = vpop.eup %2751  ;;  %1152 = vrot.lane.b32.xlu2 %v2750_v57, %s3000_s0  ;;  %v2609_v57 = vld [vmem:[#allocation6 + $0x4] sm:$0xf0] }
0x10e6   :  { %1166 = vrot.lane.b32.xlu0 %v2752_v58, %s3000_s0  ;;  %v2754_v60 = vpop.eup %2753  ;;  %v2499_v58 = vor.u32 %v2610_v49, %v2496_v52 }
0x10e7   :  { %v1113_v6 = vadd.f32 1.0, %v2754_v60  ;;  %v2488_v60 = vld [vmem:[#allocation6 + $0x8] sm:$0xf0] }
0x10e8   :  { %1285 = vmatpush.bf16.msra.mxu1 %v2499_v58  ;;  %v2546_v58 = vld [vmem:[#allocation8 + $0x30] sm:$0xf] }
0x10e9   :  { %2755 = vrcp.f32 %v1113_v6  ;;  %v1126_v54 = vand.u32 2147483648, %v1113_v6  ;;  %vm1120_vm14 = vweird.f32 %v1113_v6  ;;  %v1124_v59 = vand.u32 2147483647, %v1113_v6 }
0x10ea   :  { %2757 = vpow2.f32 %v2483_v53 }
0x10eb   :  { %v1127_v24 = vor.u32 1.1754944e-38, %v1126_v54  ;;  %vm1125_vm0 = vcmp.eq.f32.partialorder %v1124_v59, 8.507059e+37 }
0x10ef   :  { %v2756_v14 = vpop.eup %2755 }
0x10f0   :  { %v1116_v20 = vmul.f32 %v2756_v14, %v1113_v6  ;;  %v2758_v7 = vpop.eup %2757  ;;  %vm1121_vm6 = vweird.f32 %v2756_v14  ;;  %v2487_v6 = vor.u32 %v2609_v57, %v2486_v56 }
0x10f1   :  { %v1114_v8 = vadd.f32 1.0, %v2758_v7  ;;  %vm1122_vm15 = vmor %vm1120_vm14, %vm1121_vm6  ;;  %vm3672_vm6 = vcmask 523526  }
0x10f2   :  { %v1117_v13 = vsub.f32 1.0, %v1116_v20  ;;  %1272 = vmatpush.bf16.msra.mxu0 %v2487_v6 }
0x10f3   :  { %2759 = vrcp.f32 %v1114_v8  ;;  %v1141_v1 = vand.u32 2147483648, %v1114_v8  ;;  %vm1135_vm2 = vweird.f32 %v1114_v8  ;;  %v1139_v2 = vand.u32 2147483647, %v1114_v8 }
0x10f4   :  { %v1118_v30 = vmul.f32 %v2756_v14, %v1117_v13 }
0x10f5   :  { %v1142_v4 = vor.u32 1.1754944e-38, %v1141_v1  ;;  %vm1140_vm8 = vcmp.eq.f32.partialorder %v1139_v2, 8.507059e+37 }
0x10f6   :  { %v1119_v42 = vadd.f32 %v2756_v14, %v1118_v30 }
0x10f8   :  { %v1123_v19 = vsel %vm1122_vm15, %v2756_v14, %v1119_v42  ;;  %v2491_v14 = vor.u32 %v2608_v62, %v2488_v60  ;;  %v2623_v62 = vld [vmem:[#allocation8 + $0x34] sm:$0xf0]  ;;  %v2622_v60 = vld [vmem:[#allocation8 + $0x34] sm:$0xf] }
0x10f9   :  { %v1128_v61 = vsel %vm1125_vm0, %v1127_v24, %v1123_v19  ;;  %v2760_v17 = vpop.eup %2759  ;;  %v3396_v6 = vor.u32 %v2623_v62, %v2546_v58 }
0x10fa   :  { %v1131_v16 = vmul.f32 %v2760_v17, %v1114_v8  ;;  %vm1136_vm1 = vweird.f32 %v2760_v17  ;;  %v1150_v18 = vmul.f32 %v1148_v12, %v1128_v61  ;;  %1286 = vmatpush.bf16.msra.mxu1 %v2491_v14  ;;  %v3363_v8 = vld [vmem:[%s3666_s6] sm:$0x3]  ;;  %v2548_v14 = vld [vmem:[#allocation8 + $0x38] sm:$0xf0] }
0x10fb   :  { %vm1137_vm13 = vmor %vm1135_vm2, %vm1136_vm1  ;;  %v1218_v42 = vperm.slane %v3363_v8, 0  ;;  %v1219_v54 = vperm.slane %v3363_v8, 1  ;;  %1431 = vmatpush.bf16.msra.mxu2 %v3396_v6  ;;  %1562 = vmatpush.bf16.msrb.mxu0 %v3396_v6 }
0x10fc   :  { %v1132_v33 = vsub.f32 1.0, %v1131_v16 }
0x10fe   :  { %v1133_v63 = vmul.f32 %v2760_v17, %v1132_v33 }
0x1100   :  { %v1134_v0 = vadd.f32 %v2760_v17, %v1133_v63 }
0x1102   :  { %v1138_v3 = vsel %vm1137_vm13, %v2760_v17, %v1134_v0 }
0x1103   :  { %v1143_v9 = vsel %vm1140_vm8, %v1142_v4, %v1138_v3 }
0x1104   :  { %v1164_v21 = vmul.f32 %v1162_v15, %v1143_v9 }
0x113f   :  { %v1153_v26 = vpop.permute.xlu2 %1152 }
0x1140   :  { %v1155_v11 = vmul.f32 %v1153_v26, %v1128_v61 }
0x1142   :  { %1157 = vrot.lane.b32.xlu1 %v1155_v11, %s3001_s1 }
0x1158   :  { %v1167_v5 = vpop.permute.xlu0 %1166 }
0x1159   :  { %v1169_v10 = vmul.f32 %v1167_v5, %v1143_v9 }
0x115b   :  { %1171 = vrot.lane.b32.xlu2 %v1169_v10, %s3001_s1 }
0x11b4   :  { %v1158_v22 = vpop.permute.xlu1 %1157 }
0x11b5   :  { %v1172_v23 = vpop.permute.xlu2 %1171  ;;  %v1160_v25 = vadd.f32 %v1158_v22, %v1150_v18 }
0x11b6   :  { %v1174_v27 = vadd.f32 %v1172_v23, %v1164_v21 }
0x11b7   :  { %2761 = vtanh.f32 %v1160_v25 }
0x11b8   :  { %2763 = vtanh.f32 %v1174_v27 }
0x11bd   :  { %v2762_v29 = vpop.eup %2761 }
0x11be   :  { %v2764_v34 = vpop.eup %2763  ;;  %1177 = vrot.lane.b32.xlu0 %v2762_v29, %s3000_s0 }
0x11bf   :  { %1183 = vrot.lane.b32.xlu1 %v2764_v34, %s3000_s0 }
0x1230   :  { %v1178_v51 = vpop.permute.xlu0 %1177 }
0x1231   :  { %v1184_v55 = vpop.permute.xlu1 %1183  ;;  %v1180_v41 = vmul.f32 %v1178_v51, %v1128_v61 }
0x1232   :  { %v1186_v28 = vmul.f32 %v1184_v55, %v1143_v9 }
0x1233   :  { %1188 = vrot.lane.b32.xlu2 %v1180_v41, %s3001_s1 }
0x1234   :  { %1193 = vrot.lane.b32.xlu0 %v1186_v28, %s3000_s0 }
0x128d   :  { %v1189_v53 = vpop.permute.xlu2 %1188 }
0x128e   :  { %1191 = vst.msk [vmem:[#allocation2 + $0x8] sm:$0xc0] %vm673_vm7, %v1189_v53  ;;  %v2538_v53 = vld [vmem:[#allocation8 + $0x20] sm:$0xf] }
0x1295   :  { %v1215_v30 = vld [vmem:[#allocation2 + $0x8] sm:$0xff] }
0x12a6   :  { %v1194_v20 = vpop.permute.xlu0 %1193 }
0x12a7   :  { %1196 = vst.msk [vmem:[#allocation2 - $0x6] sm:$0xc0] %vm3672_vm6, %v1194_v20  ;;  %v2621_v20 = vld [vmem:[#allocation8 + $0x24] sm:$0xf0] }
0x12ae   :  { %v1214_v13 = vld [vmem:[#allocation2] sm:$0xff] }
0x12af   :  { %v1216_v7 = vpack.c.bf16 %v1215_v30, %v1214_v13  ;;  %v3398_v13 = vor.u32 %v2622_v60, %v2548_v14  ;;  %v2620_v30 = vld [vmem:[#allocation8 + $0x24] sm:$0xf] }
0x12b1   :  { %2516 = vmatmul.msk.bf16.vlgmr.msra.gmra.mxu0 %vm280_vm12, %v1216_v7  ;;  %2517 = vmatmul.msk.bf16.vlgmr.msra.gmra.mxu1 %vm280_vm12, %v1216_v7  ;;  %v2540_v7 = vld [vmem:[#allocation8 + $0x28] sm:$0xf0] }
0x12b2   :  { %1444 = vmatpush.bf16.msra.mxu3 %v3398_v13  ;;  %1575 = vmatpush.bf16.msrb.mxu1 %v3398_v13 }
0x132e   :  { %v1274_v59 = vpop.f32.mrf.mxu0  ;;  %v1288_v19 = vpop.f32.mrf.mxu1 }
0x132f   :  { %v3369_v24 = vadd.f32 %v1274_v59, %v1218_v42  ;;  %v3371_v26 = vadd.f32 %v1288_v19, %v1219_v54  ;;  %v3405_v59 = vor.u32 %v2620_v30, %v2540_v7  ;;  %v2530_v19 = vld [vmem:[#allocation8 + $0x10] sm:$0xf] }
0x1331   :  { %2765 = vtanh.f32 %v3369_v24  ;;  %v2518_v2 = vmul.f32 -1.442695, %v3369_v24  ;;  %1445 = vmatpush.bf16.msra.mxu3 %v3405_v59  ;;  %1576 = vmatpush.bf16.msrb.mxu1 %v3405_v59 }
0x1336   :  { %v1290_v61 = vpop.f32.mrf.mxu1 }
0x1337   :  { %v2766_v11 = vpop.eup %2765  ;;  %v3374_v17 = vadd.f32 %v1290_v61, %v1219_v54  ;;  %v3401_v54 = vor.u32 %v2621_v20, %v2538_v53  ;;  %v2619_v61 = vld [vmem:[#allocation8 + $0x14] sm:$0xf0] }
0x1338   :  { %1338 = vrot.lane.b32.xlu1 %v2766_v11, %s3000_s0  ;;  %v2618_v11 = vld [vmem:[#allocation8 + $0x14] sm:$0xf] }
0x1339   :  { %v3378_v16 = vrot.slane %v3374_v17, 6  ;;  %1432 = vmatpush.bf16.msra.mxu2 %v3401_v54  ;;  %1563 = vmatpush.bf16.msrb.mxu0 %v3401_v54 }
0x133b   :  { %2767 = vtanh.f32 %v3378_v16  ;;  %v2519_v63 = vmul.f32 -1.442695, %v3378_v16 }
0x133d   :  { %2769 = vpow2.f32 %v2519_v63  ;;  %v3409_v63 = vor.u32 %v2619_v61, %v2530_v19 }
0x133f   :  { %1433 = vmatpush.bf16.msra.mxu2 %v3409_v63  ;;  %1564 = vmatpush.bf16.msrb.mxu0 %v3409_v63 }
0x1341   :  { %v2768_v33 = vpop.eup %2767 }
0x1342   :  { %1349 = vrot.lane.b32.xlu2 %v2768_v33, %s3000_s0  ;;  %v2532_v33 = vld [vmem:[#allocation8 + $0x18] sm:$0xf0] }
0x1343   :  { %v2770_v0 = vpop.eup %2769 }
0x1344   :  { %v1303_v1 = vadd.f32 1.0, %v2770_v0  ;;  %v3413_v0 = vor.u32 %v2618_v11, %v2532_v33 }
0x1346   :  { %2771 = vrcp.f32 %v1303_v1  ;;  %v1330_v21 = vand.u32 2147483648, %v1303_v1  ;;  %vm1324_vm15 = vweird.f32 %v1303_v1  ;;  %v1328_v22 = vand.u32 2147483647, %v1303_v1  ;;  %1446 = vmatpush.bf16.msra.mxu3 %v3413_v0  ;;  %1577 = vmatpush.bf16.msrb.mxu1 %v3413_v0 }
0x1347   :  { %2773 = vpow2.f32 %v2518_v2  ;;  %v2617_v2 = vld [vmem:[#allocation8 + $0x4] sm:$0xf0] }
0x1348   :  { %v1331_v27 = vor.u32 1.1754944e-38, %v1330_v21  ;;  %vm1329_vm1 = vcmp.eq.f32.partialorder %v1328_v22, 8.507059e+37 }
0x134c   :  { %v2772_v3 = vpop.eup %2771 }
0x134d   :  { %v2774_v4 = vpop.eup %2773  ;;  %v1320_v5 = vmul.f32 %v2772_v3, %v1303_v1  ;;  %vm1325_vm14 = vweird.f32 %v2772_v3  ;;  %v2522_v1 = vld [vmem:[#allocation8] sm:$0xf] }
0x134e   :  { %v1302_v9 = vadd.f32 1.0, %v2774_v4  ;;  %vm1326_vm0 = vmor %vm1324_vm15, %vm1325_vm14  ;;  %v2524_v4 = vld [vmem:[#allocation8 + $0x8] sm:$0xf0] }
0x134f   :  { %v1321_v10 = vsub.f32 1.0, %v1320_v5  ;;  %v3417_v5 = vor.u32 %v2617_v2, %v2522_v1 }
0x1350   :  { %2775 = vrcp.f32 %v1302_v9  ;;  %v1315_v36 = vand.u32 2147483648, %v1302_v9  ;;  %vm1309_vm13 = vweird.f32 %v1302_v9  ;;  %v1313_v40 = vand.u32 2147483647, %v1302_v9 }
0x1351   :  { %v1322_v12 = vmul.f32 %v2772_v3, %v1321_v10  ;;  %1434 = vmatpush.bf16.msra.mxu2 %v3417_v5  ;;  %1565 = vmatpush.bf16.msrb.mxu0 %v3417_v5 }
0x1352   :  { %v1316_v37 = vor.u32 1.1754944e-38, %v1315_v36  ;;  %vm1314_vm6 = vcmp.eq.f32.partialorder %v1313_v40, 8.507059e+37 }
0x1353   :  { %v1323_v18 = vadd.f32 %v2772_v3, %v1322_v12 }
0x1355   :  { %v1327_v25 = vsel %vm1326_vm0, %v2772_v3, %v1323_v18  ;;  %v2616_v3 = vld [vmem:[#allocation8 + $0x4] sm:$0xf]  ;;  %1693 = vmatpush.bf16.msrb.mxu2 %v3396_v6  ;;  %1827 = vmatpush.bf16.msra.mxu0 %v3396_v6 }
0x1356   :  { %v2776_v15 = vpop.eup %2775  ;;  %v1332_v51 = vsel %vm1329_vm1, %v1331_v27, %v1327_v25 }
0x1357   :  { %v1305_v23 = vmul.f32 %v2776_v15, %v1302_v9  ;;  %vm1310_vm2 = vweird.f32 %v2776_v15  ;;  %v1347_v31 = vmul.f32 0.0, %v1332_v51  ;;  %v3421_v9 = vor.u32 %v2616_v3, %v2524_v4 }
0x1358   :  { %vm1311_vm8 = vmor %vm1309_vm13, %vm1310_vm2 }
0x1359   :  { %v1306_v29 = vsub.f32 1.0, %v1305_v23  ;;  %1447 = vmatpush.bf16.msra.mxu3 %v3421_v9  ;;  %1578 = vmatpush.bf16.msrb.mxu1 %v3421_v9  ;;  %v1381_v23 = vrot.slane %v3374_v17, 2 }
0x135a   :  { %1694 = vmatpush.bf16.msrb.mxu2 %v3401_v54  ;;  %1828 = vmatpush.bf16.msra.mxu0 %v3401_v54 }
0x135b   :  { %v1307_v41 = vmul.f32 %v2776_v15, %v1306_v29 }
0x135d   :  { %v1308_v28 = vadd.f32 %v2776_v15, %v1307_v41  ;;  %1706 = vmatpush.bf16.msrb.mxu3 %v3398_v13  ;;  %1840 = vmatpush.bf16.msra.mxu1 %v3398_v13 }
0x135e   :  { %1695 = vmatpush.bf16.msrb.mxu2 %v3409_v63  ;;  %1829 = vmatpush.bf16.msra.mxu0 %v3409_v63 }
0x135f   :  { %v1312_v39 = vsel %vm1311_vm8, %v2776_v15, %v1308_v28 }
0x1360   :  { %v1317_v45 = vsel %vm1314_vm6, %v1316_v37, %v1312_v39 }
0x1361   :  { %v1336_v47 = vmul.f32 0.0, %v1317_v45  ;;  %1707 = vmatpush.bf16.msrb.mxu3 %v3405_v59  ;;  %1841 = vmatpush.bf16.msra.mxu1 %v3405_v59 }
0x1362   :  { %1696 = vmatpush.bf16.msrb.mxu2 %v3417_v5  ;;  %1830 = vmatpush.bf16.msra.mxu0 %v3417_v5 }
0x1365   :  { %1708 = vmatpush.bf16.msrb.mxu3 %v3413_v0  ;;  %1842 = vmatpush.bf16.msra.mxu1 %v3413_v0 }
0x1369   :  { %1709 = vmatpush.bf16.msrb.mxu3 %v3421_v9  ;;  %1843 = vmatpush.bf16.msra.mxu1 %v3421_v9 }
0x139c   :  { %v1350_v34 = vpop.permute.xlu2 %1349 }
0x139d   :  { %v1352_v55 = vmul.f32 %v1350_v34, %v1332_v51 }
0x139f   :  { %1354 = vrot.lane.b32.xlu1 %v1352_v55, %s3001_s1 }
0x13aa   :  { %v1339_v43 = vpop.permute.xlu1 %1338 }
0x13ab   :  { %v1341_v32 = vmul.f32 %v1339_v43, %v1317_v45 }
0x13ad   :  { %1343 = vrot.lane.b32.xlu0 %v1341_v32, %s3001_s1 }
0x1411   :  { %v1355_v35 = vpop.permute.xlu1 %1354 }
0x1412   :  { %v3386_v44 = vadd.f32 %v1355_v35, %v1347_v31 }
0x1414   :  { %2777 = vtanh.f32 %v3386_v44 }
0x141a   :  { %v2778_v46 = vpop.eup %2777 }
0x141b   :  { %1366 = vrot.lane.b32.xlu0 %v2778_v46, %s3000_s0 }
0x141f   :  { %v1344_v48 = vpop.permute.xlu0 %1343 }
0x1420   :  { %v3390_v38 = vadd.f32 %v1344_v48, %v1336_v47 }
0x1422   :  { %2779 = vtanh.f32 %v3390_v38  ;;  %v1502_v2 = vrot.slane %v3390_v38, 6 }
0x1428   :  { %v2780_v49 = vpop.eup %2779 }
0x1429   :  { %1360 = vrot.lane.b32.xlu2 %v2780_v49, %s3000_s0 }
0x1483   :  { %v1361_v50 = vpop.permute.xlu2 %1360 }
0x1484   :  { %v1363_v52 = vmul.f32 %v1361_v50, %v1317_v45 }
0x1486   :  { %1371 = vrot.lane.b32.xlu1 %v1363_v52, %s3001_s1 }
0x148d   :  { %v1367_v56 = vpop.permute.xlu0 %1366 }
0x148e   :  { %v1369_v57 = vmul.f32 %v1367_v56, %v1332_v51 }
0x1490   :  { %1375 = vrot.lane.b32.xlu2 %v1369_v57, %s3000_s0 }
0x14ea   :  { %v1376_v10 = vpop.permute.xlu2 %1375 }
0x14eb   :  { %1380 = vst.msk [vmem:[#allocation2 + $0xe] sm:$0x3] %vm235_vm11, %v1376_v10 }
0x14f8   :  { %v1372_v12 = vpop.permute.xlu1 %1371 }
0x14f9   :  { %v1378_v15 = vsel %vm231_vm10, %v1372_v12, %v1376_v10  ;;  %1379 = vst.msk [vmem:[#allocation2] sm:$0x3] %vm233_vm9, %v1372_v12 }
0x14fa   :  { %v1383_v18 = vpack.c.bf16 %v1378_v15, %v1378_v15  ;;  %v1516_v15 = vrot.slane %v3386_v44, 6 }
0x14fc   :  { %2552 = vmatmul.msk.bf16.vlgmr.msra.gmra.mxu2 %vm280_vm12, %v1383_v18  ;;  %2553 = vmatmul.msk.bf16.vlgmr.msra.gmra.mxu3 %vm280_vm12, %v1383_v18 }
0x14fd   :  { %1965 = vmatpush.bf16.msra.mxu3 %v3398_v13  ;;  %1952 = vmatpush.bf16.msra.mxu2 %v3396_v6 }
0x1501   :  { %1966 = vmatpush.bf16.msra.mxu3 %v3405_v59  ;;  %1953 = vmatpush.bf16.msra.mxu2 %v3401_v54 }
0x1505   :  { %1967 = vmatpush.bf16.msra.mxu3 %v3413_v0  ;;  %1954 = vmatpush.bf16.msra.mxu2 %v3409_v63 }
0x1509   :  { %1968 = vmatpush.bf16.msra.mxu3 %v3421_v9  ;;  %1955 = vmatpush.bf16.msra.mxu2 %v3417_v5 }
0x157f   :  { %v1436_v21 = vpop.f32.mrf.mxu2  ;;  %v1449_v22 = vpop.f32.mrf.mxu3 }
0x1580   :  { %v1455_v25 = vrot.slane %v1436_v21, 6  ;;  %v1456_v27 = vrot.slane %v1449_v22, 6 }
0x1582   :  { %v1459_v29 = vadd.f32 %v1455_v25, %v3369_v24  ;;  %v1460_v34 = vadd.f32 %v1456_v27, %v1381_v23 }
0x1584   :  { %2781 = vtanh.f32 %v1459_v29  ;;  %v2554_v36 = vmul.f32 -1.442695, %v1459_v29  ;;  %v2555_v40 = vmul.f32 -1.442695, %v1460_v34 }
0x1585   :  { %2783 = vtanh.f32 %v1460_v34 }
0x1586   :  { %2785 = vpow2.f32 %v2554_v36  ;;  %v3490_v36 = vpop.f32.mrf.mxu0 }
0x1587   :  { %v1438_v51 = vpop.f32.mrf.mxu2  ;;  %v1451_v55 = vpop.f32.mrf.mxu3  ;;  %2787 = vpow2.f32 %v2555_v40 }
0x158a   :  { %v2782_v41 = vpop.eup %2781 }
0x158b   :  { %v2784_v28 = vpop.eup %2783  ;;  %1506 = vrot.lane.b32.xlu0 %v2782_v41, %s3000_s0 }
0x158c   :  { %1520 = vrot.lane.b32.xlu1 %v2784_v28, %s3000_s0  ;;  %v2786_v39 = vpop.eup %2785 }
0x158d   :  { %v2788_v37 = vpop.eup %2787  ;;  %v1467_v43 = vadd.f32 1.0, %v2786_v39 }
0x158e   :  { %v1468_v45 = vadd.f32 1.0, %v2788_v37 }
0x158f   :  { %2789 = vrcp.f32 %v1467_v43  ;;  %v1480_v57 = vand.u32 2147483648, %v1467_v43  ;;  %vm1474_vm0 = vweird.f32 %v1467_v43  ;;  %v1478_v62 = vand.u32 2147483647, %v1467_v43 }
0x1590   :  { %2791 = vrcp.f32 %v1468_v45  ;;  %v1495_v58 = vand.u32 2147483648, %v1468_v45  ;;  %vm1489_vm1 = vweird.f32 %v1468_v45  ;;  %v1493_v60 = vand.u32 2147483647, %v1468_v45 }
0x1591   :  { %v1481_v20 = vor.u32 1.1754944e-38, %v1480_v57  ;;  %vm1479_vm8 = vcmp.eq.f32.partialorder %v1478_v62, 8.507059e+37 }
0x1592   :  { %v1496_v30 = vor.u32 1.1754944e-38, %v1495_v58  ;;  %vm1494_vm6 = vcmp.eq.f32.partialorder %v1493_v60, 8.507059e+37 }
0x1595   :  { %v2790_v32 = vpop.eup %2789 }
0x1596   :  { %v2792_v31 = vpop.eup %2791  ;;  %v1470_v35 = vmul.f32 %v2790_v32, %v1467_v43  ;;  %vm1475_vm14 = vweird.f32 %v2790_v32 }
0x1597   :  { %v1485_v46 = vmul.f32 %v2792_v31, %v1468_v45  ;;  %vm1490_vm15 = vweird.f32 %v2792_v31  ;;  %vm1476_vm2 = vmor %vm1474_vm0, %vm1475_vm14  ;;  %vm3673_vm14 = vcmask 519426  }
0x1598   :  { %v1471_v47 = vsub.f32 1.0, %v1470_v35  ;;  %vm1491_vm13 = vmor %vm1489_vm1, %vm1490_vm15 }
0x1599   :  { %v1486_v48 = vsub.f32 1.0, %v1485_v46 }
0x159a   :  { %v1472_v49 = vmul.f32 %v2790_v32, %v1471_v47 }
0x159b   :  { %v1487_v50 = vmul.f32 %v2792_v31, %v1486_v48 }
0x159c   :  { %v1473_v52 = vadd.f32 %v2790_v32, %v1472_v49 }
0x159d   :  { %v1488_v56 = vadd.f32 %v2792_v31, %v1487_v50 }
0x159e   :  { %v1477_v14 = vsel %vm1476_vm2, %v2790_v32, %v1473_v52 }
0x159f   :  { %v1492_v53 = vsel %vm1491_vm13, %v2792_v31, %v1488_v56  ;;  %v1482_v19 = vsel %vm1479_vm8, %v1481_v20, %v1477_v14 }
0x15a0   :  { %v1497_v11 = vsel %vm1494_vm6, %v1496_v30, %v1492_v53  ;;  %v1504_v3 = vmul.f32 %v1502_v2, %v1482_v19 }
0x15a1   :  { %v1518_v18 = vmul.f32 %v1516_v15, %v1497_v11 }
0x15fd   :  { %v1507_v7 = vpop.permute.xlu0 %1506 }
0x15fe   :  { %v1521_v61 = vpop.permute.xlu1 %1520  ;;  %v1509_v33 = vmul.f32 %v1507_v7, %v1482_v19 }
0x15ff   :  { %v1523_v1 = vmul.f32 %v1521_v61, %v1497_v11 }
0x1600   :  { %1511 = vrot.lane.b32.xlu2 %v1509_v33, %s3001_s1 }
0x1601   :  { %1525 = vrot.lane.b32.xlu0 %v1523_v1, %s3001_s1 }
0x165a   :  { %v1512_v4 = vpop.permute.xlu2 %1511 }
0x165b   :  { %v3466_v10 = vadd.f32 %v1512_v4, %v1504_v3 }
0x165d   :  { %2793 = vtanh.f32 %v3466_v10 }
0x1663   :  { %v2794_v12 = vpop.eup %2793 }
0x1664   :  { %1531 = vrot.lane.b32.xlu1 %v2794_v12, %s3000_s0 }
0x1673   :  { %v1526_v21 = vpop.permute.xlu0 %1525 }
0x1674   :  { %v3471_v22 = vadd.f32 %v1526_v21, %v1518_v18 }
0x1676   :  { %2795 = vtanh.f32 %v3471_v22 }
0x167c   :  { %v2796_v25 = vpop.eup %2795 }
0x167d   :  { %1537 = vrot.lane.b32.xlu2 %v2796_v25, %s3000_s0 }
0x16d6   :  { %v1532_v38 = vpop.permute.xlu1 %1531 }
0x16d7   :  { %v1538_v27 = vpop.permute.xlu2 %1537  ;;  %v1534_v29 = vmul.f32 %v1532_v38, %v1482_v19 }
0x16d8   :  { %v1540_v34 = vmul.f32 %v1538_v27, %v1497_v11 }
0x16d9   :  { %1542 = vrot.lane.b32.xlu0 %v1534_v29, %s3001_s1  ;;  %v1633_v29 = vrot.slane %v3466_v10, 6 }
0x16da   :  { %1546 = vrot.lane.b32.xlu1 %v1540_v34, %s3000_s0  ;;  %v1647_v34 = vrot.slane %v3471_v22, 6 }
0x174b   :  { %v1543_v51 = vpop.permute.xlu0 %1542 }
0x174c   :  { %1550 = vst.msk [vmem:[#allocation2] sm:$0xc] %vm407_vm5, %v1543_v51  ;;  %v1547_v44 = vpop.permute.xlu1 %1546 }
0x174d   :  { %v1549_v55 = vsel %vm231_vm10, %v1543_v51, %v1547_v44  ;;  %1551 = vst.msk [vmem:[#allocation2 + $0xa] sm:$0xc] %vm3673_vm14, %v1547_v44 }
0x174e   :  { %v1552_v41 = vpack.c.bf16 %v1549_v55, %v1549_v55 }
0x1750   :  { %v1554_v28 = vrot.slane %v1552_v41, 1 }
0x1752   :  { %2556 = vmatmul.msk.bf16.vlgmr.msrb.gmra.mxu0 %vm280_vm12, %v1554_v28  ;;  %2557 = vmatmul.msk.bf16.vlgmr.msrb.gmra.mxu1 %vm280_vm12, %v1554_v28 }
0x1753   :  { %2083 = vmatpush.bf16.msrb.mxu0 %v3396_v6  ;;  %2096 = vmatpush.bf16.msrb.mxu1 %v3398_v13 }
0x1757   :  { %2084 = vmatpush.bf16.msrb.mxu0 %v3401_v54  ;;  %2097 = vmatpush.bf16.msrb.mxu1 %v3405_v59 }
0x175b   :  { %2085 = vmatpush.bf16.msrb.mxu0 %v3409_v63  ;;  %2098 = vmatpush.bf16.msrb.mxu1 %v3413_v0 }
0x175f   :  { %2086 = vmatpush.bf16.msrb.mxu0 %v3417_v5  ;;  %2099 = vmatpush.bf16.msrb.mxu1 %v3421_v9 }
0x17cf   :  { %v1567_v40 = vpop.f32.mrf.mxu0  ;;  %v1580_v39 = vpop.f32.mrf.mxu1 }
0x17d0   :  { %v1586_v37 = vrot.slane %v1567_v40, 4  ;;  %v1587_v43 = vrot.slane %v1580_v39, 4 }
0x17d2   :  { %v1590_v45 = vadd.f32 %v1586_v37, %v3369_v24  ;;  %v1591_v32 = vadd.f32 %v1587_v43, %v3378_v16 }
0x17d4   :  { %2797 = vtanh.f32 %v1590_v45  ;;  %v2558_v48 = vmul.f32 -1.442695, %v1590_v45  ;;  %v2559_v56 = vmul.f32 -1.442695, %v1591_v32 }
0x17d5   :  { %2799 = vtanh.f32 %v1591_v32 }
0x17d6   :  { %2801 = vpow2.f32 %v2558_v48 }
0x17d7   :  { %v1569_v31 = vpop.f32.mrf.mxu0  ;;  %v1582_v35 = vpop.f32.mrf.mxu1 }
0x17da   :  { %v2798_v46 = vpop.eup %2797 }
0x17db   :  { %v2800_v47 = vpop.eup %2799  ;;  %1637 = vrot.lane.b32.xlu2 %v2798_v46, %s3000_s0 }
0x17dc   :  { %1651 = vrot.lane.b32.xlu0 %v2800_v47, %s3000_s0  ;;  %v2802_v49 = vpop.eup %2801 }
0x17dd   :  { %v1598_v50 = vadd.f32 1.0, %v2802_v49 }
0x17df   :  { %2803 = vrcp.f32 %v1598_v50  ;;  %v1611_v53 = vand.u32 2147483648, %v1598_v50  ;;  %vm1605_vm0 = vweird.f32 %v1598_v50  ;;  %v1609_v20 = vand.u32 2147483647, %v1598_v50 }
0x17e0   :  { %2805 = vpow2.f32 %v2559_v56 }
0x17e1   :  { %v1612_v7 = vor.u32 1.1754944e-38, %v1611_v53  ;;  %vm1610_vm2 = vcmp.eq.f32.partialorder %v1609_v20, 8.507059e+37 }
0x17e5   :  { %v2804_v52 = vpop.eup %2803 }
0x17e6   :  { %v1601_v57 = vmul.f32 %v2804_v52, %v1598_v50  ;;  %v2806_v62 = vpop.eup %2805  ;;  %vm1606_vm15 = vweird.f32 %v2804_v52 }
0x17e7   :  { %v1599_v60 = vadd.f32 1.0, %v2806_v62  ;;  %vm1607_vm1 = vmor %vm1605_vm0, %vm1606_vm15 }
0x17e8   :  { %v1602_v16 = vsub.f32 1.0, %v1601_v57 }
0x17e9   :  { %2807 = vrcp.f32 %v1599_v60  ;;  %v1626_v12 = vand.u32 2147483648, %v1599_v60  ;;  %vm1620_vm8 = vweird.f32 %v1599_v60  ;;  %v1624_v15 = vand.u32 2147483647, %v1599_v60 }
0x17ea   :  { %v1603_v58 = vmul.f32 %v2804_v52, %v1602_v16 }
0x17eb   :  { %v1627_v21 = vor.u32 1.1754944e-38, %v1626_v12  ;;  %vm1625_vm14 = vcmp.eq.f32.partialorder %v1624_v15, 8.507059e+37 }
0x17ec   :  { %v1604_v14 = vadd.f32 %v2804_v52, %v1603_v58 }
0x17ee   :  { %v1608_v30 = vsel %vm1607_vm1, %v2804_v52, %v1604_v14 }
0x17ef   :  { %v1613_v61 = vsel %vm1610_vm2, %v1612_v7, %v1608_v30  ;;  %v2808_v33 = vpop.eup %2807 }
0x17f0   :  { %v1616_v1 = vmul.f32 %v2808_v33, %v1599_v60  ;;  %vm1621_vm13 = vweird.f32 %v2808_v33  ;;  %v1635_v51 = vmul.f32 %v1633_v29, %v1613_v61 }
0x17f1   :  { %vm1622_vm6 = vmor %vm1620_vm8, %vm1621_vm13 }
0x17f2   :  { %v1617_v2 = vsub.f32 1.0, %v1616_v1 }
0x17f4   :  { %v1618_v3 = vmul.f32 %v2808_v33, %v1617_v2 }
0x17f6   :  { %v1619_v4 = vadd.f32 %v2808_v33, %v1618_v3 }
0x17f8   :  { %v1623_v18 = vsel %vm1622_vm6, %v2808_v33, %v1619_v4 }
0x17f9   :  { %v1628_v38 = vsel %vm1625_vm14, %v1627_v21, %v1623_v18 }
0x17fa   :  { %v1649_v44 = vmul.f32 %v1647_v34, %v1628_v38 }
0x1835   :  { %v1638_v19 = vpop.permute.xlu2 %1637 }
0x1836   :  { %v1640_v11 = vmul.f32 %v1638_v19, %v1613_v61 }
0x1838   :  { %1642 = vrot.lane.b32.xlu1 %v1640_v11, %s3001_s1 }
0x184e   :  { %v1652_v25 = vpop.permute.xlu0 %1651 }
0x184f   :  { %v1654_v27 = vmul.f32 %v1652_v25, %v1628_v38 }
0x1851   :  { %1656 = vrot.lane.b32.xlu2 %v1654_v27, %s3001_s1 }
0x18aa   :  { %v1643_v55 = vpop.permute.xlu1 %1642 }
0x18ab   :  { %v1657_v41 = vpop.permute.xlu2 %1656  ;;  %v3500_v28 = vadd.f32 %v1643_v55, %v1635_v51 }
0x18ac   :  { %v3502_v40 = vadd.f32 %v1657_v41, %v1649_v44 }
0x18ad   :  { %2809 = vtanh.f32 %v3500_v28  ;;  %v1764_v55 = vrot.slane %v3500_v28, 6 }
0x18ae   :  { %2811 = vtanh.f32 %v3502_v40  ;;  %v1778_v27 = vrot.slane %v3502_v40, 6 }
0x18b3   :  { %v2810_v39 = vpop.eup %2809 }
0x18b4   :  { %v2812_v37 = vpop.eup %2811  ;;  %1662 = vrot.lane.b32.xlu0 %v2810_v39, %s3000_s0 }
0x18b5   :  { %1668 = vrot.lane.b32.xlu1 %v2812_v37, %s3000_s0 }
0x1926   :  { %v1663_v10 = vpop.permute.xlu0 %1662 }
0x1927   :  { %v1669_v22 = vpop.permute.xlu1 %1668  ;;  %v1665_v43 = vmul.f32 %v1663_v10, %v1613_v61 }
0x1928   :  { %v1671_v45 = vmul.f32 %v1669_v22, %v1628_v38 }
0x1929   :  { %1673 = vrot.lane.b32.xlu2 %v1665_v43, %s3001_s1 }
0x192a   :  { %1677 = vrot.lane.b32.xlu0 %v1671_v45, %s3000_s0 }
0x1983   :  { %v1674_v32 = vpop.permute.xlu2 %1673 }
0x1984   :  { %1681 = vst.msk [vmem:[#allocation2] sm:$0x30] %vm540_vm4, %v1674_v32 }
0x199c   :  { %v1678_v31 = vpop.permute.xlu0 %1677 }
0x199d   :  { %v1680_v35 = vsel %vm231_vm10, %v1674_v32, %v1678_v31  ;;  %1682 = vst.msk [vmem:[#allocation2 + $0x6] sm:$0x30] %vm542_vm3, %v1678_v31 }
0x199e   :  { %v1683_v46 = vpack.c.bf16 %v1680_v35, %v1680_v35 }
0x19a0   :  { %v1685_v47 = vrot.slane %v1683_v46, 2 }
0x19a2   :  { %2560 = vmatmul.msk.bf16.vlgmr.msrb.gmra.mxu2 %vm280_vm12, %v1685_v47  ;;  %2561 = vmatmul.msk.bf16.vlgmr.msrb.gmra.mxu3 %vm280_vm12, %v1685_v47  ;;  %v3550_v47 = vadd.f32 %v3490_v36, %v1218_v42 }
0x19a3   :  { %2214 = vmatpush.bf16.msrb.mxu2 %v3396_v6  ;;  %2227 = vmatpush.bf16.msrb.mxu3 %v3398_v13 }
0x19a7   :  { %2215 = vmatpush.bf16.msrb.mxu2 %v3401_v54  ;;  %2228 = vmatpush.bf16.msrb.mxu3 %v3405_v59 }
0x19ab   :  { %2216 = vmatpush.bf16.msrb.mxu2 %v3409_v63  ;;  %2229 = vmatpush.bf16.msrb.mxu3 %v3413_v0 }
0x19af   :  { %2217 = vmatpush.bf16.msrb.mxu2 %v3417_v5  ;;  %2230 = vmatpush.bf16.msrb.mxu3 %v3421_v9 }
0x1a25   :  { %v1698_v48 = vpop.f32.mrf.mxu2  ;;  %v1711_v49 = vpop.f32.mrf.mxu3 }
0x1a26   :  { %v1717_v50 = vrot.slane %v1698_v48, 2  ;;  %v1718_v52 = vrot.slane %v1711_v49, 2  ;;  %v1815_v48 = vrot.slane %v3371_v26, 6 }
0x1a28   :  { %v1721_v6 = vadd.f32 %v1717_v50, %v3369_v24  ;;  %v1722_v13 = vadd.f32 %v1718_v52, %v1381_v23 }
0x1a2a   :  { %2813 = vtanh.f32 %v1721_v6  ;;  %v2563_v0 = vmul.f32 -1.442695, %v1722_v13  ;;  %v2562_v24 = vmul.f32 -1.442695, %v1721_v6 }
0x1a2b   :  { %2815 = vtanh.f32 %v1722_v13 }
0x1a2c   :  { %2817 = vpow2.f32 %v2563_v0 }
0x1a2d   :  { %v1700_v54 = vpop.f32.mrf.mxu2  ;;  %v1713_v59 = vpop.f32.mrf.mxu3 }
0x1a30   :  { %v2814_v63 = vpop.eup %2813 }
0x1a31   :  { %v2816_v56 = vpop.eup %2815  ;;  %1768 = vrot.lane.b32.xlu1 %v2814_v63, %s3000_s0 }
0x1a32   :  { %1782 = vrot.lane.b32.xlu2 %v2816_v56, %s3000_s0  ;;  %v2818_v5 = vpop.eup %2817 }
0x1a33   :  { %v1730_v9 = vadd.f32 1.0, %v2818_v5 }
0x1a35   :  { %2819 = vrcp.f32 %v1730_v9  ;;  %v1757_v14 = vand.u32 2147483648, %v1730_v9  ;;  %vm1751_vm0 = vweird.f32 %v1730_v9  ;;  %v1755_v53 = vand.u32 2147483647, %v1730_v9 }
0x1a36   :  { %2821 = vpow2.f32 %v2562_v24 }
0x1a37   :  { %v1758_v30 = vor.u32 1.1754944e-38, %v1757_v14  ;;  %vm1756_vm2 = vcmp.eq.f32.partialorder %v1755_v53, 8.507059e+37 }
0x1a3b   :  { %v2820_v57 = vpop.eup %2819 }
0x1a3c   :  { %v1747_v16 = vmul.f32 %v2820_v57, %v1730_v9  ;;  %v2822_v23 = vpop.eup %2821  ;;  %vm1752_vm15 = vweird.f32 %v2820_v57 }
0x1a3d   :  { %v1729_v62 = vadd.f32 1.0, %v2822_v23  ;;  %vm1753_vm1 = vmor %vm1751_vm0, %vm1752_vm15  ;;  %vm3674_vm15 = vcmask 523526  }
0x1a3e   :  { %v1748_v17 = vsub.f32 1.0, %v1747_v16 }
0x1a3f   :  { %2823 = vrcp.f32 %v1729_v62  ;;  %v1742_v4 = vand.u32 2147483648, %v1729_v62  ;;  %vm1736_vm8 = vweird.f32 %v1729_v62  ;;  %v1740_v12 = vand.u32 2147483647, %v1729_v62 }
0x1a40   :  { %v1749_v58 = vmul.f32 %v2820_v57, %v1748_v17 }
0x1a41   :  { %v1743_v18 = vor.u32 1.1754944e-38, %v1742_v4  ;;  %vm1741_vm14 = vcmp.eq.f32.partialorder %v1740_v12, 8.507059e+37 }
0x1a42   :  { %v1750_v60 = vadd.f32 %v2820_v57, %v1749_v58 }
0x1a44   :  { %v1754_v20 = vsel %vm1753_vm1, %v2820_v57, %v1750_v60 }
0x1a45   :  { %v1759_v19 = vsel %vm1756_vm2, %v1758_v30, %v1754_v20  ;;  %v2824_v61 = vpop.eup %2823 }
0x1a46   :  { %v1732_v33 = vmul.f32 %v2824_v61, %v1729_v62  ;;  %vm1737_vm13 = vweird.f32 %v2824_v61  ;;  %v1780_v29 = vmul.f32 %v1778_v27, %v1759_v19 }
0x1a47   :  { %vm1738_vm6 = vmor %vm1736_vm8, %vm1737_vm13 }
0x1a48   :  { %v1733_v1 = vsub.f32 1.0, %v1732_v33 }
0x1a4a   :  { %v1734_v2 = vmul.f32 %v2824_v61, %v1733_v1 }
0x1a4c   :  { %v1735_v3 = vadd.f32 %v2824_v61, %v1734_v2 }
0x1a4e   :  { %v1739_v15 = vsel %vm1738_vm6, %v2824_v61, %v1735_v3 }
0x1a4f   :  { %v1744_v25 = vsel %vm1741_vm14, %v1743_v18, %v1739_v15 }
0x1a50   :  { %v1766_v41 = vmul.f32 %v1764_v55, %v1744_v25 }
0x1a8c   :  { %v1783_v7 = vpop.permute.xlu2 %1782 }
0x1a8d   :  { %v1785_v11 = vmul.f32 %v1783_v7, %v1759_v19 }
0x1a8f   :  { %1787 = vrot.lane.b32.xlu1 %v1785_v11, %s3001_s1 }
0x1aa3   :  { %v1769_v21 = vpop.permute.xlu1 %1768 }
0x1aa4   :  { %v1771_v38 = vmul.f32 %v1769_v21, %v1744_v25 }
0x1aa6   :  { %1773 = vrot.lane.b32.xlu0 %v1771_v38, %s3001_s1 }
0x1b01   :  { %v1788_v34 = vpop.permute.xlu1 %1787 }
0x1b02   :  { %v3531_v51 = vadd.f32 %v1788_v34, %v1780_v29 }
0x1b04   :  { %2825 = vtanh.f32 %v3531_v51  ;;  %v1906_v29 = vrot.slane %v3531_v51, 6 }
0x1b0a   :  { %v2826_v44 = vpop.eup %2825 }
0x1b0b   :  { %1799 = vrot.lane.b32.xlu0 %v2826_v44, %s3000_s0 }
0x1b18   :  { %v1774_v39 = vpop.permute.xlu0 %1773 }
0x1b19   :  { %v3536_v37 = vadd.f32 %v1774_v39, %v1766_v41 }
0x1b1b   :  { %2827 = vtanh.f32 %v3536_v37  ;;  %v1892_v18 = vrot.slane %v3536_v37, 6 }
0x1b21   :  { %v2828_v10 = vpop.eup %2827 }
0x1b22   :  { %1793 = vrot.lane.b32.xlu2 %v2828_v10, %s3000_s0 }
0x1b7c   :  { %v1794_v40 = vpop.permute.xlu2 %1793 }
0x1b7d   :  { %v1800_v22 = vpop.permute.xlu0 %1799  ;;  %v1796_v43 = vmul.f32 %v1794_v40, %v1744_v25 }
0x1b7e   :  { %v1802_v45 = vmul.f32 %v1800_v22, %v1759_v19 }
0x1b7f   :  { %1804 = vrot.lane.b32.xlu1 %v1796_v43, %s3001_s1 }
0x1b80   :  { %1808 = vrot.lane.b32.xlu2 %v1802_v45, %s3000_s0 }
0x1bda   :  { %v1809_v32 = vpop.permute.xlu2 %1808 }
0x1bdb   :  { %1813 = vst.msk [vmem:[#allocation2 + $0x2] sm:$0xc0] %vm3674_vm15, %v1809_v32 }
0x1bf1   :  { %v1805_v28 = vpop.permute.xlu1 %1804 }
0x1bf2   :  { %v1811_v31 = vsel %vm231_vm10, %v1805_v28, %v1809_v32  ;;  %1812 = vst.msk [vmem:[#allocation2] sm:$0xc0] %vm673_vm7, %v1805_v28 }
0x1bf3   :  { %v1817_v35 = vpack.c.bf16 %v1811_v31, %v1811_v31  ;;  %v1942_v31 = vrot.slane %v3371_v26, 2 }
0x1bf5   :  { %v1819_v46 = vrot.slane %v1817_v35, 3 }
0x1bf7   :  { %2564 = vmatmul.msk.bf16.vlgmr.msra.gmra.mxu0 %vm280_vm12, %v1819_v46  ;;  %2565 = vmatmul.msk.bf16.vlgmr.msra.gmra.mxu1 %vm280_vm12, %v1819_v46 }
0x1c74   :  { %v1832_v49 = vpop.f32.mrf.mxu0  ;;  %v1845_v50 = vpop.f32.mrf.mxu1 }
0x1c75   :  { %v1849_v52 = vadd.f32 %v1832_v49, %v3550_v47  ;;  %v1850_v6 = vadd.f32 %v1845_v50, %v1815_v48 }
0x1c77   :  { %2829 = vtanh.f32 %v1849_v52  ;;  %v2566_v8 = vmul.f32 -1.442695, %v1849_v52  ;;  %v2567_v42 = vmul.f32 -1.442695, %v1850_v6 }
0x1c78   :  { %2831 = vtanh.f32 %v1850_v6 }
0x1c79   :  { %2833 = vpow2.f32 %v2566_v8 }
0x1c7a   :  { %2835 = vpow2.f32 %v2567_v42 }
0x1c7c   :  { %v1834_v13 = vpop.f32.mrf.mxu0  ;;  %v1847_v54 = vpop.f32.mrf.mxu1 }
0x1c7d   :  { %v2830_v59 = vpop.eup %2829 }
0x1c7e   :  { %v2832_v63 = vpop.eup %2831  ;;  %1896 = vrot.lane.b32.xlu0 %v2830_v59, %s3000_s0 }
0x1c7f   :  { %1910 = vrot.lane.b32.xlu1 %v2832_v63, %s3000_s0  ;;  %v2834_v36 = vpop.eup %2833 }
0x1c80   :  { %v2836_v56 = vpop.eup %2835  ;;  %v1857_v0 = vadd.f32 1.0, %v2834_v36 }
0x1c81   :  { %v1858_v5 = vadd.f32 1.0, %v2836_v56 }
0x1c82   :  { %2837 = vrcp.f32 %v1857_v0  ;;  %v1870_v53 = vand.u32 2147483648, %v1857_v0  ;;  %vm1864_vm2 = vweird.f32 %v1857_v0  ;;  %v1868_v30 = vand.u32 2147483647, %v1857_v0 }
0x1c83   :  { %2839 = vrcp.f32 %v1858_v5  ;;  %v1885_v20 = vand.u32 2147483648, %v1858_v5  ;;  %vm1879_vm13 = vweird.f32 %v1858_v5  ;;  %v1883_v7 = vand.u32 2147483647, %v1858_v5 }
0x1c84   :  { %v1871_v11 = vor.u32 1.1754944e-38, %v1870_v53  ;;  %vm1869_vm14 = vcmp.eq.f32.partialorder %v1868_v30, 8.507059e+37 }
0x1c85   :  { %v1886_v33 = vor.u32 1.1754944e-38, %v1885_v20  ;;  %vm1884_vm15 = vcmp.eq.f32.partialorder %v1883_v7, 8.507059e+37 }
0x1c88   :  { %v2838_v9 = vpop.eup %2837 }
0x1c89   :  { %v2840_v57 = vpop.eup %2839  ;;  %v1860_v24 = vmul.f32 %v2838_v9, %v1857_v0  ;;  %vm1865_vm0 = vweird.f32 %v2838_v9 }
0x1c8a   :  { %v1875_v16 = vmul.f32 %v2840_v57, %v1858_v5  ;;  %vm1880_vm1 = vweird.f32 %v2840_v57  ;;  %vm1866_vm8 = vmor %vm1864_vm2, %vm1865_vm0 }
0x1c8b   :  { %v1861_v17 = vsub.f32 1.0, %v1860_v24  ;;  %vm1881_vm6 = vmor %vm1879_vm13, %vm1880_vm1 }
0x1c8c   :  { %v1876_v23 = vsub.f32 1.0, %v1875_v16 }
0x1c8d   :  { %v1862_v58 = vmul.f32 %v2838_v9, %v1861_v17 }
0x1c8e   :  { %v1877_v62 = vmul.f32 %v2840_v57, %v1876_v23 }
0x1c8f   :  { %v1863_v60 = vadd.f32 %v2838_v9, %v1862_v58 }
0x1c90   :  { %v1878_v14 = vadd.f32 %v2840_v57, %v1877_v62 }
0x1c91   :  { %v1867_v19 = vsel %vm1866_vm8, %v2838_v9, %v1863_v60 }
0x1c92   :  { %v1882_v61 = vsel %vm1881_vm6, %v2840_v57, %v1878_v14  ;;  %v1872_v2 = vsel %vm1869_vm14, %v1871_v11, %v1867_v19  ;;  %vm3675_vm14 = vcmask 519426  }
0x1c93   :  { %v1887_v4 = vsel %vm1884_vm15, %v1886_v33, %v1882_v61  ;;  %v1894_v21 = vmul.f32 %v1892_v18, %v1872_v2 }
0x1c94   :  { %v1908_v34 = vmul.f32 %v1906_v29, %v1887_v4 }
0x1cf0   :  { %v1897_v1 = vpop.permute.xlu0 %1896 }
0x1cf1   :  { %v1911_v3 = vpop.permute.xlu1 %1910  ;;  %v1899_v12 = vmul.f32 %v1897_v1, %v1872_v2 }
0x1cf2   :  { %v1913_v15 = vmul.f32 %v1911_v3, %v1887_v4 }
0x1cf3   :  { %1901 = vrot.lane.b32.xlu2 %v1899_v12, %s3001_s1 }
0x1cf4   :  { %1915 = vrot.lane.b32.xlu0 %v1913_v15, %s3001_s1 }
0x1d4d   :  { %v1902_v25 = vpop.permute.xlu2 %1901 }
0x1d4e   :  { %v3561_v38 = vadd.f32 %v1902_v25, %v1894_v21 }
0x1d50   :  { %2841 = vtanh.f32 %v3561_v38  ;;  %v2023_v12 = vrot.slane %v3561_v38, 6 }
0x1d56   :  { %v2842_v27 = vpop.eup %2841 }
0x1d57   :  { %1921 = vrot.lane.b32.xlu1 %v2842_v27, %s3000_s0 }
0x1d66   :  { %v1916_v44 = vpop.permute.xlu0 %1915 }
0x1d67   :  { %v3566_v55 = vadd.f32 %v1916_v44, %v1908_v34 }
0x1d69   :  { %2843 = vtanh.f32 %v3566_v55  ;;  %v2037_v15 = vrot.slane %v3566_v55, 6 }
0x1d6f   :  { %v2844_v41 = vpop.eup %2843 }
0x1d70   :  { %1927 = vrot.lane.b32.xlu2 %v2844_v41, %s3000_s0 }
0x1dc9   :  { %v1922_v39 = vpop.permute.xlu1 %1921 }
0x1dca   :  { %v1928_v37 = vpop.permute.xlu2 %1927  ;;  %v1924_v10 = vmul.f32 %v1922_v39, %v1872_v2 }
0x1dcb   :  { %v1930_v40 = vmul.f32 %v1928_v37, %v1887_v4 }
0x1dcc   :  { %1932 = vrot.lane.b32.xlu0 %v1924_v10, %s3001_s1 }
0x1dcd   :  { %1936 = vrot.lane.b32.xlu1 %v1930_v40, %s3000_s0 }
0x1e3e   :  { %v1933_v22 = vpop.permute.xlu0 %1932 }
0x1e3f   :  { %1940 = vst.msk [vmem:[#allocation2 + $0x8] sm:$0x3] %vm233_vm9, %v1933_v22  ;;  %v1937_v51 = vpop.permute.xlu1 %1936 }
0x1e40   :  { %v1939_v43 = vsel %vm231_vm10, %v1933_v22, %v1937_v51  ;;  %1941 = vst.msk [vmem:[#allocation2 + $0x6] sm:$0x3] %vm235_vm11, %v1937_v51 }
0x1e41   :  { %v1944_v45 = vpack.c.bf16 %v1939_v43, %v1939_v43 }
0x1e43   :  { %2568 = vmatmul.msk.bf16.vlgmr.msra.gmra.mxu2 %vm280_vm12, %v1944_v45  ;;  %2569 = vmatmul.msk.bf16.vlgmr.msra.gmra.mxu3 %vm280_vm12, %v1944_v45 }
0x1ec6   :  { %v1957_v32 = vpop.f32.mrf.mxu2  ;;  %v1970_v28 = vpop.f32.mrf.mxu3 }
0x1ec7   :  { %v1976_v35 = vrot.slane %v1957_v32, 6  ;;  %v1977_v46 = vrot.slane %v1970_v28, 6 }
0x1ec9   :  { %v1980_v49 = vadd.f32 %v1976_v35, %v3550_v47  ;;  %v1981_v50 = vadd.f32 %v1977_v46, %v1942_v31 }
0x1ecb   :  { %2845 = vtanh.f32 %v1980_v49  ;;  %v2570_v59 = vmul.f32 -1.442695, %v1980_v49  ;;  %v2571_v36 = vmul.f32 -1.442695, %v1981_v50 }
0x1ecc   :  { %2847 = vtanh.f32 %v1981_v50 }
0x1ecd   :  { %2849 = vpow2.f32 %v2570_v59 }
0x1ece   :  { %v1959_v52 = vpop.f32.mrf.mxu2  ;;  %v1972_v6 = vpop.f32.mrf.mxu3 }
0x1ed1   :  { %v2846_v13 = vpop.eup %2845 }
0x1ed2   :  { %v2848_v54 = vpop.eup %2847  ;;  %2027 = vrot.lane.b32.xlu2 %v2846_v13, %s3000_s0 }
0x1ed3   :  { %2041 = vrot.lane.b32.xlu0 %v2848_v54, %s3000_s0  ;;  %v2850_v63 = vpop.eup %2849 }
0x1ed4   :  { %v1988_v8 = vadd.f32 1.0, %v2850_v63 }
0x1ed6   :  { %2851 = vrcp.f32 %v1988_v8  ;;  %v2001_v16 = vand.u32 2147483648, %v1988_v8  ;;  %vm1995_vm11 = vweird.f32 %v1988_v8  ;;  %v1999_v17 = vand.u32 2147483647, %v1988_v8 }
0x1ed7   :  { %2853 = vpow2.f32 %v2571_v36 }
0x1ed8   :  { %v2002_v58 = vor.u32 1.1754944e-38, %v2001_v16  ;;  %vm2000_vm1 = vcmp.eq.f32.partialorder %v1999_v17, 8.507059e+37 }
0x1edc   :  { %v2852_v42 = vpop.eup %2851 }
0x1edd   :  { %v1991_v56 = vmul.f32 %v2852_v42, %v1988_v8  ;;  %v2854_v9 = vpop.eup %2853  ;;  %vm1996_vm9 = vweird.f32 %v2852_v42 }
0x1ede   :  { %v1989_v57 = vadd.f32 1.0, %v2854_v9  ;;  %vm1997_vm0 = vmor %vm1995_vm11, %vm1996_vm9 }
0x1edf   :  { %v1992_v0 = vsub.f32 1.0, %v1991_v56 }
0x1ee0   :  { %2855 = vrcp.f32 %v1989_v57  ;;  %v2016_v61 = vand.u32 2147483648, %v1989_v57  ;;  %vm2010_vm13 = vweird.f32 %v1989_v57  ;;  %v2014_v11 = vand.u32 2147483647, %v1989_v57 }
0x1ee1   :  { %v1993_v5 = vmul.f32 %v2852_v42, %v1992_v0 }
0x1ee2   :  { %v2017_v1 = vor.u32 1.1754944e-38, %v2016_v61  ;;  %vm2015_vm6 = vcmp.eq.f32.partialorder %v2014_v11, 8.507059e+37 }
0x1ee3   :  { %v1994_v24 = vadd.f32 %v2852_v42, %v1993_v5 }
0x1ee5   :  { %v1998_v23 = vsel %vm1997_vm0, %v2852_v42, %v1994_v24 }
0x1ee6   :  { %v2003_v60 = vsel %vm2000_vm1, %v2002_v58, %v1998_v23  ;;  %v2856_v53 = vpop.eup %2855 }
0x1ee7   :  { %v2006_v20 = vmul.f32 %v2856_v53, %v1989_v57  ;;  %vm2011_vm2 = vweird.f32 %v2856_v53  ;;  %v2025_v18 = vmul.f32 %v2023_v12, %v2003_v60 }
0x1ee8   :  { %vm2012_vm8 = vmor %vm2010_vm13, %vm2011_vm2 }
0x1ee9   :  { %v2007_v30 = vsub.f32 1.0, %v2006_v20 }
0x1eeb   :  { %v2008_v7 = vmul.f32 %v2856_v53, %v2007_v30 }
0x1eed   :  { %v2009_v19 = vadd.f32 %v2856_v53, %v2008_v7 }
0x1eef   :  { %v2013_v33 = vsel %vm2012_vm8, %v2856_v53, %v2009_v19 }
0x1ef0   :  { %v2018_v3 = vsel %vm2015_vm6, %v2017_v1, %v2013_v33 }
0x1ef1   :  { %v2039_v21 = vmul.f32 %v2037_v15, %v2018_v3 }
0x1f2c   :  { %v2028_v62 = vpop.permute.xlu2 %2027 }
0x1f2d   :  { %v2030_v14 = vmul.f32 %v2028_v62, %v2003_v60 }
0x1f2f   :  { %2032 = vrot.lane.b32.xlu1 %v2030_v14, %s3001_s1 }
0x1f45   :  { %v2042_v2 = vpop.permute.xlu0 %2041 }
0x1f46   :  { %v2044_v4 = vmul.f32 %v2042_v2, %v2018_v3 }
0x1f48   :  { %2046 = vrot.lane.b32.xlu2 %v2044_v4, %s3001_s1 }
0x1fa1   :  { %v2033_v25 = vpop.permute.xlu1 %2032 }
0x1fa2   :  { %v2047_v27 = vpop.permute.xlu2 %2046  ;;  %v3587_v29 = vadd.f32 %v2033_v25, %v2025_v18 }
0x1fa3   :  { %v3589_v34 = vadd.f32 %v2047_v27, %v2039_v21 }
0x1fa4   :  { %2857 = vtanh.f32 %v3587_v29  ;;  %v2154_v21 = vrot.slane %v3587_v29, 6 }
0x1fa5   :  { %2859 = vtanh.f32 %v3589_v34 }
0x1faa   :  { %v2858_v44 = vpop.eup %2857 }
0x1fab   :  { %v2860_v41 = vpop.eup %2859  ;;  %2052 = vrot.lane.b32.xlu0 %v2858_v44, %s3000_s0 }
0x1fac   :  { %2058 = vrot.lane.b32.xlu1 %v2860_v41, %s3000_s0 }
0x201d   :  { %v2053_v38 = vpop.permute.xlu0 %2052 }
0x201e   :  { %v2059_v55 = vpop.permute.xlu1 %2058  ;;  %v2055_v39 = vmul.f32 %v2053_v38, %v2003_v60 }
0x201f   :  { %v2061_v37 = vmul.f32 %v2059_v55, %v2018_v3  ;;  %v2168_v3 = vrot.slane %v3589_v34, 6 }
0x2020   :  { %2063 = vrot.lane.b32.xlu2 %v2055_v39, %s3001_s1 }
0x2021   :  { %2067 = vrot.lane.b32.xlu0 %v2061_v37, %s3000_s0 }
0x207a   :  { %v2064_v10 = vpop.permute.xlu2 %2063 }
0x207b   :  { %2071 = vst.msk [vmem:[#allocation2 + $0x8] sm:$0xc] %vm407_vm5, %v2064_v10 }
0x2093   :  { %v2068_v40 = vpop.permute.xlu0 %2067 }
0x2094   :  { %v2070_v22 = vsel %vm231_vm10, %v2064_v10, %v2068_v40  ;;  %2072 = vst.msk [vmem:[#allocation2 + $0x2] sm:$0xc] %vm3675_vm14, %v2068_v40 }
0x2095   :  { %v2073_v51 = vpack.c.bf16 %v2070_v22, %v2070_v22 }
0x2097   :  { %v2075_v43 = vrot.slane %v2073_v51, 1 }
0x2099   :  { %2572 = vmatmul.msk.bf16.vlgmr.msrb.gmra.mxu0 %vm280_vm12, %v2075_v43  ;;  %2573 = vmatmul.msk.bf16.vlgmr.msrb.gmra.mxu1 %vm280_vm12, %v2075_v43 }
0x2116   :  { %v2088_v45 = vpop.f32.mrf.mxu0  ;;  %v2101_v32 = vpop.f32.mrf.mxu1 }
0x2117   :  { %v2107_v28 = vrot.slane %v2088_v45, 4  ;;  %v2108_v35 = vrot.slane %v2101_v32, 4 }
0x2119   :  { %v2111_v46 = vadd.f32 %v2107_v28, %v3550_v47  ;;  %v2112_v49 = vadd.f32 %v2108_v35, %v1815_v48 }
0x211b   :  { %2861 = vtanh.f32 %v2111_v46  ;;  %v2575_v54 = vmul.f32 -1.442695, %v2112_v49  ;;  %v2574_v42 = vmul.f32 -1.442695, %v2111_v46 }
0x211c   :  { %2863 = vtanh.f32 %v2112_v49 }
0x211d   :  { %2865 = vpow2.f32 %v2575_v54 }
0x211e   :  { %v2090_v50 = vpop.f32.mrf.mxu0  ;;  %v2103_v52 = vpop.f32.mrf.mxu1 }
0x2121   :  { %v2862_v6 = vpop.eup %2861 }
0x2122   :  { %v2864_v13 = vpop.eup %2863  ;;  %2158 = vrot.lane.b32.xlu1 %v2862_v6, %s3000_s0 }
0x2123   :  { %2172 = vrot.lane.b32.xlu2 %v2864_v13, %s3000_s0  ;;  %v2866_v59 = vpop.eup %2865 }
0x2124   :  { %v2120_v63 = vadd.f32 1.0, %v2866_v59 }
0x2126   :  { %2867 = vrcp.f32 %v2120_v63  ;;  %v2147_v57 = vand.u32 2147483648, %v2120_v63  ;;  %vm2141_vm15 = vweird.f32 %v2120_v63  ;;  %v2145_v24 = vand.u32 2147483647, %v2120_v63 }
0x2127   :  { %2869 = vpow2.f32 %v2574_v42 }
0x2128   :  { %v2148_v17 = vor.u32 1.1754944e-38, %v2147_v57  ;;  %vm2146_vm11 = vcmp.eq.f32.partialorder %v2145_v24, 8.507059e+37 }
0x212c   :  { %v2868_v8 = vpop.eup %2867 }
0x212d   :  { %v2137_v36 = vmul.f32 %v2868_v8, %v2120_v63  ;;  %v2870_v56 = vpop.eup %2869  ;;  %vm2142_vm5 = vweird.f32 %v2868_v8 }
0x212e   :  { %v2119_v5 = vadd.f32 1.0, %v2870_v56  ;;  %vm2143_vm9 = vmor %vm2141_vm15, %vm2142_vm5 }
0x212f   :  { %v2138_v48 = vsub.f32 1.0, %v2137_v36 }
0x2130   :  { %2871 = vrcp.f32 %v2119_v5  ;;  %v2132_v7 = vand.u32 2147483648, %v2119_v5  ;;  %vm2126_vm1 = vweird.f32 %v2119_v5  ;;  %v2130_v19 = vand.u32 2147483647, %v2119_v5 }
0x2131   :  { %v2139_v0 = vmul.f32 %v2868_v8, %v2138_v48 }
0x2132   :  { %v2133_v11 = vor.u32 1.1754944e-38, %v2132_v7  ;;  %vm2131_vm13 = vcmp.eq.f32.partialorder %v2130_v19, 8.507059e+37 }
0x2133   :  { %v2140_v9 = vadd.f32 %v2868_v8, %v2139_v0 }
0x2135   :  { %v2144_v16 = vsel %vm2143_vm9, %v2868_v8, %v2140_v9  ;;  %vm3676_vm9 = vcmask 523526  }
0x2136   :  { %v2149_v58 = vsel %vm2146_vm11, %v2148_v17, %v2144_v16  ;;  %v2872_v62 = vpop.eup %2871 }
0x2137   :  { %v2122_v14 = vmul.f32 %v2872_v62, %v2119_v5  ;;  %vm2127_vm0 = vweird.f32 %v2872_v62  ;;  %v2170_v4 = vmul.f32 %v2168_v3, %v2149_v58  ;;  %v2627_v3 = vld [vmem:[%s3667_s7 + $0x18] sm:$0xff] }
0x2138   :  { %vm2128_vm2 = vmor %vm2126_vm1, %vm2127_vm0  ;;  %2379 = vmatpush.bf16.msra.mxu0 %v2627_v3 }
0x2139   :  { %v2123_v53 = vsub.f32 1.0, %v2122_v14 }
0x213b   :  { %v2124_v20 = vmul.f32 %v2872_v62, %v2123_v53 }
0x213d   :  { %v2125_v30 = vadd.f32 %v2872_v62, %v2124_v20 }
0x213f   :  { %v2129_v61 = vsel %vm2128_vm2, %v2872_v62, %v2125_v30 }
0x2140   :  { %v2134_v1 = vsel %vm2131_vm13, %v2133_v11, %v2129_v61 }
0x2141   :  { %v2156_v25 = vmul.f32 %v2154_v21, %v2134_v1 }
0x217d   :  { %v2173_v23 = vpop.permute.xlu2 %2172 }
0x217e   :  { %v2175_v60 = vmul.f32 %v2173_v23, %v2149_v58 }
0x2180   :  { %2177 = vrot.lane.b32.xlu1 %v2175_v60, %s3001_s1 }
0x2194   :  { %v2159_v33 = vpop.permute.xlu1 %2158 }
0x2195   :  { %v2161_v2 = vmul.f32 %v2159_v33, %v2134_v1 }
0x2197   :  { %2163 = vrot.lane.b32.xlu0 %v2161_v2, %s3001_s1 }
0x21f2   :  { %v2178_v12 = vpop.permute.xlu1 %2177 }
0x21f3   :  { %v3610_v15 = vadd.f32 %v2178_v12, %v2170_v4  ;;  %v2626_v4 = vld [vmem:[%s3667_s7 + $0x10] sm:$0xff] }
0x21f4   :  { %2380 = vmatpush.bf16.msra.mxu0 %v2626_v4 }
0x21f5   :  { %2873 = vtanh.f32 %v3610_v15  ;;  %v2299_v21 = vrot.slane %v3610_v15, 6 }
0x21fb   :  { %v2874_v18 = vpop.eup %2873 }
0x21fc   :  { %2189 = vrot.lane.b32.xlu0 %v2874_v18, %s3000_s0 }
0x2209   :  { %v2164_v27 = vpop.permute.xlu0 %2163 }
0x220a   :  { %v3615_v44 = vadd.f32 %v2164_v27, %v2156_v25 }
0x220c   :  { %2875 = vtanh.f32 %v3615_v44  ;;  %v2285_v62 = vrot.slane %v3615_v44, 6 }
0x2212   :  { %v2876_v41 = vpop.eup %2875 }
0x2213   :  { %2183 = vrot.lane.b32.xlu2 %v2876_v41, %s3000_s0 }
0x226d   :  { %v2184_v34 = vpop.permute.xlu2 %2183 }
0x226e   :  { %v2190_v38 = vpop.permute.xlu0 %2189  ;;  %v2186_v55 = vmul.f32 %v2184_v34, %v2134_v1  ;;  %v2625_v34 = vld [vmem:[%s3667_s7 + $0x8] sm:$0xff] }
0x226f   :  { %v2192_v39 = vmul.f32 %v2190_v38, %v2149_v58  ;;  %2381 = vmatpush.bf16.msra.mxu0 %v2625_v34  ;;  %v2624_v38 = vld [vmem:[%s3667_s7] sm:$0xff]  ;;  %s3002_s7 = smov [#allocation9]  }
0x2270   :  { %2194 = vrot.lane.b32.xlu1 %v2186_v55, %s3001_s1  ;;  %s2395_s4 = sshll.u32 %s3002_s7, 4  ;;  %s2396_s4 = int_to_ptr.vmem [resolvable:$true] %s2395_s4 }
0x2271   :  { %2198 = vrot.lane.b32.xlu2 %v2192_v39, %s3000_s0 }
0x2273   :  { %2382 = vmatpush.bf16.msra.mxu0 %v2624_v38 }
0x22cb   :  { %v2199_v37 = vpop.permute.xlu2 %2198 }
0x22cc   :  { %2203 = vst.msk [vmem:[#allocation2 - $0x2] sm:$0x30] %vm542_vm3, %v2199_v37 }
0x22e2   :  { %v2195_v29 = vpop.permute.xlu1 %2194 }
0x22e3   :  { %v2201_v10 = vsel %vm231_vm10, %v2195_v29, %v2199_v37  ;;  %2202 = vst.msk [vmem:[#allocation2 + $0x8] sm:$0x30] %vm540_vm4, %v2195_v29 }
0x22e4   :  { %v2204_v40 = vpack.c.bf16 %v2201_v10, %v2201_v10 }
0x22e6   :  { %v2206_v22 = vrot.slane %v2204_v40, 2  ;;  %v2636_v40 = vld [vmem:[%s3668_s8] ss:$0 sm:$0xff] }
0x22e8   :  { %2576 = vmatmul.msk.bf16.vlgmr.msrb.gmra.mxu2 %vm280_vm12, %v2206_v22  ;;  %2577 = vmatmul.msk.bf16.vlgmr.msrb.gmra.mxu3 %vm280_vm12, %v2206_v22 }
0x236b   :  { %v2219_v51 = vpop.f32.mrf.mxu2  ;;  %v2232_v43 = vpop.f32.mrf.mxu3 }
0x236c   :  { %v2238_v45 = vrot.slane %v2219_v51, 2  ;;  %v2239_v42 = vrot.slane %v2232_v43, 2 }
0x236e   :  { %v2242_v32 = vadd.f32 %v2238_v45, %v3550_v47  ;;  %v2243_v56 = vadd.f32 %v2239_v42, %v1942_v31 }
0x2370   :  { %2877 = vtanh.f32 %v2242_v32  ;;  %v2578_v49 = vmul.f32 -1.442695, %v2242_v32  ;;  %v2579_v24 = vmul.f32 -1.442695, %v2243_v56 }
0x2372   :  { %2879 = vpow2.f32 %v2578_v49 }
0x2373   :  { %v2221_v28 = vpop.f32.mrf.mxu2  ;;  %v2234_v35 = vpop.f32.mrf.mxu3 }
0x2376   :  { %v2878_v46 = vpop.eup %2877 }
0x2377   :  { %2289 = vrot.lane.b32.xlu0 %v2878_v46, %s3000_s0 }
0x2378   :  { %v2880_v50 = vpop.eup %2879 }
0x2379   :  { %v2250_v52 = vadd.f32 1.0, %v2880_v50 }
0x237b   :  { %2881 = vrcp.f32 %v2250_v52  ;;  %v2263_v8 = vand.u32 2147483648, %v2250_v52  ;;  %vm2257_vm3 = vweird.f32 %v2250_v52  ;;  %v2261_v47 = vand.u32 2147483647, %v2250_v52 }
0x237c   :  { %2883 = vtanh.f32 %v2243_v56 }
0x237d   :  { %v2264_v48 = vor.u32 1.1754944e-38, %v2263_v8  ;;  %vm2262_vm8 = vcmp.eq.f32.partialorder %v2261_v47, 8.507059e+37  ;;  %2885 = vpow2.f32 %v2579_v24 }
0x2381   :  { %v2882_v6 = vpop.eup %2881 }
0x2382   :  { %v2253_v13 = vmul.f32 %v2882_v6, %v2250_v52  ;;  %vm2258_vm10 = vweird.f32 %v2882_v6  ;;  %v2884_v57 = vpop.eup %2883 }
0x2383   :  { %vm2259_vm4 = vmor %vm2257_vm3, %vm2258_vm10  ;;  %v2886_v16 = vpop.eup %2885 }
0x2384   :  { %v2254_v54 = vsub.f32 1.0, %v2253_v13  ;;  %v2251_v17 = vadd.f32 1.0, %v2886_v16 }
0x2386   :  { %v2255_v59 = vmul.f32 %v2882_v6, %v2254_v54  ;;  %2887 = vrcp.f32 %v2251_v17  ;;  %v2278_v7 = vand.u32 2147483648, %v2251_v17  ;;  %vm2272_vm14 = vweird.f32 %v2251_v17 }
0x2387   :  { %v2276_v19 = vand.u32 2147483647, %v2251_v17 }
0x2388   :  { %v2256_v63 = vadd.f32 %v2882_v6, %v2255_v59  ;;  %v2279_v11 = vor.u32 1.1754944e-38, %v2278_v7 }
0x2389   :  { %vm2277_vm15 = vcmp.eq.f32.partialorder %v2276_v19, 8.507059e+37 }
0x238a   :  { %v2260_v36 = vsel %vm2259_vm4, %v2882_v6, %v2256_v63 }
0x238b   :  { %v2265_v5 = vsel %vm2262_vm8, %v2264_v48, %v2260_v36 }
0x238c   :  { %v2888_v23 = vpop.eup %2887  ;;  %v2287_v26 = vmul.f32 %v2285_v62, %v2265_v5 }
0x238d   :  { %v2268_v58 = vmul.f32 %v2888_v23, %v2251_v17  ;;  %vm2273_vm6 = vweird.f32 %v2888_v23 }
0x238e   :  { %vm2274_vm5 = vmor %vm2272_vm14, %vm2273_vm6 }
0x238f   :  { %v2269_v60 = vsub.f32 1.0, %v2268_v58 }
0x2391   :  { %v2270_v53 = vmul.f32 %v2888_v23, %v2269_v60 }
0x2393   :  { %v2271_v20 = vadd.f32 %v2888_v23, %v2270_v53 }
0x2395   :  { %v2275_v61 = vsel %vm2274_vm5, %v2888_v23, %v2271_v20 }
0x2396   :  { %v2280_v1 = vsel %vm2277_vm15, %v2279_v11, %v2275_v61 }
0x2397   :  { %v2301_v25 = vmul.f32 %v2299_v21, %v2280_v1 }
0x23e9   :  { %v2290_v0 = vpop.permute.xlu0 %2289 }
0x23ea   :  { %v2292_v9 = vmul.f32 %v2290_v0, %v2265_v5 }
0x23ec   :  { %2294 = vrot.lane.b32.xlu1 %v2292_v9, %s3001_s1 }
0x23f4   :  { %2303 = vrot.lane.b32.xlu1 %v2884_v57, %s3000_s0 }
0x245e   :  { %v2295_v31 = vpop.permute.xlu1 %2294 }
0x245f   :  { %v2297_v14 = vadd.f32 %v2295_v31, %v2287_v26 }
0x2461   :  { %2889 = vtanh.f32 %v2297_v14 }
0x2466   :  { %v2304_v33 = vpop.permute.xlu1 %2303 }
0x2467   :  { %v2890_v30 = vpop.eup %2889  ;;  %v2306_v2 = vmul.f32 %v2304_v33, %v2280_v1 }
0x2468   :  { %2314 = vrot.lane.b32.xlu2 %v2890_v30, %s3000_s0 }
0x2470   :  { %2308 = vrot.lane.b32.xlu2 %v2306_v2, %s3001_s1 }
0x24c2   :  { %v2315_v12 = vpop.permute.xlu2 %2314 }
0x24c3   :  { %v2317_v18 = vmul.f32 %v2315_v12, %v2265_v5 }
0x24c5   :  { %2325 = vrot.lane.b32.xlu0 %v2317_v18, %s3001_s1 }
0x24ca   :  { %v2309_v27 = vpop.permute.xlu2 %2308 }
0x24cb   :  { %v2311_v44 = vadd.f32 %v2309_v27, %v2301_v25 }
0x24cd   :  { %2891 = vtanh.f32 %v2311_v44 }
0x24d3   :  { %v2892_v41 = vpop.eup %2891 }
0x24d4   :  { %2320 = vrot.lane.b32.xlu0 %v2892_v41, %s3000_s0 }
0x2537   :  { %v2326_v55 = vpop.permute.xlu0 %2325 }
0x2538   :  { %2328 = vst.msk [vmem:[#allocation2 + $0x8] sm:$0xc0] %vm673_vm7, %v2326_v55  ;;  %vm2388_vm7 = vcmask 25600  }
0x253f   :  { %v2334_v15 = vld [vmem:[#allocation2 + $0xe] sm:$0x3] }
0x2540   :  { %v2335_v39 = vpack.c.bf16 %v2334_v15, %v2334_v15 }
0x2542   :  { %2596 = vmatmul.msk.bf16.vlgmr.msra.gmra.mxu0 %vm280_vm12, %v2335_v39 }
0x2546   :  { %v2321_v37 = vpop.permute.xlu0 %2320 }
0x2547   :  { %v2323_v29 = vmul.f32 %v2321_v37, %v2280_v1 }
0x2549   :  { %2330 = vrot.lane.b32.xlu1 %v2323_v29, %s3000_s0 }
0x25bb   :  { %v2331_v10 = vpop.permute.xlu1 %2330 }
0x25bc   :  { %2333 = vst.msk [vmem:[#allocation2 - $0x6] sm:$0xc0] %vm3676_vm9, %v2331_v10 }
0x25bf   :  { %v2384_v22 = vpop.f32.mrf.mxu0 }
0x25c0   :  { %v2385_v51 = vadd.f32 %v2636_v40, %v2384_v22 }
0x25c2   :  { %2389 = vst.msk [vmem:[#allocation9] sm:$0x3] %vm2388_vm7, %v2385_v51 }
0x25c3   :  { %2400 = dma.vmem_to_hbm [thread:$0]  %s2396_s4, 32, %s2398_s25, [#allocation5]  }
0x25c7   :  { %v2386_v43 = vpop.f32.mrf.mxu0 }
0x25c8   :  { %2993 = dma.done.wait [#allocation5], 32  }
0x25c9   :  { %2994 = vsyncadd [#allocation5], 4294967264 }
0x25ca   :  { %2405 = vsyncpa [#allocation4], 1 }
0x25cb   :  { %2406 = vsyncpa [#allocation7], 1 }
0x25cc   :  { %2407 = vsyncpa [#allocation5], 1 }

</bundles_post_ra>
